<compile_context>
chip_gen: v7x
topology: tpu7x:2x2x1
jax: 0.10.0
libtpu: 0.0.40
codegen_flags: <defaults>
</compile_context>

<pallas_src>
import functools

import jax
import jax.numpy as jnp
from jax import lax
from jax.experimental import pallas as pl
from jax.experimental.pallas import tpu as pltpu

# ----------------------------- configuration -------------------------------
MOMENTUM = 0.999
TEMPERATURE = 0.07
DIM = 128           # projection dim (the `dim` ctor arg)
DIM_MLP = 256       # stand-in for resnet50's 2048-d pooled feature
QUEUE_SIZE = 256
N_BATCH, C_IN, H_IN, W_IN = 2, 3, 16, 16
FEAT = C_IN * H_IN * W_IN

FEA2DIM = {'lts': 4, 'oneway': 1, 'oneway_onehot': 2, 'parking': 1,
           'parking_onehot': 2, 'volume': 1, 'volume_onehot': 2,
           'speed_actual': 1, 'speed_actual_onehot': 4, 'cyc_infras': 2,
           'cyc_infras_onehot': 4, 'n_lanes': 1, 'n_lanes_onehot': 5,
           'road_type': 9, 'road_type_onehot': 4}
TARGET_FEATURES = ['lts', 'oneway', 'speed_actual_onehot']

PRED_HID = 32
N_HEADS = len(TARGET_FEATURES)
PRED_DIMS = [FEA2DIM[f] for f in TARGET_FEATURES]              # [4, 1, 4]
PRED_OFFS = [sum(PRED_DIMS[:i]) for i in range(len(PRED_DIMS))]
PRED_TOTAL = sum(PRED_DIMS)
PRED_SLAB = 128                                                # lane-dense padded width
LOGIT_SLAB = DIM + QUEUE_SIZE                                  # 128-lane l_pos block + l_other
assert PRED_TOTAL <= PRED_SLAB
assert DIM % 128 == 0 and QUEUE_SIZE % 128 == 0
# the in-kernel enqueue writes rows [ptr, ptr+N); it never wraps because
assert QUEUE_SIZE % N_BATCH == 0

_EPS = 1e-12  # torch F.normalize eps

# rough advisory cost (flops / bytes) for XLA scheduling around the custom call
_COST_FLOPS = (2 * N_BATCH * FEAT * DIM_MLP * 3          # q dot + distributive k dots
               + 2 * N_BATCH * DIM_MLP * DIM * 2          # shared projection (q, k)
               + 2 * N_BATCH * DIM_MLP * (N_HEADS * PRED_HID)
               + 2 * N_BATCH * (N_HEADS * PRED_HID) * PRED_SLAB
               + 2 * N_BATCH * DIM * QUEUE_SIZE           # l_other
               + 2 * FEAT * DIM_MLP)                      # EMA elementwise
_COST_BYTES = 4 * (3 * FEAT * DIM_MLP                     # wq read, wk read, wk write
                   + QUEUE_SIZE * DIM                     # queue read (+ tiny enqueue write)
                   + 2 * N_BATCH * FEAT
                   + DIM_MLP * DIM + DIM_MLP * N_HEADS * PRED_HID
                   + N_HEADS * PRED_HID * PRED_SLAB
                   + N_BATCH * (LOGIT_SLAB + PRED_SLAB))
_COST_TRANS = 4 * N_BATCH                                 # rsqrt per normalized row


def _vmem_spec():
    return pl.BlockSpec(memory_space=pltpu.MemorySpace.VMEM)


# ------------------------------- fused kernel -------------------------------
def fused_forward_kernel(
        # inputs
        ptr_ref,                                   # (1,) int32 in SMEM: queue_ptr
        xq_ref, xk_ref,
        wq_ref, bq_ref, wk_ref, bk_ref,
        pw_ref, pb_ref,
        w1_ref, b1_ref, w2_ref, b2_ref,
        queue_hbm_ref,                             # (QUEUE_SIZE, DIM) in HBM (ANY)
        # outputs
        new_wk_ref, new_bk_ref, logits_ref, preds_ref,
        new_queue_hbm_ref,                         # aliased with queue_hbm_ref
        # scratch
        queue_vmem, kbuf, dma_sems):
    n = xq_ref.shape[0]

    # kick off the queue HBM->VMEM pull immediately; it overlaps the EMA + encoder matmuls
    queue_in = pltpu.make_async_copy(queue_hbm_ref, queue_vmem, dma_sems.at[0])
    queue_in.start()

    wq = wq_ref[...]
    bq = bq_ref[...]
    wk_old = wk_ref[...]
    bk_old = bk_ref[...]

    # ---- momentum EMA of the key encoder ----
    # written straight to the (aliased) outputs so it is NOT a live dependency of the k-path
    # matmul below; it streams as VPU filler under the MXU work.
    bk_new = bk_old * MOMENTUM + bq * (1.0 - MOMENTUM)
    new_wk_ref[...] = wk_old * MOMENTUM + wq * (1.0 - MOMENTUM)
    new_bk_ref[...] = bk_new

    def norm_rows(y):
        ssq = jnp.sum(y * y, axis=1, keepdims=True)
        # y / max(||y||, eps) == y * rsqrt(max(ssq, eps^2))   (rsqrt goes to the EUP slot)
        return y * lax.rsqrt(jnp.maximum(ssq, _EPS * _EPS))

    # ---- encoder_q: Linear -> ReLU -> row L2-normalize ----
    q_feat = norm_rows(jnp.maximum(
        jnp.dot(xq_ref[...], wq, preferred_element_type=jnp.float32) + bq, 0.0))

    # ---- encoder_k with the EMA applied distributively ----
    #   xk @ (m*wk + (1-m)*wq) == m*(xk@wk) + (1-m)*(xk@wq)
    xk = xk_ref[...]
    k_lin = (MOMENTUM * jnp.dot(xk, wk_old, preferred_element_type=jnp.float32)
             + (1.0 - MOMENTUM) * jnp.dot(xk, wq, preferred_element_type=jnp.float32)
             + bk_new)
    k_feat = norm_rows(jnp.maximum(k_lin, 0.0))

    # ---- 3 predictor heads fused: stacked W1, block-diagonal lane-padded W2 ----
    h = jnp.maximum(jnp.dot(q_feat, w1_ref[...], preferred_element_type=jnp.float32)
                    + b1_ref[...], 0.0)
    preds_ref[...] = jnp.dot(h, w2_ref[...],
                             preferred_element_type=jnp.float32) + b2_ref[...]

    # ---- shared projection head + normalize ----
    pw = pw_ref[...]
    pb = pb_ref[...]
    qn = norm_rows(jnp.dot(q_feat, pw, preferred_element_type=jnp.float32) + pb)
    kn = norm_rows(jnp.dot(k_feat, pw, preferred_element_type=jnp.float32) + pb)

    # ---- contrastive logits, lane-dense slab (no offset-1 concat, no masked stores) ----
    inv_t = 1.0 / TEMPERATURE
    l_pos = jnp.sum(qn * kn, axis=1, keepdims=True) * inv_t
    logits_ref[:, 0:DIM] = jnp.broadcast_to(l_pos, (n, DIM))     # lanes [0,128): l_pos

    queue_in.wait()
    l_other = lax.dot_general(qn, queue_vmem[...], (((1,), (1,)), ((), ())),
                              preferred_element_type=jnp.float32) * inv_t
    logits_ref[:, DIM:] = l_other                                # lanes [128,128+K): l_other

    # ---- ring-buffer enqueue inside the kernel: only n rows of the aliased queue rewritten ----
    kbuf[...] = kn
    ptr = ptr_ref[0]
    enq = pltpu.make_async_copy(kbuf, new_queue_hbm_ref.at[pl.ds(ptr, n)], dma_sems.at[1])
    enq.start()
    enq.wait()


def _build_fused_call(n):
    out_shape = (
        jax.ShapeDtypeStruct((FEAT, DIM_MLP), jnp.float32),      # new enc_k_w (aliased)
        jax.ShapeDtypeStruct((1, DIM_MLP), jnp.float32),         # new enc_k_b (aliased)
        jax.ShapeDtypeStruct((n, LOGIT_SLAB), jnp.float32),      # logits slab
        jax.ShapeDtypeStruct((n, PRED_SLAB), jnp.float32),       # predictor slab
        jax.ShapeDtypeStruct((QUEUE_SIZE, DIM), jnp.float32),    # new queue (aliased)
    )
    in_specs = ([pl.BlockSpec(memory_space=pltpu.MemorySpace.SMEM)]   # queue_ptr scalar
                + [_vmem_spec()] * 12
                + [pl.BlockSpec(memory_space=pl.ANY)])                # queue stays in HBM
    out_specs = (_vmem_spec(), _vmem_spec(), _vmem_spec(), _vmem_spec(),
                 pl.BlockSpec(memory_space=pl.ANY))
    return pl.pallas_call(
        fused_forward_kernel,
        out_shape=out_shape,
        in_specs=in_specs,
        out_specs=out_specs,
        scratch_shapes=[pltpu.VMEM((QUEUE_SIZE, DIM), jnp.float32),
                        pltpu.VMEM((n, DIM), jnp.float32),
                        pltpu.SemaphoreType.DMA((2,))],
        input_output_aliases={5: 0, 6: 1, 13: 4},   # enc_k_w / enc_k_b / queue in place
        cost_estimate=pl.CostEstimate(flops=_COST_FLOPS,
                                      transcendentals=_COST_TRANS,
                                      bytes_accessed=_COST_BYTES),
    )


# ------------------------------- forward ------------------------------------
@functools.partial(jax.jit, donate_argnums=(5, 6, 13))
def _forward_step(im_q, im_k, label,
                  enc_q_w, enc_q_b, enc_k_w, enc_k_b,
                  proj_w, proj_b, pred_w1, pred_b1, pred_w2, pred_b2,
                  queue_t, queue_lts, queue_ptr):
    """MoCo_type='sup', simple_shuffle=False, vali=False."""
    n = im_q.shape[0]
    xq = im_q.reshape(n, -1)                       # NCHW -> (N, C*H*W), row-major
    xk = im_k.reshape(n, -1)
    ptr_arr = queue_ptr.astype(jnp.int32).reshape((1,))

    (new_wk, new_bk, logits_slab, preds_slab, new_queue_t) = _build_fused_call(n)(
        ptr_arr, xq, xk, enc_q_w, enc_q_b, enc_k_w, enc_k_b, proj_w, proj_b,
        pred_w1, pred_b1, pred_w2, pred_b2, queue_t)

    # reorder the lane-dense slab into the spec layout: [l_pos | l_other] / T  (tiny XLA op)
    logits = jnp.concatenate([logits_slab[:, :1], logits_slab[:, DIM:]], axis=1)
    preds = [preds_slab[:, off:off + d] for off, d in zip(PRED_OFFS, PRED_DIMS)]

    # supervised MoCo targets: depend only on inputs, so computed here, not in the kernel
    lbl = label.astype(jnp.int32)
    eq = (queue_lts[None, :] == lbl[:, None]).astype(jnp.int32)
    targets = jnp.concatenate([jnp.ones((n, 1), jnp.int32), eq], axis=1)

    # queue_lts ring-buffer update (1 KB; cheap as a plain XLA op). queue itself was already
    # updated in-place inside the kernel.
    new_queue_lts = lax.dynamic_update_slice(queue_lts, lbl, (queue_ptr,))
    new_ptr = (queue_ptr + n) % QUEUE_SIZE

    return logits, targets, preds, new_wk, new_bk, new_queue_t, new_queue_lts, new_ptr


def multitask_encoder_forward(params, im_q, im_k, label):
    (logits, targets, preds, new_wk, new_bk, new_queue_t, new_queue_lts,
     new_ptr) = _forward_step(
        im_q, im_k, label.astype(jnp.int32),
        params['enc_q_w'], params['enc_q_b'], params['enc_k_w'], params['enc_k_b'],
        params['proj_w'], params['proj_b'],
        params['pred_w1'], params['pred_b1'], params['pred_w2'], params['pred_b2'],
        params['queue_t'], params['queue_lts'], params['queue_ptr'])
    new_state = dict(enc_k_w=new_wk, enc_k_b=new_bk, queue_t=new_queue_t,
                     queue_lts=new_queue_lts, queue_ptr=new_ptr)
    return logits, targets, preds, new_state


# --------------------------- parameter init ---------------------------------
def init_params(key):
    ks = jax.random.split(key, 12)
    enc_q_w = jax.random.normal(ks[0], (FEAT, DIM_MLP), jnp.float32) * 0.02
    enc_q_b = jnp.zeros((1, DIM_MLP), jnp.float32)
    # encoder_k params copied from encoder_q in __init__ (separate buffers so the aliased
    # in-place EMA update never touches the query weights). Keep the EMA state in f32.
    enc_k_w = enc_q_w + 0.0
    enc_k_b = enc_q_b + 0.0
    proj_w = jax.random.normal(ks[1], (DIM_MLP, DIM), jnp.float32) * 0.02
    proj_b = jnp.zeros((1, DIM), jnp.float32)

    # fused predictor heads: stacked W1 / block-diagonal, lane-padded W2
    pred_w1 = jnp.zeros((DIM_MLP, N_HEADS * PRED_HID), jnp.float32)
    pred_b1 = jnp.zeros((1, N_HEADS * PRED_HID), jnp.float32)
    pred_w2 = jnp.zeros((N_HEADS * PRED_HID, PRED_SLAB), jnp.float32)
    pred_b2 = jnp.zeros((1, PRED_SLAB), jnp.float32)
    for i, (fea, off) in enumerate(zip(TARGET_FEATURES, PRED_OFFS)):
        d = FEA2DIM[fea]
        w1 = jax.random.normal(ks[2 + 2 * i], (DIM_MLP, PRED_HID), jnp.float32) * 0.05
        w2 = jax.random.normal(ks[3 + 2 * i], (PRED_HID, d), jnp.float32) * 0.05
        pred_w1 = pred_w1.at[:, i * PRED_HID:(i + 1) * PRED_HID].set(w1)
        pred_w2 = pred_w2.at[i * PRED_HID:(i + 1) * PRED_HID, off:off + d].set(w2)

    # queue stored transposed internally: (QUEUE_SIZE, DIM), each key row unit-norm
    queue_t = jax.random.normal(ks[10], (QUEUE_SIZE, DIM), jnp.float32)
    queue_t = queue_t / jnp.maximum(jnp.linalg.norm(queue_t, axis=1, keepdims=True), _EPS)
    queue_lts = -jnp.ones((QUEUE_SIZE,), jnp.int32)
    queue_ptr = jnp.zeros((), jnp.int32)
    return dict(enc_q_w=enc_q_w, enc_q_b=enc_q_b,
                enc_k_w=enc_k_w, enc_k_b=enc_k_b,
                proj_w=proj_w, proj_b=proj_b,
                pred_w1=pred_w1, pred_b1=pred_b1,
                pred_w2=pred_w2, pred_b2=pred_b2,
                queue_t=queue_t, queue_lts=queue_lts, queue_ptr=queue_ptr)


# --------------------------------- main --------------------------------------
if __name__ == "__main__":
    key = jax.random.PRNGKey(0)
    k_param, k_q, k_k, k_lbl = jax.random.split(key, 4)

    params = init_params(k_param)
    im_q = jax.random.normal(k_q, (N_BATCH, C_IN, H_IN, W_IN), jnp.float32)
    im_k = jax.random.normal(k_k, (N_BATCH, C_IN, H_IN, W_IN), jnp.float32)
    label = jax.random.randint(k_lbl, (N_BATCH,), 1, 5).astype(jnp.int32)

    logits, targets, preds, new_state = multitask_encoder_forward(
        params, im_q, im_k, label)

    jax.block_until_ready(logits)
    jax.block_until_ready(targets)
    for p in preds:
        jax.block_until_ready(p)
    jax.block_until_ready(new_state['queue_t'])
    jax.block_until_ready(new_state['enc_k_w'])
    jax.block_until_ready(new_state['queue_lts'])

    assert logits.shape == (N_BATCH, 1 + QUEUE_SIZE)
    assert targets.shape == (N_BATCH, 1 + QUEUE_SIZE)
    assert [p.shape for p in preds] == [(N_BATCH, FEA2DIM[f]) for f in TARGET_FEATURES]
    assert new_state['queue_t'].shape == (QUEUE_SIZE, DIM)
    assert int(new_state['queue_ptr']) == N_BATCH % QUEUE_SIZE
    print("KERNEL_OK")
</pallas_src>

<mosaic_0001>
module attributes {stable_mosaic.version = 11 : i64} {
  func.func @fused_forward_kernel(%arg0: memref<1xi32, #tpu.memory_space<smem>>, %arg1: memref<2x768xf32, #tpu.memory_space<vmem>>, %arg2: memref<2x768xf32, #tpu.memory_space<vmem>>, %arg3: memref<768x256xf32, #tpu.memory_space<vmem>>, %arg4: memref<1x256xf32, #tpu.memory_space<vmem>>, %arg5: memref<768x256xf32, #tpu.memory_space<vmem>>, %arg6: memref<1x256xf32, #tpu.memory_space<vmem>>, %arg7: memref<256x128xf32, #tpu.memory_space<vmem>>, %arg8: memref<1x128xf32, #tpu.memory_space<vmem>>, %arg9: memref<256x96xf32, #tpu.memory_space<vmem>>, %arg10: memref<1x96xf32, #tpu.memory_space<vmem>>, %arg11: memref<96x128xf32, #tpu.memory_space<vmem>>, %arg12: memref<1x128xf32, #tpu.memory_space<vmem>>, %arg13: memref<256x128xf32, #tpu.memory_space<any>>, %arg14: memref<768x256xf32, #tpu.memory_space<vmem>>, %arg15: memref<1x256xf32, #tpu.memory_space<vmem>>, %arg16: memref<2x384xf32, #tpu.memory_space<vmem>>, %arg17: memref<2x128xf32, #tpu.memory_space<vmem>>, %arg18: memref<256x128xf32, #tpu.memory_space<any>>, %arg19: memref<256x128xf32, #tpu.memory_space<vmem>>, %arg20: memref<2x128xf32, #tpu.memory_space<vmem>>, %arg21: memref<2x!tpu.dma_semaphore, #tpu.memory_space<semaphore_mem>>) attributes {dimension_semantics = [], scalar_prefetch = 0 : i64, scratch_operands = 3 : i64, tpu.core_type = #tpu.core_type<tc>} {
    %c0_i32 = arith.constant 0 : i32
    %0 = tpu.memref_slice %arg21[%c0_i32] : memref<2x!tpu.dma_semaphore, #tpu.memory_space<semaphore_mem>> -> memref<1x!tpu.dma_semaphore, #tpu.memory_space<semaphore_mem>>
    %1 = tpu.memref_squeeze %0 : memref<1x!tpu.dma_semaphore, #tpu.memory_space<semaphore_mem>> -> memref<!tpu.dma_semaphore, #tpu.memory_space<semaphore_mem>>
    tpu.enqueue_dma source(%arg13 : memref<256x128xf32, #tpu.memory_space<any>>) target(%arg19 : memref<256x128xf32, #tpu.memory_space<vmem>>) target_semaphore(%1 : memref<!tpu.dma_semaphore, #tpu.memory_space<semaphore_mem>>)
    %c0 = arith.constant 0 : index
    %c0_0 = arith.constant 0 : index
    %2 = vector.load %arg3[%c0, %c0_0] : memref<768x256xf32, #tpu.memory_space<vmem>>, vector<768x256xf32>
    %c0_1 = arith.constant 0 : index
    %c0_2 = arith.constant 0 : index
    %3 = vector.load %arg4[%c0_1, %c0_2] : memref<1x256xf32, #tpu.memory_space<vmem>>, vector<1x256xf32>
    %c0_3 = arith.constant 0 : index
    %c0_4 = arith.constant 0 : index
    %4 = vector.load %arg5[%c0_3, %c0_4] : memref<768x256xf32, #tpu.memory_space<vmem>>, vector<768x256xf32>
    %c0_5 = arith.constant 0 : index
    %c0_6 = arith.constant 0 : index
    %5 = vector.load %arg6[%c0_5, %c0_6] : memref<1x256xf32, #tpu.memory_space<vmem>>, vector<1x256xf32>
    %cst = arith.constant 9.990000e-01 : f32
    %6 = vector.broadcast %cst : f32 to vector<1x256xf32>
    %7 = arith.mulf %5, %6 : vector<1x256xf32>
    %cst_7 = arith.constant 1.000000e-03 : f32
    %8 = vector.broadcast %cst_7 : f32 to vector<1x256xf32>
    %9 = arith.mulf %3, %8 : vector<1x256xf32>
    %10 = arith.addf %7, %9 : vector<1x256xf32>
    %cst_8 = arith.constant 9.990000e-01 : f32
    %11 = vector.broadcast %cst_8 : f32 to vector<768x256xf32>
    %12 = arith.mulf %4, %11 : vector<768x256xf32>
    %cst_9 = arith.constant 1.000000e-03 : f32
    %13 = vector.broadcast %cst_9 : f32 to vector<768x256xf32>
    %14 = arith.mulf %2, %13 : vector<768x256xf32>
    %15 = arith.addf %12, %14 : vector<768x256xf32>
    %c0_10 = arith.constant 0 : index
    %c0_11 = arith.constant 0 : index
    %16 = vector.load %arg14[%c0_10, %c0_11] : memref<768x256xf32, #tpu.memory_space<vmem>>, vector<768x256xf32>
    tpu.vector_store %arg14[%c0_10, %c0_11], %15 {strides = array<i32>} : memref<768x256xf32, #tpu.memory_space<vmem>>, vector<768x256xf32>,
    %c0_12 = arith.constant 0 : index
    %c0_13 = arith.constant 0 : index
    %17 = vector.load %arg15[%c0_12, %c0_13] : memref<1x256xf32, #tpu.memory_space<vmem>>, vector<1x256xf32>
    tpu.vector_store %arg15[%c0_12, %c0_13], %10 {strides = array<i32>} : memref<1x256xf32, #tpu.memory_space<vmem>>, vector<1x256xf32>,
    %c0_14 = arith.constant 0 : index
    %c0_15 = arith.constant 0 : index
    %18 = vector.load %arg1[%c0_14, %c0_15] : memref<2x768xf32, #tpu.memory_space<vmem>>, vector<2x768xf32>
    %cst_16 = arith.constant dense<0.000000e+00> : vector<2x256xf32>
    %19 = tpu.matmul %18, %2, %cst_16 {dimension_numbers = #tpu.dot_dimension_numbers<[1], [0], [0], [1], [0, 0, 1, 1], [], []>} : vector<2x768xf32>, vector<768x256xf32>, vector<2x256xf32> -> vector<2x256xf32>
    %20 = vector.broadcast %3 : vector<1x256xf32> to vector<2x256xf32>
    %21 = arith.addf %19, %20 : vector<2x256xf32>
    %cst_17 = arith.constant 0.000000e+00 : f32
    %22 = vector.broadcast %cst_17 : f32 to vector<2x256xf32>
    %23 = arith.maximumf %21, %22 : vector<2x256xf32>
    %24 = arith.mulf %23, %23 : vector<2x256xf32>
    %cst_18 = arith.constant dense<0.000000e+00> : vector<2xf32>
    %25 = vector.multi_reduction <add>, %24, %cst_18 [1] : vector<2x256xf32> to vector<2xf32>
    %26 = vector.shape_cast %25 : vector<2xf32> to vector<2x1xf32>
    %cst_19 = arith.constant 1.000000e-24 : f32
    %27 = vector.broadcast %cst_19 : f32 to vector<2x1xf32>
    %28 = arith.maximumf %26, %27 : vector<2x1xf32>
    %29 = math.rsqrt %28 : vector<2x1xf32>
    %30 = vector.broadcast %29 : vector<2x1xf32> to vector<2x256xf32>
    %31 = arith.mulf %23, %30 : vector<2x256xf32>
    %c0_20 = arith.constant 0 : index
    %c0_21 = arith.constant 0 : index
    %32 = vector.load %arg2[%c0_20, %c0_21] : memref<2x768xf32, #tpu.memory_space<vmem>>, vector<2x768xf32>
    %cst_22 = arith.constant dense<0.000000e+00> : vector<2x256xf32>
    %33 = tpu.matmul %32, %4, %cst_22 {dimension_numbers = #tpu.dot_dimension_numbers<[1], [0], [0], [1], [0, 0, 1, 1], [], []>} : vector<2x768xf32>, vector<768x256xf32>, vector<2x256xf32> -> vector<2x256xf32>
    %cst_23 = arith.constant 9.990000e-01 : f32
    %34 = vector.broadcast %cst_23 : f32 to vector<2x256xf32>
    %35 = arith.mulf %34, %33 : vector<2x256xf32>
    %cst_24 = arith.constant dense<0.000000e+00> : vector<2x256xf32>
    %36 = tpu.matmul %32, %2, %cst_24 {dimension_numbers = #tpu.dot_dimension_numbers<[1], [0], [0], [1], [0, 0, 1, 1], [], []>} : vector<2x768xf32>, vector<768x256xf32>, vector<2x256xf32> -> vector<2x256xf32>
    %cst_25 = arith.constant 1.000000e-03 : f32
    %37 = vector.broadcast %cst_25 : f32 to vector<2x256xf32>
    %38 = arith.mulf %37, %36 : vector<2x256xf32>
    %39 = arith.addf %35, %38 : vector<2x256xf32>
    %40 = vector.broadcast %10 : vector<1x256xf32> to vector<2x256xf32>
    %41 = arith.addf %39, %40 : vector<2x256xf32>
    %cst_26 = arith.constant 0.000000e+00 : f32
    %42 = vector.broadcast %cst_26 : f32 to vector<2x256xf32>
    %43 = arith.maximumf %41, %42 : vector<2x256xf32>
    %44 = arith.mulf %43, %43 : vector<2x256xf32>
    %cst_27 = arith.constant dense<0.000000e+00> : vector<2xf32>
    %45 = vector.multi_reduction <add>, %44, %cst_27 [1] : vector<2x256xf32> to vector<2xf32>
    %46 = vector.shape_cast %45 : vector<2xf32> to vector<2x1xf32>
    %cst_28 = arith.constant 1.000000e-24 : f32
    %47 = vector.broadcast %cst_28 : f32 to vector<2x1xf32>
    %48 = arith.maximumf %46, %47 : vector<2x1xf32>
    %49 = math.rsqrt %48 : vector<2x1xf32>
    %50 = vector.broadcast %49 : vector<2x1xf32> to vector<2x256xf32>
    %51 = arith.mulf %43, %50 : vector<2x256xf32>
    %c0_29 = arith.constant 0 : index
    %c0_30 = arith.constant 0 : index
    %52 = vector.load %arg9[%c0_29, %c0_30] : memref<256x96xf32, #tpu.memory_space<vmem>>, vector<256x96xf32>
    %cst_31 = arith.constant dense<0.000000e+00> : vector<2x96xf32>
    %53 = tpu.matmul %31, %52, %cst_31 {dimension_numbers = #tpu.dot_dimension_numbers<[1], [0], [0], [1], [0, 0, 1, 1], [], []>} : vector<2x256xf32>, vector<256x96xf32>, vector<2x96xf32> -> vector<2x96xf32>
    %c0_32 = arith.constant 0 : index
    %c0_33 = arith.constant 0 : index
    %54 = vector.load %arg10[%c0_32, %c0_33] : memref<1x96xf32, #tpu.memory_space<vmem>>, vector<1x96xf32>
    %55 = vector.broadcast %54 : vector<1x96xf32> to vector<2x96xf32>
    %56 = arith.addf %53, %55 : vector<2x96xf32>
    %cst_34 = arith.constant 0.000000e+00 : f32
    %57 = vector.broadcast %cst_34 : f32 to vector<2x96xf32>
    %58 = arith.maximumf %56, %57 : vector<2x96xf32>
    %c0_35 = arith.constant 0 : index
    %c0_36 = arith.constant 0 : index
    %59 = vector.load %arg11[%c0_35, %c0_36] : memref<96x128xf32, #tpu.memory_space<vmem>>, vector<96x128xf32>
    %cst_37 = arith.constant dense<0.000000e+00> : vector<2x128xf32>
    %60 = tpu.matmul %58, %59, %cst_37 {dimension_numbers = #tpu.dot_dimension_numbers<[1], [0], [0], [1], [0, 0, 1, 1], [], []>} : vector<2x96xf32>, vector<96x128xf32>, vector<2x128xf32> -> vector<2x128xf32>
    %c0_38 = arith.constant 0 : index
    %c0_39 = arith.constant 0 : index
    %61 = vector.load %arg12[%c0_38, %c0_39] : memref<1x128xf32, #tpu.memory_space<vmem>>, vector<1x128xf32>
    %62 = vector.broadcast %61 : vector<1x128xf32> to vector<2x128xf32>
    %63 = arith.addf %60, %62 : vector<2x128xf32>
    %c0_40 = arith.constant 0 : index
    %c0_41 = arith.constant 0 : index
    %64 = vector.load %arg17[%c0_40, %c0_41] : memref<2x128xf32, #tpu.memory_space<vmem>>, vector<2x128xf32>
    tpu.vector_store %arg17[%c0_40, %c0_41], %63 {strides = array<i32>} : memref<2x128xf32, #tpu.memory_space<vmem>>, vector<2x128xf32>,
    %c0_42 = arith.constant 0 : index
    %c0_43 = arith.constant 0 : index
    %65 = vector.load %arg7[%c0_42, %c0_43] : memref<256x128xf32, #tpu.memory_space<vmem>>, vector<256x128xf32>
    %c0_44 = arith.constant 0 : index
    %c0_45 = arith.constant 0 : index
    %66 = vector.load %arg8[%c0_44, %c0_45] : memref<1x128xf32, #tpu.memory_space<vmem>>, vector<1x128xf32>
    %cst_46 = arith.constant dense<0.000000e+00> : vector<2x128xf32>
    %67 = tpu.matmul %31, %65, %cst_46 {dimension_numbers = #tpu.dot_dimension_numbers<[1], [0], [0], [1], [0, 0, 1, 1], [], []>} : vector<2x256xf32>, vector<256x128xf32>, vector<2x128xf32> -> vector<2x128xf32>
    %68 = vector.broadcast %66 : vector<1x128xf32> to vector<2x128xf32>
    %69 = arith.addf %67, %68 : vector<2x128xf32>
    %70 = arith.mulf %69, %69 : vector<2x128xf32>
    %cst_47 = arith.constant dense<0.000000e+00> : vector<2xf32>
    %71 = vector.multi_reduction <add>, %70, %cst_47 [1] : vector<2x128xf32> to vector<2xf32>
    %72 = vector.shape_cast %71 : vector<2xf32> to vector<2x1xf32>
    %cst_48 = arith.constant 1.000000e-24 : f32
    %73 = vector.broadcast %cst_48 : f32 to vector<2x1xf32>
    %74 = arith.maximumf %72, %73 : vector<2x1xf32>
    %75 = math.rsqrt %74 : vector<2x1xf32>
    %76 = vector.broadcast %75 : vector<2x1xf32> to vector<2x128xf32>
    %77 = arith.mulf %69, %76 : vector<2x128xf32>
    %cst_49 = arith.constant dense<0.000000e+00> : vector<2x128xf32>
    %78 = tpu.matmul %51, %65, %cst_49 {dimension_numbers = #tpu.dot_dimension_numbers<[1], [0], [0], [1], [0, 0, 1, 1], [], []>} : vector<2x256xf32>, vector<256x128xf32>, vector<2x128xf32> -> vector<2x128xf32>
    %79 = vector.broadcast %66 : vector<1x128xf32> to vector<2x128xf32>
    %80 = arith.addf %78, %79 : vector<2x128xf32>
    %81 = arith.mulf %80, %80 : vector<2x128xf32>
    %cst_50 = arith.constant dense<0.000000e+00> : vector<2xf32>
    %82 = vector.multi_reduction <add>, %81, %cst_50 [1] : vector<2x128xf32> to vector<2xf32>
    %83 = vector.shape_cast %82 : vector<2xf32> to vector<2x1xf32>
    %cst_51 = arith.constant 1.000000e-24 : f32
    %84 = vector.broadcast %cst_51 : f32 to vector<2x1xf32>
    %85 = arith.maximumf %83, %84 : vector<2x1xf32>
    %86 = math.rsqrt %85 : vector<2x1xf32>
    %87 = vector.broadcast %86 : vector<2x1xf32> to vector<2x128xf32>
    %88 = arith.mulf %80, %87 : vector<2x128xf32>
    %89 = arith.mulf %77, %88 : vector<2x128xf32>
    %cst_52 = arith.constant dense<0.000000e+00> : vector<2xf32>
    %90 = vector.multi_reduction <add>, %89, %cst_52 [1] : vector<2x128xf32> to vector<2xf32>
    %91 = vector.shape_cast %90 : vector<2xf32> to vector<2x1xf32>
    %cst_53 = arith.constant 14.2857141 : f32
    %92 = vector.broadcast %cst_53 : f32 to vector<2x1xf32>
    %93 = arith.mulf %91, %92 : vector<2x1xf32>
    %94 = vector.shape_cast %93 : vector<2x1xf32> to vector<2x1xf32>
    %95 = vector.broadcast %94 : vector<2x1xf32> to vector<2x128xf32>
    %c0_54 = arith.constant 0 : index
    %c0_55 = arith.constant 0 : index
    %96 = vector.load %arg16[%c0_54, %c0_55] : memref<2x384xf32, #tpu.memory_space<vmem>>, vector<2x128xf32>
    tpu.vector_store %arg16[%c0_54, %c0_55], %95 {strides = array<i32>} : memref<2x384xf32, #tpu.memory_space<vmem>>, vector<2x128xf32>,
    %c0_i32_56 = arith.constant 0 : i32
    %97 = tpu.memref_slice %arg21[%c0_i32_56] : memref<2x!tpu.dma_semaphore, #tpu.memory_space<semaphore_mem>> -> memref<1x!tpu.dma_semaphore, #tpu.memory_space<semaphore_mem>>
    %98 = tpu.memref_squeeze %97 : memref<1x!tpu.dma_semaphore, #tpu.memory_space<semaphore_mem>> -> memref<!tpu.dma_semaphore, #tpu.memory_space<semaphore_mem>>
    tpu.wait_dma2 semaphore(%98 : memref<!tpu.dma_semaphore, #tpu.memory_space<semaphore_mem>>) src(%arg13 : memref<256x128xf32, #tpu.memory_space<any>>) dst(%arg19 : memref<256x128xf32, #tpu.memory_space<vmem>>)
    %c0_57 = arith.constant 0 : index
    %c0_58 = arith.constant 0 : index
    %99 = vector.load %arg19[%c0_57, %c0_58] : memref<256x128xf32, #tpu.memory_space<vmem>>, vector<256x128xf32>
    %cst_59 = arith.constant dense<0.000000e+00> : vector<2x256xf32>
    %100 = tpu.matmul %77, %99, %cst_59 {dimension_numbers = #tpu.dot_dimension_numbers<[1], [1], [0], [0], [0, 0, 1, 0], [], []>} : vector<2x128xf32>, vector<256x128xf32>, vector<2x256xf32> -> vector<2x256xf32>
    %cst_60 = arith.constant 14.2857141 : f32
    %101 = vector.broadcast %cst_60 : f32 to vector<2x256xf32>
    %102 = arith.mulf %100, %101 : vector<2x256xf32>
    %c0_61 = arith.constant 0 : index
    %c128 = arith.constant 128 : index
    %103 = vector.load %arg16[%c0_61, %c128] : memref<2x384xf32, #tpu.memory_space<vmem>>, vector<2x256xf32>
    tpu.vector_store %arg16[%c0_61, %c128], %102 {strides = array<i32>} : memref<2x384xf32, #tpu.memory_space<vmem>>, vector<2x256xf32>,
    %c0_62 = arith.constant 0 : index
    %c0_63 = arith.constant 0 : index
    %104 = vector.load %arg20[%c0_62, %c0_63] : memref<2x128xf32, #tpu.memory_space<vmem>>, vector<2x128xf32>
    tpu.vector_store %arg20[%c0_62, %c0_63], %88 {strides = array<i32>} : memref<2x128xf32, #tpu.memory_space<vmem>>, vector<2x128xf32>,
    %c0_64 = arith.constant 0 : index
    %105 = memref.load %arg0[%c0_64] : memref<1xi32, #tpu.memory_space<smem>>
    %c1_i32 = arith.constant 1 : i32
    %c0_i32_65 = arith.constant 0 : i32
    %106 = tpu.memref_slice %arg18[%105, %c0_i32_65] : memref<256x128xf32, #tpu.memory_space<any>> -> memref<2x128xf32, #tpu.memory_space<any>>
    %107 = tpu.memref_slice %arg21[%c1_i32] : memref<2x!tpu.dma_semaphore, #tpu.memory_space<semaphore_mem>> -> memref<1x!tpu.dma_semaphore, #tpu.memory_space<semaphore_mem>>
    %108 = tpu.memref_squeeze %107 : memref<1x!tpu.dma_semaphore, #tpu.memory_space<semaphore_mem>> -> memref<!tpu.dma_semaphore, #tpu.memory_space<semaphore_mem>>
    tpu.enqueue_dma source(%arg20 : memref<2x128xf32, #tpu.memory_space<vmem>>) target(%106 : memref<2x128xf32, #tpu.memory_space<any>>) target_semaphore(%108 : memref<!tpu.dma_semaphore, #tpu.memory_space<semaphore_mem>>)
    %c1_i32_66 = arith.constant 1 : i32
    %c0_i32_67 = arith.constant 0 : i32
    %109 = tpu.memref_slice %arg18[%105, %c0_i32_67] : memref<256x128xf32, #tpu.memory_space<any>> -> memref<2x128xf32, #tpu.memory_space<any>>
    %110 = tpu.memref_slice %arg21[%c1_i32_66] : memref<2x!tpu.dma_semaphore, #tpu.memory_space<semaphore_mem>> -> memref<1x!tpu.dma_semaphore, #tpu.memory_space<semaphore_mem>>
    %111 = tpu.memref_squeeze %110 : memref<1x!tpu.dma_semaphore, #tpu.memory_space<semaphore_mem>> -> memref<!tpu.dma_semaphore, #tpu.memory_space<semaphore_mem>>
    tpu.wait_dma2 semaphore(%111 : memref<!tpu.dma_semaphore, #tpu.memory_space<semaphore_mem>>) src(%arg20 : memref<2x128xf32, #tpu.memory_space<vmem>>) dst(%109 : memref<2x128xf32, #tpu.memory_space<any>>)
    return
  }
}

</mosaic_0001>

<bundles_post_ra>
// kernel: _forward_step.1
= control target key start
LH: loop header
LB: loop body
LE: loop exit
PB: predicated region body
PF: predicated region fallthrough
CT: control target
= control target key end

     0   :  { %s6594_s0 = inlined_call_operand.<no memory space> [shape: s32[1], index: 0, kind: input, shape index: {}]   ;;  %s6595_s1 = inlined_call_operand.vmem [shape: f32[2,768], index: 1, kind: input, shape index: {}]   ;;  %s6596_s2 = inlined_call_operand.vmem [shape: f32[2,768], index: 2, kind: input, shape index: {}]   ;;  %s6597_s3 = inlined_call_operand.hbm [shape: f32[768,256], index: 3, kind: input, shape index: {}]   ;;  %s6598_s4 = inlined_call_operand.vmem [shape: f32[1,256], index: 4, kind: input, shape index: {}]   ;;  %s6599_s5 = inlined_call_operand.hbm [shape: f32[768,256], index: 5, kind: input, shape index: {}, may-alias: {5,14}]   ;;  %s6600_s6 = inlined_call_operand.vmem [shape: f32[1,256], index: 6, kind: input, shape index: {}, may-alias: {6,15}]   ;;  %s6601_s7 = inlined_call_operand.vmem [shape: f32[256,128], index: 7, kind: input, shape index: {}]   ;;  %s6602_s8 = inlined_call_operand.vmem [shape: f32[1,128], index: 8, kind: input, shape index: {}]   ;;  %s6603_s9 = inlined_call_operand.vmem [shape: f32[256,96], index: 9, kind: input, shape index: {}]   ;;  %s6604_s10 = inlined_call_operand.vmem [shape: f32[1,96], index: 10, kind: input, shape index: {}]   ;;  %s6605_s11 = inlined_call_operand.vmem [shape: f32[96,128], index: 11, kind: input, shape index: {}]   ;;  %s6606_s12 = inlined_call_operand.vmem [shape: f32[1,128], index: 12, kind: input, shape index: {}]   ;;  %s6607_s13 = inlined_call_operand.vmem [shape: f32[256,128], index: 13, kind: input, shape index: {}, may-alias: {13,18}]   ;;  %s6608_s14 = inlined_call_operand.hbm [shape: f32[768,256], index: 14, kind: output, shape index: {0}, may-alias: {5,14}]   ;;  %s6609_s15 = inlined_call_operand.vmem [shape: f32[1,256], index: 15, kind: output, shape index: {1}, may-alias: {6,15}]   ;;  %s6610_s16 = inlined_call_operand.vmem [shape: f32[2,384], index: 16, kind: output, shape index: {2}]   ;;  %s6611_s17 = inlined_call_operand.vmem [shape: f32[2,128], index: 17, kind: output, shape index: {3}]   ;;  %s6612_s18 = inlined_call_operand.vmem [shape: f32[256,128], index: 18, kind: output, shape index: {4}, may-alias: {13,18}]  }
   0x1   :  { %6738 = sst [smem:[#allocation277_spill]] %s6594_s0 }
   0x2   :  { %6739 = sst [smem:[#allocation278_spill]] %s6595_s1 }
   0x3   :  { %6740 = sst [smem:[#allocation279_spill]] %s6596_s2 }
   0x4   :  { %25 = vsyncpa [#allocation7], 0 }
   0x5   :  { %26 = vsyncpa [#allocation10], 0 }
   0x6   :  { %27 = vsyncpa [#allocation8], 0  ;;  %s3768_s27 = smov [#allocation6]   ;;  %s3692_s0 = scalar_lea.hbm %s6597_s3, 24576 }
   0x7   :  { %s39_s28 = sshll.u32 %s3768_s27, 4  ;;  %p3693_p0 = scmp.ne.s32.totalorder %s6597_s3, %s3692_s0  ;;  %s40_s28 = int_to_ptr.vmem [resolvable:$true] %s39_s28 }
   0x8   :  { %p3696_p1 = scmp.lt.u32.totalorder %s3692_s0, %s6597_s3 }
   0xa   :  { %p3698_p2 = pnand %p3696_p1, %p3693_p0 }
   0xc   :  { %3701 = shalt.err (!%p3698_p2)
}
   0xd   :  { %s3702_s22 = scalar_lea.vmem %s40_s28, 24576  ;;  %p3707_p4 = scmp.lt.s32.totalorder %s40_s28, %s40_s28 }
   0xe   :  { %p3703_p3 = scmp.ne.s32.totalorder %s40_s28, %s3702_s22  ;;  %p3708_p5 = scmp.lt.s32.totalorder %s3702_s22, %s3702_s22 }
  0x10   :  { %p3709_p6 = por %p3708_p5, %p3707_p4 }
  0x12   :  { %p3710_p7 = pnand %p3709_p6, %p3703_p3 }
  0x14   :  { %3713 = shalt.err (!%p3710_p7)
}
  0x15   :  { %s3769_s2 = smov 256   ;;  %s3770_s23 = smov 16  }
  0x16   :  { %45 = dma.hbm_to_vmem [thread:$0]  %s6597_s3, 24576, %s40_s28, [#allocation7], %s3769_s2, %s3769_s2, %s3770_s23  }
  0x17   :  { %s3771_s26 = smov [#allocation9]   ;;  %s3714_s0 = scalar_lea.hbm %s6599_s5, 24576 }
  0x18   :  { %s53_s27 = sshll.u32 %s3771_s26, 4  ;;  %p3715_p8 = scmp.ne.s32.totalorder %s6599_s5, %s3714_s0  ;;  %s54_s27 = int_to_ptr.vmem [resolvable:$true] %s53_s27 }
  0x19   :  { %p3718_p9 = scmp.lt.u32.totalorder %s3714_s0, %s6599_s5 }
  0x1b   :  { %p3720_p10 = pnand %p3718_p9, %p3715_p8 }
  0x1d   :  { %3723 = shalt.err (!%p3720_p10)
}
  0x1e   :  { %s3724_s22 = scalar_lea.vmem %s54_s27, 24576  ;;  %p3729_p12 = scmp.lt.s32.totalorder %s54_s27, %s54_s27 }
  0x1f   :  { %p3725_p11 = scmp.ne.s32.totalorder %s54_s27, %s3724_s22  ;;  %p3730_p13 = scmp.lt.s32.totalorder %s3724_s22, %s3724_s22 }
  0x21   :  { %p3731_p0 = por %p3730_p13, %p3729_p12 }
  0x23   :  { %p3732_p1 = pnand %p3731_p0, %p3725_p11 }
  0x25   :  { %3735 = shalt.err (!%p3732_p1)
}
  0x26   :  { %59 = dma.hbm_to_vmem [thread:$0]  %s6599_s5, 24576, %s54_s27, [#allocation10], %s3769_s2, %s3769_s2, %s3770_s23  }
  0x27   :  { %3758 = dma.done.wait [#allocation7], 24576  }
  0x28   :  { %3759 = vsyncadd [#allocation7], 4294942720 }
  0x29   :  { %3760 = dma.done.wait [#allocation10], 24576  }
  0x2a   :  { %3761 = vsyncadd [#allocation10], 4294942720  ;;  %v3905_v0 = vld [vmem:[%s6607_s13] sm:$0xff]  ;;  %v3910_v1 = vld [vmem:[%s6607_s13 + $0x8] sm:$0xff] }
  0x2b   :  { %6741 = vst [vmem:[#allocation19_spill] sm:$0xff] %v3905_v0  ;;  %6742 = vst [vmem:[#allocation20_spill] sm:$0xff] %v3910_v1  ;;  %v3915_v2 = vld [vmem:[%s6607_s13 + $0x10] sm:$0xff]  ;;  %v3920_v3 = vld [vmem:[%s6607_s13 + $0x18] sm:$0xff] }
  0x2c   :  { %6743 = vst [vmem:[#allocation21_spill] sm:$0xff] %v3915_v2  ;;  %6744 = vst [vmem:[#allocation22_spill] sm:$0xff] %v3920_v3  ;;  %v3925_v4 = vld [vmem:[%s6607_s13 + $0x20] sm:$0xff]  ;;  %v3930_v5 = vld [vmem:[%s6607_s13 + $0x28] sm:$0xff] }
  0x2d   :  { %6745 = vst [vmem:[#allocation23_spill] sm:$0xff] %v3925_v4  ;;  %6746 = vst [vmem:[#allocation24_spill] sm:$0xff] %v3930_v5  ;;  %v3935_v6 = vld [vmem:[%s6607_s13 + $0x30] sm:$0xff]  ;;  %v3940_v7 = vld [vmem:[%s6607_s13 + $0x38] sm:$0xff] }
  0x2e   :  { %6747 = vst [vmem:[#allocation25_spill] sm:$0xff] %v3935_v6  ;;  %6748 = vst [vmem:[#allocation26_spill] sm:$0xff] %v3940_v7  ;;  %v3945_v8 = vld [vmem:[%s6607_s13 + $0x40] sm:$0xff]  ;;  %v3950_v9 = vld [vmem:[%s6607_s13 + $0x48] sm:$0xff] }
  0x2f   :  { %6749 = vst [vmem:[#allocation27_spill] sm:$0xff] %v3945_v8  ;;  %6750 = vst [vmem:[#allocation28_spill] sm:$0xff] %v3950_v9  ;;  %v3955_v10 = vld [vmem:[%s6607_s13 + $0x50] sm:$0xff]  ;;  %v3960_v11 = vld [vmem:[%s6607_s13 + $0x58] sm:$0xff] }
  0x30   :  { %6751 = vst [vmem:[#allocation29_spill] sm:$0xff] %v3955_v10  ;;  %6752 = vst [vmem:[#allocation30_spill] sm:$0xff] %v3960_v11  ;;  %v3965_v12 = vld [vmem:[%s6607_s13 + $0x60] sm:$0xff]  ;;  %v3970_v13 = vld [vmem:[%s6607_s13 + $0x68] sm:$0xff] }
  0x31   :  { %6753 = vst [vmem:[#allocation31_spill] sm:$0xff] %v3965_v12  ;;  %6754 = vst [vmem:[#allocation32_spill] sm:$0xff] %v3970_v13  ;;  %v3975_v14 = vld [vmem:[%s6607_s13 + $0x70] sm:$0xff]  ;;  %v3980_v15 = vld [vmem:[%s6607_s13 + $0x78] sm:$0xff] }
  0x32   :  { %6755 = vst [vmem:[#allocation33_spill] sm:$0xff] %v3975_v14  ;;  %6756 = vst [vmem:[#allocation34_spill] sm:$0xff] %v3980_v15  ;;  %v3985_v16 = vld [vmem:[%s6607_s13 + $0x80] sm:$0xff]  ;;  %v3990_v17 = vld [vmem:[%s6607_s13 + $0x88] sm:$0xff] }
  0x33   :  { %6757 = vst [vmem:[#allocation35_spill] sm:$0xff] %v3985_v16  ;;  %6758 = vst [vmem:[#allocation36_spill] sm:$0xff] %v3990_v17  ;;  %v3995_v18 = vld [vmem:[%s6607_s13 + $0x90] sm:$0xff]  ;;  %v4000_v19 = vld [vmem:[%s6607_s13 + $0x98] sm:$0xff] }
  0x34   :  { %6759 = vst [vmem:[#allocation37_spill] sm:$0xff] %v3995_v18  ;;  %6760 = vst [vmem:[#allocation38_spill] sm:$0xff] %v4000_v19  ;;  %v4005_v20 = vld [vmem:[%s6607_s13 + $0xa0] sm:$0xff]  ;;  %v4010_v21 = vld [vmem:[%s6607_s13 + $0xa8] sm:$0xff] }
  0x35   :  { %6761 = vst [vmem:[#allocation39_spill] sm:$0xff] %v4005_v20  ;;  %6762 = vst [vmem:[#allocation40_spill] sm:$0xff] %v4010_v21  ;;  %v4015_v22 = vld [vmem:[%s6607_s13 + $0xb0] sm:$0xff]  ;;  %v4020_v23 = vld [vmem:[%s6607_s13 + $0xb8] sm:$0xff] }
  0x36   :  { %6763 = vst [vmem:[#allocation41_spill] sm:$0xff] %v4015_v22  ;;  %6764 = vst [vmem:[#allocation42_spill] sm:$0xff] %v4020_v23  ;;  %v4025_v24 = vld [vmem:[%s6607_s13 + $0xc0] sm:$0xff]  ;;  %v4030_v25 = vld [vmem:[%s6607_s13 + $0xc8] sm:$0xff] }
  0x37   :  { %6765 = vst [vmem:[#allocation43_spill] sm:$0xff] %v4025_v24  ;;  %6766 = vst [vmem:[#allocation44_spill] sm:$0xff] %v4030_v25  ;;  %v4035_v26 = vld [vmem:[%s6607_s13 + $0xd0] sm:$0xff]  ;;  %v4040_v27 = vld [vmem:[%s6607_s13 + $0xd8] sm:$0xff] }
  0x38   :  { %6767 = vst [vmem:[#allocation45_spill] sm:$0xff] %v4035_v26  ;;  %6768 = vst [vmem:[#allocation46_spill] sm:$0xff] %v4040_v27  ;;  %v4045_v28 = vld [vmem:[%s6607_s13 + $0xe0] sm:$0xff]  ;;  %v4050_v29 = vld [vmem:[%s6607_s13 + $0xe8] sm:$0xff] }
  0x39   :  { %6769 = vst [vmem:[#allocation47_spill] sm:$0xff] %v4045_v28  ;;  %6770 = vst [vmem:[#allocation48_spill] sm:$0xff] %v4050_v29  ;;  %v4055_v30 = vld [vmem:[%s6607_s13 + $0xf0] sm:$0xff]  ;;  %v4060_v31 = vld [vmem:[%s6607_s13 + $0xf8] sm:$0xff] }
  0x3a   :  { %6771 = vst [vmem:[#allocation49_spill] sm:$0xff] %v4055_v30  ;;  %6772 = vst [vmem:[#allocation50_spill] sm:$0xff] %v4060_v31 }
  0x3b   :  { %183 = vsyncadd [#allocation4], 4096  ;;  %v185_v32 = vld [vmem:[#allocation6 + $0x8] sm:$0xff]  ;;  %v187_v33 = vld [vmem:[#allocation6 + $0x18] sm:$0xff]  ;;  %s6845_s0 = sld [smem:[#allocation278_spill]]  ;;  %s7105_s20 = sld [smem:[#allocation279_spill]] }
  0x3c   :  { %v4062_v34 = vpack.c.bf16 %v187_v33, %v185_v32  ;;  %v184_v35 = vld [vmem:[#allocation6] sm:$0xff]  ;;  %v186_v36 = vld [vmem:[#allocation6 + $0x10] sm:$0xff]  ;;  %v189_v38 = vld [vmem:[#allocation6 + $0x28] sm:$0xff]  ;;  %v4075_v51 = vmul.f32 0.001, %v185_v32  ;;  %vm1609_vm1 = vcmask 1041408  }
  0x3d   :  { %v4064_v37 = vpack.c.bf16 %v186_v36, %v184_v35  ;;  %v191_v39 = vld [vmem:[#allocation6 + $0x38] sm:$0xff]  ;;  %v188_v41 = vld [vmem:[#allocation6 + $0x20] sm:$0xff]  ;;  %v190_v42 = vld [vmem:[#allocation6 + $0x30] sm:$0xff]  ;;  %v4077_v52 = vmul.f32 0.001, %v187_v33  ;;  %vm3774_vm2 = vmmov 0  }
  0x3e   :  { %6773 = vst [vmem:[#allocation51_spill] sm:$0xff] %v4062_v34  ;;  %2937 = vmatprep.subr.bf16.mxu0 %v4062_v34  ;;  %v4067_v40 = vpack.c.bf16 %v191_v39, %v189_v38  ;;  %v4070_v43 = vpack.c.bf16 %v190_v42, %v188_v41  ;;  %v193_v44 = vld [vmem:[#allocation6 + $0x48] sm:$0xff]  ;;  %v195_v45 = vld [vmem:[#allocation6 + $0x58] sm:$0xff]  ;;  %v192_v47 = vld [vmem:[#allocation6 + $0x40] sm:$0xff]  ;;  %v4079_v53 = vmul.f32 0.001, %v184_v35 }
  0x3f   :  { %6774 = vst [vmem:[#allocation52_spill] sm:$0xff] %v4064_v37  ;;  %2939 = vmatpush1.bf16.msra.mxu0 %v4064_v37  ;;  %v4073_v46 = vpack.c.bf16 %v195_v45, %v193_v44  ;;  %v194_v48 = vld [vmem:[#allocation6 + $0x50] sm:$0xff]  ;;  %v197_v49 = vld [vmem:[#allocation6 + $0x68] sm:$0xff]  ;;  %v199_v50 = vld [vmem:[#allocation6 + $0x78] sm:$0xff]  ;;  %v4084_v55 = vmul.f32 0.001, %v186_v36 }
  0x40   :  { %6775 = vst [vmem:[#allocation53_spill] sm:$0xff] %v4067_v40  ;;  %6776 = vst [vmem:[#allocation54_spill] sm:$0xff] %v4070_v43  ;;  %2941 = vmatprep.subr.bf16.mxu0 %v4067_v40  ;;  %v4082_v54 = vpack.c.bf16 %v194_v48, %v192_v47  ;;  %v4086_v56 = vmul.f32 0.001, %v189_v38  ;;  %v4089_v57 = vpack.c.bf16 %v199_v50, %v197_v49  ;;  %v196_v58 = vld [vmem:[#allocation6 + $0x60] sm:$0xff]  ;;  %v198_v59 = vld [vmem:[#allocation6 + $0x70] sm:$0xff] }
  0x41   :  { %6777 = vst [vmem:[#allocation55_spill] sm:$0xff] %v4073_v46  ;;  %v4091_v60 = vmul.f32 0.001, %v191_v39  ;;  %v4093_v61 = vmul.f32 0.001, %v188_v41  ;;  %v201_v62 = vld [vmem:[#allocation6 + $0x88] sm:$0xff]  ;;  %v4108_v39 = vpack.c.bf16 %v198_v59, %v196_v58 }
  0x42   :  { %6778 = vst [vmem:[#allocation56_spill] sm:$0xff] %v4082_v54  ;;  %6779 = vst [vmem:[#allocation57_spill] sm:$0xff] %v4086_v56  ;;  %v203_v63 = vld [vmem:[#allocation6 + $0x98] sm:$0xff]  ;;  %v4095_v32 = vmul.f32 0.001, %v190_v42  ;;  %v202_v14 = vld [vmem:[#allocation6 + $0x90] sm:$0xff] }
  0x43   :  { %2943 = vmatpush1.bf16.msra.mxu0 %v4070_v43  ;;  %6780 = vst [vmem:[#allocation58_spill] sm:$0xff] %v4089_v57  ;;  %6781 = vst [vmem:[#allocation59_spill] sm:$0xff] %v4091_v60  ;;  %v4097_v33 = vmul.f32 0.001, %v193_v44  ;;  %v4099_v35 = vmul.f32 0.001, %v195_v45  ;;  %v4115_v44 = vpack.c.bf16 %v203_v63, %v201_v62 }
  0x44   :  { %2945 = vmatprep.subr.bf16.mxu0 %v4073_v46  ;;  %6782 = vst [vmem:[#allocation60_spill] sm:$0xff] %v4093_v61  ;;  %6783 = vst [vmem:[#allocation61_spill] sm:$0xff] %v4095_v32  ;;  %v4101_v36 = vmul.f32 0.001, %v192_v47  ;;  %v4103_v38 = vmul.f32 0.001, %v194_v48 }
  0x45   :  { %6784 = vst [vmem:[#allocation62_spill] sm:$0xff] %v4097_v33  ;;  %6785 = vst [vmem:[#allocation63_spill] sm:$0xff] %v4099_v35  ;;  %v4106_v15 = vmul.f32 0.001, %v197_v49  ;;  %v4110_v41 = vmul.f32 0.001, %v199_v50 }
  0x46   :  { %6786 = vst [vmem:[#allocation64_spill] sm:$0xff] %v4101_v36  ;;  %6787 = vst [vmem:[#allocation65_spill] sm:$0xff] %v4103_v38  ;;  %v4113_v42 = vmul.f32 0.001, %v196_v58  ;;  %v200_v45 = vld [vmem:[#allocation6 + $0x80] sm:$0xff]  ;;  %v205_v31 = vld [vmem:[#allocation6 + $0xa8] sm:$0xff] }
  0x47   :  { %2947 = vmatpush1.bf16.msra.mxu0 %v4082_v54  ;;  %6788 = vst [vmem:[#allocation66_spill] sm:$0xff] %v4106_v15  ;;  %6789 = vst [vmem:[#allocation67_spill] sm:$0xff] %v4108_v39  ;;  %v4117_v47 = vmul.f32 0.001, %v198_v59  ;;  %v4119_v48 = vmul.f32 0.001, %v201_v62  ;;  %v4128_v58 = vpack.c.bf16 %v202_v14, %v200_v45 }
  0x48   :  { %6790 = vst [vmem:[#allocation68_spill] sm:$0xff] %v4110_v41  ;;  %2949 = vmatprep.subr.bf16.mxu0 %v4089_v57  ;;  %6791 = vst [vmem:[#allocation69_spill] sm:$0xff] %v4113_v42  ;;  %v207_v30 = vld [vmem:[#allocation6 + $0xb8] sm:$0xff]  ;;  %v4121_v49 = vmul.f32 0.001, %v203_v63  ;;  %v204_v59 = vld [vmem:[#allocation6 + $0xa0] sm:$0xff] }
  0x49   :  { %6792 = vst [vmem:[#allocation70_spill] sm:$0xff] %v4115_v44  ;;  %6793 = vst [vmem:[#allocation71_spill] sm:$0xff] %v4117_v47  ;;  %v4123_v13 = vmul.f32 0.001, %v200_v45  ;;  %v4125_v50 = vmul.f32 0.001, %v202_v14  ;;  %v4135_v62 = vpack.c.bf16 %v207_v30, %v205_v31 }
  0x4a   :  { %6794 = vst [vmem:[#allocation72_spill] sm:$0xff] %v4119_v48  ;;  %6795 = vst [vmem:[#allocation73_spill] sm:$0xff] %v4121_v49  ;;  %v4130_v12 = vmul.f32 0.001, %v205_v31  ;;  %v4132_v29 = vmul.f32 0.001, %v207_v30 }
  0x4b   :  { %6796 = vst [vmem:[#allocation74_spill] sm:$0xff] %v4123_v13  ;;  %6797 = vst [vmem:[#allocation75_spill] sm:$0xff] %v4125_v50  ;;  %2951 = vmatpush1.bf16.msra.mxu0 %v4108_v39  ;;  %v206_v28 = vld [vmem:[#allocation6 + $0xb0] sm:$0xff]  ;;  %v4137_v63 = vmul.f32 0.001, %v204_v59  ;;  %v209_v10 = vld [vmem:[#allocation6 + $0xc8] sm:$0xff] }
  0x4c   :  { %6798 = vst [vmem:[#allocation76_spill] sm:$0xff] %v4128_v58  ;;  %6799 = vst [vmem:[#allocation77_spill] sm:$0xff] %v4130_v12  ;;  %2953 = vmatprep.subr.bf16.mxu0 %v4115_v44  ;;  %v4139_v11 = vmul.f32 0.001, %v206_v28  ;;  %v211_v27 = vld [vmem:[#allocation6 + $0xd8] sm:$0xff]  ;;  %v208_v45 = vld [vmem:[#allocation6 + $0xc0] sm:$0xff]  ;;  %v4150_v30 = vpack.c.bf16 %v206_v28, %v204_v59 }
  0x4d   :  { %6800 = vst [vmem:[#allocation78_spill] sm:$0xff] %v4132_v29  ;;  %6801 = vst [vmem:[#allocation79_spill] sm:$0xff] %v4135_v62  ;;  %v4141_v26 = vmul.f32 0.001, %v209_v10  ;;  %v4143_v14 = vmul.f32 0.001, %v211_v27  ;;  %v4157_v5 = vpack.c.bf16 %v211_v27, %v209_v10 }
  0x4e   :  { %6802 = vst [vmem:[#allocation80_spill] sm:$0xff] %v4137_v63  ;;  %6803 = vst [vmem:[#allocation81_spill] sm:$0xff] %v4139_v11  ;;  %v210_v9 = vld [vmem:[#allocation6 + $0xd0] sm:$0xff]  ;;  %v4145_v8 = vmul.f32 0.001, %v208_v45  ;;  %v213_v24 = vld [vmem:[#allocation6 + $0xe8] sm:$0xff] }
  0x4f   :  { %6804 = vst [vmem:[#allocation82_spill] sm:$0xff] %v4141_v26  ;;  %6805 = vst [vmem:[#allocation83_spill] sm:$0xff] %v4143_v14  ;;  %v4147_v25 = vmul.f32 0.001, %v210_v9  ;;  %v215_v7 = vld [vmem:[#allocation6 + $0xf8] sm:$0xff]  ;;  %2955 = vmatpush1.bf16.msra.mxu0 %v4128_v58  ;;  %v212_v23 = vld [vmem:[#allocation6 + $0xe0] sm:$0xff]  ;;  %v4172_v10 = vpack.c.bf16 %v210_v9, %v208_v45 }
  0x50   :  { %6806 = vst [vmem:[#allocation84_spill] sm:$0xff] %v4145_v8  ;;  %6808 = vst [vmem:[#allocation86_spill] sm:$0xff] %v4150_v30  ;;  %v4152_v31 = vmul.f32 0.001, %v213_v24  ;;  %v4154_v6 = vmul.f32 0.001, %v215_v7  ;;  %2957 = vmatprep.subr.bf16.mxu0 %v4135_v62  ;;  %v4179_v44 = vpack.c.bf16 %v215_v7, %v213_v24 }
  0x51   :  { %6807 = vst [vmem:[#allocation85_spill] sm:$0xff] %v4147_v25  ;;  %v214_v22 = vld [vmem:[#allocation6 + $0xf0] sm:$0xff]  ;;  %6811 = vst [vmem:[#allocation89_spill] sm:$0xff] %v4157_v5  ;;  %v4159_v4 = vmul.f32 0.001, %v212_v23  ;;  %v217_v20 = vld [vmem:[#allocation6 + $0x108] sm:$0xff] }
  0x52   :  { %6809 = vst [vmem:[#allocation87_spill] sm:$0xff] %v4152_v31  ;;  %6810 = vst [vmem:[#allocation88_spill] sm:$0xff] %v4154_v6  ;;  %v4161_v21 = vmul.f32 0.001, %v214_v22  ;;  %v219_v3 = vld [vmem:[#allocation6 + $0x118] sm:$0xff]  ;;  %v216_v59 = vld [vmem:[#allocation6 + $0x100] sm:$0xff] }
  0x53   :  { %6812 = vst [vmem:[#allocation90_spill] sm:$0xff] %v4159_v4  ;;  %v4163_v2 = vmul.f32 0.001, %v217_v20  ;;  %v4165_v28 = vmul.f32 0.001, %v219_v3  ;;  %v218_v19 = vld [vmem:[#allocation6 + $0x110] sm:$0xff]  ;;  %2959 = vmatpush1.bf16.msra.mxu0 %v4150_v30 }
  0x54   :  { %6813 = vst [vmem:[#allocation91_spill] sm:$0xff] %v4161_v21  ;;  %v4167_v18 = vmul.f32 0.001, %v216_v59  ;;  %v4169_v1 = vmul.f32 0.001, %v218_v19  ;;  %v221_v0 = vld [vmem:[#allocation6 + $0x128] sm:$0xff]  ;;  %2961 = vmatprep.subr.bf16.mxu0 %v4157_v5 }
  0x55   :  { %6814 = vst [vmem:[#allocation92_spill] sm:$0xff] %v4163_v2  ;;  %6815 = vst [vmem:[#allocation93_spill] sm:$0xff] %v4165_v28  ;;  %v223_v17 = vld [vmem:[#allocation6 + $0x138] sm:$0xff]  ;;  %v4174_v27 = vmul.f32 0.001, %v221_v0  ;;  %v220_v62 = vld [vmem:[#allocation6 + $0x120] sm:$0xff] }
  0x56   :  { %6816 = vst [vmem:[#allocation94_spill] sm:$0xff] %v4167_v18  ;;  %6817 = vst [vmem:[#allocation95_spill] sm:$0xff] %v4169_v1  ;;  %v4176_v16 = vmul.f32 0.001, %v223_v17  ;;  %v222_v58 = vld [vmem:[#allocation6 + $0x130] sm:$0xff]  ;;  %v4185_v54 = vld [vmem:[#allocation6 + $0x148] sm:$0xff] }
  0x57   :  { %6818 = vst [vmem:[#allocation96_spill] sm:$0xff] %v4172_v10  ;;  %6819 = vst [vmem:[#allocation97_spill] sm:$0xff] %v4174_v27  ;;  %v4181_v39 = vmul.f32 0.001, %v220_v62  ;;  %v4183_v57 = vmul.f32 0.001, %v222_v58  ;;  %2963 = vmatpush1.bf16.msra.mxu0 %v4172_v10 }
  0x58   :  { %6820 = vst [vmem:[#allocation98_spill] sm:$0xff] %v4176_v16  ;;  %6821 = vst [vmem:[#allocation99_spill] sm:$0xff] %v4179_v44  ;;  %v227_v46 = vld [vmem:[#allocation6 + $0x158] sm:$0xff]  ;;  %v4188_v9 = vmul.f32 0.001, %v4185_v54  ;;  %v4192_v30 = vld [vmem:[#allocation6 + $0x140] sm:$0xff]  ;;  %2965 = vmatprep.subr.bf16.mxu0 %v4179_v44 }
  0x59   :  { %6822 = vst [vmem:[#allocation100_spill] sm:$0xff] %v4181_v39  ;;  %6823 = vst [vmem:[#allocation101_spill] sm:$0xff] %v4183_v57  ;;  %v4190_v45 = vmul.f32 0.001, %v227_v46  ;;  %v4194_v43 = vld [vmem:[#allocation6 + $0x150] sm:$0xff]  ;;  %v4202_v37 = vld [vmem:[#allocation6 + $0x168] sm:$0xff] }
  0x5a   :  { %6824 = vst [vmem:[#allocation102_spill] sm:$0xff] %v4188_v9  ;;  %v3772_v40 = vmov 1983009808   ;;  %v4197_v7 = vmul.f32 0.001, %v4192_v30  ;;  %v4204_v34 = vld [vmem:[#allocation6 + $0x178] sm:$0xff]  ;;  %v4207_v9 = vpack.c.bf16 %v214_v22, %v212_v23 }
  0x5b   :  { %6825 = vst [vmem:[#allocation103_spill] sm:$0xff] %v4190_v45  ;;  %v1363_v5 = vunpack.c.l.s4 %v3772_v40  ;;  %v4200_v24 = vmul.f32 0.001, %v4194_v43  ;;  %v4210_v45 = vmul.f32 0.001, %v4202_v37  ;;  %v4215_v40 = vld [vmem:[#allocation6 + $0x160] sm:$0xff] }
  0x5c   :  { %6826 = vst [vmem:[#allocation104_spill] sm:$0xff] %v4197_v7  ;;  %6828 = vst [vmem:[#allocation106_spill] sm:$0xff] %v4207_v9  ;;  %v4213_v57 = vmul.f32 0.001, %v4204_v34  ;;  %v4217_v7 = vld [vmem:[#allocation6 + $0x170] sm:$0xff]  ;;  %v4228_v23 = vld [vmem:[#allocation6 + $0x188] sm:$0xff]  ;;  %2967 = vmatpush1.bf16.msra.mxu0 %v4207_v9 }
  0x5d   :  { %6827 = vst [vmem:[#allocation105_spill] sm:$0xff] %v4200_v24  ;;  %6829 = vst [vmem:[#allocation107_spill] sm:$0xff] %v4210_v45  ;;  %v4220_v24 = vpack.c.bf16 %v219_v3, %v217_v20  ;;  %v4223_v16 = vmul.f32 0.001, %v4215_v40  ;;  %v4226_v22 = vmul.f32 0.001, %v4217_v7  ;;  %v1364_v20 = vunpack.c.0.s8 %v1363_v5 }
  0x5e   :  { %6830 = vst [vmem:[#allocation108_spill] sm:$0xff] %v4213_v57  ;;  %v4230_v10 = vld [vmem:[#allocation6 + $0x198] sm:$0xff]  ;;  %v4233_v57 = vmul.f32 0.001, %v4228_v23  ;;  %v4238_v39 = vld [vmem:[#allocation6 + $0x180] sm:$0xff]  ;;  %v4240_v3 = vld [vmem:[#allocation6 + $0x190] sm:$0xff] }
  0x5f   :  { %6831 = vst [vmem:[#allocation109_spill] sm:$0xff] %v4220_v24  ;;  %6832 = vst [vmem:[#allocation110_spill] sm:$0xff] %v4223_v16  ;;  %v4236_v45 = vmul.f32 0.001, %v4230_v10  ;;  %v4243_v44 = vmul.f32 0.001, %v4238_v39  ;;  %2969 = vmatprep.subr.bf16.mxu0 %v4220_v24 }
  0x60   :  { %6833 = vst [vmem:[#allocation111_spill] sm:$0xff] %v4226_v22  ;;  %6834 = vst [vmem:[#allocation112_spill] sm:$0xff] %v4233_v57  ;;  %v4246_v22 = vmul.f32 0.001, %v4240_v3  ;;  %v4248_v16 = vld [vmem:[#allocation6 + $0x1a8] sm:$0xff]  ;;  %v4250_v27 = vld [vmem:[#allocation6 + $0x1b8] sm:$0xff]  ;;  %v4253_v57 = vpack.c.bf16 %v218_v19, %v216_v59 }
  0x61   :  { %6835 = vst [vmem:[#allocation113_spill] sm:$0xff] %v4236_v45  ;;  %6836 = vst [vmem:[#allocation114_spill] sm:$0xff] %v4243_v44  ;;  %v4256_v45 = vmul.f32 0.001, %v4248_v16  ;;  %v4259_v1 = vmul.f32 0.001, %v4250_v27  ;;  %v6841_v44 = vlaneseq }
  0x62   :  { %6837 = vst [vmem:[#allocation115_spill] sm:$0xff] %v4246_v22  ;;  %6838 = vst [vmem:[#allocation116_spill] sm:$0xff] %v4253_v57  ;;  %v4261_v5 = vld [vmem:[#allocation6 + $0x1a0] sm:$0xff]  ;;  %v4267_v22 = vpack.c.bf16 %v223_v17, %v221_v0  ;;  %v4269_v28 = vld [vmem:[#allocation6 + $0x1b0] sm:$0xff]  ;;  %2971 = vmatpush1.bf16.msra.mxu0 %v4253_v57  ;;  %v4323_v57 = vpack.c.bf16 %v227_v46, %v4185_v54  ;;  %vm2241_vm3 = vcmask 785408  }
  0x63   :  { %6839 = vst [vmem:[#allocation117_spill] sm:$0xff] %v4256_v45  ;;  %6840 = vst [vmem:[#allocation118_spill] sm:$0xff] %v4259_v1  ;;  %v4264_v18 = vshrl.u32 %v6841_v44, 7  ;;  %v4272_v19 = vmul.f32 0.001, %v4261_v5  ;;  %v4274_v59 = vld [vmem:[#allocation6 + $0x1c8] sm:$0xff] }
  0x64   :  { %6843 = vst [vmem:[#allocation120_spill] sm:$0xff] %v4267_v22  ;;  %v4279_v9 = vld [vmem:[%s6845_s0] sm:$0xff]  ;;  %v4282_v1 = vmul.f32 0.001, %v4269_v28  ;;  %v4287_v0 = vmul.f32 0.001, %v4274_v59  ;;  %2973 = vmatprep.subr.bf16.mxu0 %v4267_v22 }
  0x65   :  { %6842 = vst [vmem:[#allocation119_spill] sm:$0xff] %v4264_v18  ;;  %6844 = vst [vmem:[#allocation121_spill] sm:$0xff] %v4272_v19  ;;  %v4284_v44 = vld [vmem:[#allocation6 + $0x1d8] sm:$0xff]  ;;  %v4289_v17 = vld [vmem:[#allocation6 + $0x1c0] sm:$0xff]  ;;  %v4292_v24 = vsub.s32 %v1364_v20, %v4264_v18 }
  0x66   :  { %6846 = vst [vmem:[#allocation122_spill] sm:$0xff] %v4282_v1  ;;  %6847 = vst [vmem:[#allocation123_spill] sm:$0xff] %v4287_v0  ;;  %v4295_v19 = vmul.f32 0.001, %v4284_v44  ;;  %v4297_v45 = vld [vmem:[#allocation6 + $0x1d0] sm:$0xff]  ;;  %v4302_v21 = vld [vmem:[#allocation6 + $0x1e8] sm:$0xff]  ;;  %v4305_v1 = vpack.c.bf16 %v222_v58, %v220_v62 }
  0x67   :  { %6848 = vst [vmem:[#allocation124_spill] sm:$0xff] %v4292_v24  ;;  %v4300_v2 = vmul.f32 0.001, %v4289_v17  ;;  %v4308_v0 = vmul.f32 0.001, %v4297_v45  ;;  %v4310_v4 = vld [vmem:[#allocation6 + $0x1f8] sm:$0xff] }
  0x68   :  { %6849 = vst [vmem:[#allocation125_spill] sm:$0xff] %v4295_v19  ;;  %6851 = vst [vmem:[#allocation127_spill] sm:$0xff] %v4305_v1  ;;  %v4313_v20 = vmul.f32 0.001, %v4302_v21  ;;  %v4315_v18 = vld [vmem:[#allocation6 + $0x1e0] sm:$0xff]  ;;  %v4319_v19 = vrot.slane %v4279_v9, %v4292_v24  ;;  %v4328_v62 = vld [vmem:[#allocation6 + $0x1f0] sm:$0xff]  ;;  %2975 = vmatpush1.bf16.msra.mxu0 %v4305_v1  ;;  %v4372_v1 = vpack.c.bf16 %v4204_v34, %v4202_v37 }
  0x69   :  { %6850 = vst [vmem:[#allocation126_spill] sm:$0xff] %v4300_v2  ;;  %6852 = vst [vmem:[#allocation128_spill] sm:$0xff] %v4308_v0  ;;  %v4326_v58 = vmul.f32 0.001, %v4310_v4  ;;  %v4331_v0 = vmul.f32 0.001, %v4315_v18  ;;  %2977 = vmatprep.subr.bf16.mxu0 %v4323_v57 }
  0x6a   :  { %6853 = vst [vmem:[#allocation129_spill] sm:$0xff] %v4313_v20  ;;  %6854 = vst [vmem:[#allocation130_spill] sm:$0xff] %v4323_v57  ;;  %v4334_v20 = vmul.f32 0.001, %v4328_v62  ;;  %v1376_v2 = vcombine.high %v4319_v19, %v4319_v19  ;;  %v4338_v6 = vld [vmem:[#allocation6 + $0x208] sm:$0xff]  ;;  %v4340_v22 = vld [vmem:[#allocation6 + $0x218] sm:$0xff] }
  0x6b   :  { %6855 = vst [vmem:[#allocation131_spill] sm:$0xff] %v4326_v58  ;;  %6856 = vst [vmem:[#allocation132_spill] sm:$0xff] %v4331_v0  ;;  %v4342_v46 = vld [vmem:[#allocation6 + $0x200] sm:$0xff]  ;;  %v4345_v54 = vmul.f32 0.001, %v4338_v6  ;;  %v4350_v31 = vld [vmem:[#allocation6 + $0x210] sm:$0xff] }
  0x6c   :  { %6857 = vst [vmem:[#allocation133_spill] sm:$0xff] %v4334_v20  ;;  %v4348_v58 = vmul.f32 0.001, %v4340_v22  ;;  %v4352_v0 = vld [vmem:[#allocation6 + $0x228] sm:$0xff]  ;;  %v4357_v20 = vpack.c.bf16 %v4194_v43, %v4192_v30  ;;  %1456 = vmatprep.mubr.f32.mxu0 %v1376_v2  ;;  %v4360_v25 = vmul.f32 0.001, %v4342_v46 }
  0x6d   :  { %6858 = vst [vmem:[#allocation134_spill] sm:$0xff] %v4345_v54  ;;  %v4363_v8 = vmul.f32 0.001, %v4350_v31  ;;  %v4365_v54 = vld [vmem:[#allocation6 + $0x238] sm:$0xff]  ;;  %6863 = vst [vmem:[#allocation139_spill] sm:$0xff] %v4372_v1  ;;  %v4380_v30 = vld [vmem:[#allocation6 + $0x230] sm:$0xff] }
  0x6e   :  { %6859 = vst [vmem:[#allocation135_spill] sm:$0xff] %v4348_v58  ;;  %6860 = vst [vmem:[#allocation136_spill] sm:$0xff] %v4357_v20  ;;  %v4367_v58 = vld [vmem:[#allocation6 + $0x220] sm:$0xff]  ;;  %v4375_v43 = vmul.f32 0.001, %v4352_v0  ;;  %v4390_v57 = vld [vmem:[#allocation6 + $0x258] sm:$0xff]  ;;  %2979 = vmatpush1.bf16.msra.mxu0 %v4357_v20 }
  0x6f   :  { %6861 = vst [vmem:[#allocation137_spill] sm:$0xff] %v4360_v25  ;;  %6862 = vst [vmem:[#allocation138_spill] sm:$0xff] %v4363_v8  ;;  %v4378_v2 = vmul.f32 0.001, %v4365_v54  ;;  %v4382_v25 = vld [vmem:[#allocation6 + $0x248] sm:$0xff]  ;;  %v4392_v34 = vld [vmem:[#allocation6 + $0x240] sm:$0xff]  ;;  %2981 = vmatprep.subr.bf16.mxu0 %v4372_v1 }
  0x70   :  { %6864 = vst [vmem:[#allocation140_spill] sm:$0xff] %v4375_v43  ;;  %v4385_v8 = vmul.f32 0.001, %v4367_v58  ;;  %v4388_v14 = vmul.f32 0.001, %v4380_v30  ;;  %v4402_v26 = vld [vmem:[#allocation6 + $0x268] sm:$0xff] }
  0x71   :  { %6865 = vst [vmem:[#allocation141_spill] sm:$0xff] %v4378_v2  ;;  %v4395_v37 = vmul.f32 0.001, %v4382_v25  ;;  %v4398_v43 = vmul.f32 0.001, %v4390_v57  ;;  %v4400_v2 = vld [vmem:[#allocation6 + $0x250] sm:$0xff] }
  0x72   :  { %6866 = vst [vmem:[#allocation142_spill] sm:$0xff] %v4385_v8  ;;  %6867 = vst [vmem:[#allocation143_spill] sm:$0xff] %v4388_v14  ;;  %v4407_v8 = vpack.c.bf16 %v4217_v7, %v4215_v40  ;;  %v4410_v14 = vmul.f32 0.001, %v4392_v34  ;;  %v4413_v11 = vmul.f32 0.001, %v4400_v2 }
  0x73   :  { %6868 = vst [vmem:[#allocation144_spill] sm:$0xff] %v4395_v37  ;;  %6869 = vst [vmem:[#allocation145_spill] sm:$0xff] %v4398_v43  ;;  %v4415_v37 = vld [vmem:[#allocation6 + $0x278] sm:$0xff]  ;;  %v4417_v63 = vld [vmem:[#allocation6 + $0x260] sm:$0xff]  ;;  %v4422_v43 = vpack.c.bf16 %v4230_v10, %v4228_v23  ;;  %v4425_v20 = vmul.f32 0.001, %v4402_v26 }
  0x74   :  { %6870 = vst [vmem:[#allocation146_spill] sm:$0xff] %v4407_v8  ;;  %6871 = vst [vmem:[#allocation147_spill] sm:$0xff] %v4410_v14  ;;  %v4428_v7 = vmul.f32 0.001, %v4415_v37  ;;  %v4430_v40 = vld [vmem:[#allocation6 + $0x270] sm:$0xff]  ;;  %v4432_v14 = vld [vmem:[#allocation6 + $0x288] sm:$0xff]  ;;  %2983 = vmatpush1.bf16.msra.mxu0 %v4407_v8 }
  0x75   :  { %6872 = vst [vmem:[#allocation148_spill] sm:$0xff] %v4413_v11  ;;  %6873 = vst [vmem:[#allocation149_spill] sm:$0xff] %v4422_v43  ;;  %v4435_v11 = vmul.f32 0.001, %v4417_v63  ;;  %v4438_v29 = vmul.f32 0.001, %v4430_v40  ;;  %2985 = vmatprep.subr.bf16.mxu0 %v4422_v43 }
  0x76   :  { %6874 = vst [vmem:[#allocation150_spill] sm:$0xff] %v4425_v20  ;;  %6875 = vst [vmem:[#allocation151_spill] sm:$0xff] %v4428_v7  ;;  %v4440_v1 = vld [vmem:[#allocation6 + $0x298] sm:$0xff]  ;;  %v4442_v10 = vld [vmem:[#allocation6 + $0x280] sm:$0xff]  ;;  %v4445_v23 = vmul.f32 0.001, %v4432_v14 }
  0x77   :  { %6876 = vst [vmem:[#allocation152_spill] sm:$0xff] %v4435_v11  ;;  %6877 = vst [vmem:[#allocation153_spill] sm:$0xff] %v4438_v29  ;;  %v4448_v20 = vmul.f32 0.001, %v4440_v1  ;;  %v4450_v7 = vld [vmem:[#allocation6 + $0x290] sm:$0xff]  ;;  %v4452_v12 = vld [vmem:[#allocation6 + $0x2a8] sm:$0xff]  ;;  %v4457_v11 = vpack.c.bf16 %v4240_v3, %v4238_v39 }
  0x78   :  { %6878 = vst [vmem:[#allocation154_spill] sm:$0xff] %v4445_v23  ;;  %v4460_v29 = vmul.f32 0.001, %v4442_v10  ;;  %v4463_v50 = vmul.f32 0.001, %v4450_v7  ;;  %v4465_v23 = vld [vmem:[#allocation6 + $0x2b8] sm:$0xff] }
  0x79   :  { %6879 = vst [vmem:[#allocation155_spill] sm:$0xff] %v4448_v20  ;;  %6880 = vst [vmem:[#allocation156_spill] sm:$0xff] %v4457_v11  ;;  %v4467_v13 = vld [vmem:[#allocation6 + $0x2a0] sm:$0xff]  ;;  %v4472_v20 = vpack.c.bf16 %v4250_v27, %v4248_v16  ;;  %v4475_v8 = vmul.f32 0.001, %v4452_v12  ;;  %v4480_v3 = vld [vmem:[#allocation6 + $0x2b0] sm:$0xff]  ;;  %2987 = vmatpush1.bf16.msra.mxu0 %v4457_v11 }
  0x7a   :  { %6881 = vst [vmem:[#allocation157_spill] sm:$0xff] %v4460_v29  ;;  %6882 = vst [vmem:[#allocation158_spill] sm:$0xff] %v4463_v50  ;;  %v4478_v39 = vmul.f32 0.001, %v4465_v23  ;;  %v4482_v29 = vld [vmem:[#allocation6 + $0x2c8] sm:$0xff]  ;;  %v4490_v43 = vld [vmem:[#allocation6 + $0x2d8] sm:$0xff] }
  0x7b   :  { %6883 = vst [vmem:[#allocation159_spill] sm:$0xff] %v4472_v20  ;;  %6884 = vst [vmem:[#allocation160_spill] sm:$0xff] %v4475_v8  ;;  %v4485_v50 = vmul.f32 0.001, %v4467_v13  ;;  %v4488_v49 = vmul.f32 0.001, %v4480_v3  ;;  %2989 = vmatprep.subr.bf16.mxu0 %v4472_v20 }
  0x7c   :  { %6885 = vst [vmem:[#allocation161_spill] sm:$0xff] %v4478_v39  ;;  %v4492_v16 = vld [vmem:[#allocation6 + $0x2c0] sm:$0xff]  ;;  %v4495_v27 = vmul.f32 0.001, %v4482_v29  ;;  %v4498_v8 = vmul.f32 0.001, %v4490_v43 }
  0x7d   :  { %6886 = vst [vmem:[#allocation162_spill] sm:$0xff] %v4485_v50  ;;  %6887 = vst [vmem:[#allocation163_spill] sm:$0xff] %v4488_v49  ;;  %v4500_v39 = vld [vmem:[#allocation6 + $0x2d0] sm:$0xff]  ;;  %v4502_v48 = vld [vmem:[#allocation6 + $0x2e8] sm:$0xff]  ;;  %v4507_v50 = vpack.c.bf16 %v4269_v28, %v4261_v5  ;;  %v4510_v49 = vmul.f32 0.001, %v4492_v16 }
  0x7e   :  { %6888 = vst [vmem:[#allocation164_spill] sm:$0xff] %v4495_v27  ;;  %6889 = vst [vmem:[#allocation165_spill] sm:$0xff] %v4498_v8  ;;  %v4513_v47 = vmul.f32 0.001, %v4500_v39  ;;  %v4515_v27 = vld [vmem:[#allocation6 + $0x2f8] sm:$0xff]  ;;  %v4517_v42 = vld [vmem:[#allocation6 + $0x2e0] sm:$0xff]  ;;  %v4522_v8 = vpack.c.bf16 %v4284_v44, %v4274_v59 }
  0x7f   :  { %6890 = vst [vmem:[#allocation166_spill] sm:$0xff] %v4507_v50  ;;  %6891 = vst [vmem:[#allocation167_spill] sm:$0xff] %v4510_v49  ;;  %v4525_v11 = vmul.f32 0.001, %v4502_v48  ;;  %v4528_v28 = vmul.f32 0.001, %v4515_v27  ;;  %2991 = vmatpush1.bf16.msra.mxu0 %v4507_v50  ;;  %v4574_v50 = vpack.c.bf16 %v4310_v4, %v4302_v21 }
  0x80   :  { %6892 = vst [vmem:[#allocation168_spill] sm:$0xff] %v4513_v47  ;;  %6893 = vst [vmem:[#allocation169_spill] sm:$0xff] %v4522_v8  ;;  %v4530_v5 = vld [vmem:[#allocation6 + $0x2f0] sm:$0xff]  ;;  %v4532_v49 = vld [vmem:[#allocation6 + $0x308] sm:$0xff]  ;;  %v4535_v47 = vmul.f32 0.001, %v4517_v42  ;;  %2993 = vmatprep.subr.bf16.mxu0 %v4522_v8 }
  0x81   :  { %6894 = vst [vmem:[#allocation170_spill] sm:$0xff] %v4525_v11  ;;  %6895 = vst [vmem:[#allocation171_spill] sm:$0xff] %v4528_v28  ;;  %v4538_v41 = vmul.f32 0.001, %v4530_v5  ;;  %v4540_v20 = vld [vmem:[#allocation6 + $0x318] sm:$0xff]  ;;  %v4542_v44 = vld [vmem:[#allocation6 + $0x300] sm:$0xff] }
  0x82   :  { %6896 = vst [vmem:[#allocation172_spill] sm:$0xff] %v4535_v47  ;;  %v4545_v59 = vmul.f32 0.001, %v4532_v49  ;;  %v4548_v11 = vmul.f32 0.001, %v4540_v20  ;;  %v4550_v28 = vld [vmem:[#allocation6 + $0x310] sm:$0xff]  ;;  %v4557_v47 = vpack.c.bf16 %v4297_v45, %v4289_v17 }
  0x83   :  { %6897 = vst [vmem:[#allocation173_spill] sm:$0xff] %v4538_v41  ;;  %v4552_v15 = vld [vmem:[#allocation6 + $0x328] sm:$0xff]  ;;  %v1361_v41 = vcombine.high %v4279_v9, %v4279_v9  ;;  %v4562_v38 = vmul.f32 0.001, %v4542_v44  ;;  %v4569_v36 = vld [vmem:[#allocation6 + $0x320] sm:$0xff]  ;;  %6903 = vst [vmem:[#allocation179_spill] sm:$0xff] %v4574_v50 }
  0x84   :  { %6898 = vst [vmem:[#allocation174_spill] sm:$0xff] %v4545_v59  ;;  %6899 = vst [vmem:[#allocation175_spill] sm:$0xff] %v4548_v11  ;;  %v4565_v59 = vmul.f32 0.001, %v4550_v28  ;;  %v4567_v11 = vld [vmem:[#allocation6 + $0x338] sm:$0xff]  ;;  %v4582_v17 = vld [vmem:[#allocation6 + $0x330] sm:$0xff]  ;;  %2995 = vmatpush1.bf16.msra.mxu0 %v4557_v47 }
  0x85   :  { %6900 = vst [vmem:[#allocation176_spill] sm:$0xff] %v4557_v47  ;;  %6901 = vst [vmem:[#allocation177_spill] sm:$0xff] %v4562_v38  ;;  %v4577_v45 = vmul.f32 0.001, %v4552_v15  ;;  %v4580_v9 = vmul.f32 0.001, %v4567_v11  ;;  %2997 = vmatprep.subr.bf16.mxu0 %v4574_v50  ;;  %v4627_v47 = vpack.c.bf16 %v4340_v22, %v4338_v6 }
  0x86   :  { %6902 = vst [vmem:[#allocation178_spill] sm:$0xff] %v4565_v59  ;;  %v4584_v38 = vld [vmem:[#allocation6 + $0x348] sm:$0xff]  ;;  %v4587_v59 = vmul.f32 0.001, %v4569_v36  ;;  %v4590_v35 = vmul.f32 0.001, %v4582_v17 }
  0x87   :  { %6904 = vst [vmem:[#allocation180_spill] sm:$0xff] %v4577_v45  ;;  %6905 = vst [vmem:[#allocation181_spill] sm:$0xff] %v4580_v9  ;;  %v4592_v8 = vld [vmem:[#allocation6 + $0x358] sm:$0xff]  ;;  %v4594_v4 = vld [vmem:[#allocation6 + $0x340] sm:$0xff]  ;;  %v4597_v21 = vmul.f32 0.001, %v4584_v38 }
  0x88   :  { %6906 = vst [vmem:[#allocation182_spill] sm:$0xff] %v4587_v59  ;;  %6907 = vst [vmem:[#allocation183_spill] sm:$0xff] %v4590_v35  ;;  %v4600_v45 = vmul.f32 0.001, %v4592_v8  ;;  %v4602_v9 = vld [vmem:[#allocation6 + $0x350] sm:$0xff]  ;;  %v4604_v33 = vld [vmem:[#allocation6 + $0x368] sm:$0xff]  ;;  %v4609_v59 = vpack.c.bf16 %v4328_v62, %v4315_v18 }
  0x89   :  { %6908 = vst [vmem:[#allocation184_spill] sm:$0xff] %v4597_v21  ;;  %v4612_v35 = vmul.f32 0.001, %v4594_v4  ;;  %v4615_v32 = vmul.f32 0.001, %v4602_v9  ;;  %v4617_v21 = vld [vmem:[#allocation6 + $0x378] sm:$0xff] }
  0x8a   :  { %6909 = vst [vmem:[#allocation185_spill] sm:$0xff] %v4600_v45  ;;  %6910 = vst [vmem:[#allocation186_spill] sm:$0xff] %v4609_v59  ;;  %v4619_v61 = vld [vmem:[#allocation6 + $0x360] sm:$0xff]  ;;  %v4622_v45 = vrot.slane %v1361_v41, %v4292_v24  ;;  %v4630_v18 = vmul.f32 0.001, %v4604_v33  ;;  %v4645_v50 = vld [vmem:[#allocation6 + $0x398] sm:$0xff]  ;;  %2999 = vmatpush1.bf16.msra.mxu0 %v4609_v59  ;;  %v4679_v59 = vpack.c.bf16 %v4365_v54, %v4352_v0 }
  0x8b   :  { %6911 = vst [vmem:[#allocation187_spill] sm:$0xff] %v4612_v35  ;;  %6912 = vst [vmem:[#allocation188_spill] sm:$0xff] %v4615_v32  ;;  %v4633_v62 = vmul.f32 0.001, %v4617_v21  ;;  %v4635_v32 = vld [vmem:[#allocation6 + $0x370] sm:$0xff]  ;;  %v4637_v35 = vld [vmem:[#allocation6 + $0x388] sm:$0xff]  ;;  %3001 = vmatprep.subr.bf16.mxu0 %v4627_v47 }
  0x8c   :  { %6913 = vst [vmem:[#allocation189_spill] sm:$0xff] %v4622_v45  ;;  %6914 = vst [vmem:[#allocation190_spill] sm:$0xff] %v4627_v47  ;;  %v4640_v60 = vmul.f32 0.001, %v4619_v61  ;;  %v4643_v41 = vmul.f32 0.001, %v4635_v32 }
  0x8d   :  { %6915 = vst [vmem:[#allocation191_spill] sm:$0xff] %v4630_v18  ;;  %6916 = vst [vmem:[#allocation192_spill] sm:$0xff] %v4633_v62  ;;  %v4647_v6 = vld [vmem:[#allocation6 + $0x380] sm:$0xff]  ;;  %v4650_v22 = vmul.f32 0.001, %v4637_v35  ;;  %v4655_v62 = vld [vmem:[#allocation6 + $0x390] sm:$0xff]  ;;  %1457 = vmatmul.mubr.f32.vlgmr.msra.gmra.mrb[0].mxu0 %v4319_v19 }
  0x8e   :  { %6917 = vst [vmem:[#allocation193_spill] sm:$0xff] %v4640_v60  ;;  %6918 = vst [vmem:[#allocation194_spill] sm:$0xff] %v4643_v41  ;;  %v4653_v18 = vmul.f32 0.001, %v4645_v50  ;;  %v4657_v24 = vld [vmem:[#allocation6 + $0x3a8] sm:$0xff]  ;;  %v4662_v60 = vpack.c.bf16 %v4350_v31, %v4342_v46  ;;  %v4697_v47 = vld [vmem:[#allocation6 + $0x3d8] sm:$0xff] }
  0x8f   :  { %6919 = vst [vmem:[#allocation195_spill] sm:$0xff] %v4645_v50  ;;  %6920 = vst [vmem:[#allocation196_spill] sm:$0xff] %v4650_v22  ;;  %v4665_v41 = vmul.f32 0.001, %v4647_v6  ;;  %v4668_v56 = vmul.f32 0.001, %v4655_v62 }
  0x90   :  { %6921 = vst [vmem:[#allocation197_spill] sm:$0xff] %v4653_v18  ;;  %6922 = vst [vmem:[#allocation198_spill] sm:$0xff] %v4655_v62  ;;  %v4670_v22 = vld [vmem:[#allocation6 + $0x3b8] sm:$0xff]  ;;  %v4672_v50 = vld [vmem:[#allocation6 + $0x3a0] sm:$0xff]  ;;  %v1377_v18 = vcombine.high %v4622_v45, %v4622_v45  ;;  %v4682_v31 = vmul.f32 0.001, %v4657_v24  ;;  %3003 = vmatpush1.bf16.msra.mxu0 %v4662_v60 }
  0x91   :  { %6923 = vst [vmem:[#allocation199_spill] sm:$0xff] %v4662_v60  ;;  %6924 = vst [vmem:[#allocation200_spill] sm:$0xff] %v4665_v41  ;;  %v4685_v46 = vmul.f32 0.001, %v4670_v22  ;;  %v4689_v41 = vld [vmem:[#allocation6 + $0x3c8] sm:$0xff]  ;;  %v4699_v0 = vld [vmem:[#allocation6 + $0x3c0] sm:$0xff]  ;;  %3005 = vmatprep.subr.bf16.mxu0 %v4679_v59  ;;  %v4730_v60 = vpack.c.bf16 %v4390_v57, %v4382_v25 }
  0x92   :  { %6925 = vst [vmem:[#allocation201_spill] sm:$0xff] %v4668_v56  ;;  %6926 = vst [vmem:[#allocation202_spill] sm:$0xff] %v4670_v22  ;;  %v4687_v56 = vld [vmem:[#allocation6 + $0x3b0] sm:$0xff]  ;;  %v4692_v62 = vmul.f32 0.001, %v4672_v50  ;;  %v4710_v22 = vld [vmem:[#allocation6 + $0x3e8] sm:$0xff]  ;;  %1527 = vmatprep.mubr.f32.mxu0 %v1377_v18  ;;  %v4748_v18 = vpack.c.bf16 %v4415_v37, %v4402_v26 }
  0x93   :  { %6927 = vst [vmem:[#allocation203_spill] sm:$0xff] %v4679_v59  ;;  %6928 = vst [vmem:[#allocation204_spill] sm:$0xff] %v4682_v31  ;;  %v4695_v45 = vmul.f32 0.001, %v4687_v56  ;;  %v4703_v54 = vmul.f32 0.001, %v4689_v41 }
  0x94   :  { %6929 = vst [vmem:[#allocation205_spill] sm:$0xff] %v4685_v46  ;;  %6930 = vst [vmem:[#allocation206_spill] sm:$0xff] %v4692_v62  ;;  %v4706_v46 = vmul.f32 0.001, %v4697_v47  ;;  %v4708_v31 = vld [vmem:[#allocation6 + $0x3d0] sm:$0xff]  ;;  %v4756_v59 = vld [vmem:[#allocation6 + $0x418] sm:$0xff] }
  0x95   :  { %6931 = vst [vmem:[#allocation207_spill] sm:$0xff] %v4695_v45  ;;  %6932 = vst [vmem:[#allocation208_spill] sm:$0xff] %v4697_v47  ;;  %v4715_v45 = vpack.c.bf16 %v4380_v30, %v4367_v58  ;;  %v4718_v62 = vmul.f32 0.001, %v4699_v0  ;;  %v4721_v19 = vmul.f32 0.001, %v4708_v31 }
  0x96   :  { %6933 = vst [vmem:[#allocation209_spill] sm:$0xff] %v4703_v54  ;;  %6934 = vst [vmem:[#allocation210_spill] sm:$0xff] %v4706_v46  ;;  %v4723_v54 = vld [vmem:[#allocation6 + $0x3f8] sm:$0xff]  ;;  %v4725_v47 = vld [vmem:[#allocation6 + $0x3e0] sm:$0xff]  ;;  %v4733_v58 = vmul.f32 0.001, %v4710_v22  ;;  %v4744_v46 = vpack.c.bf16 %v4400_v2, %v4392_v34  ;;  %v4766_v2 = vpack.c.bf16 %v4440_v1, %v4432_v14  ;;  %v4785_v1 = vpack.c.bf16 %v4465_v23, %v4452_v12 }
  0x97   :  { %6935 = vst [vmem:[#allocation211_spill] sm:$0xff] %v4715_v45  ;;  %6936 = vst [vmem:[#allocation212_spill] sm:$0xff] %v4718_v62  ;;  %v4736_v30 = vmul.f32 0.001, %v4723_v54  ;;  %v4738_v62 = vld [vmem:[#allocation6 + $0x3f0] sm:$0xff]  ;;  %3007 = vmatpush1.bf16.msra.mxu0 %v4715_v45  ;;  %v4804_v12 = vpack.c.bf16 %v4490_v43, %v4482_v29 }
  0x98   :  { %6937 = vst [vmem:[#allocation213_spill] sm:$0xff] %v4721_v19  ;;  %6938 = vst [vmem:[#allocation214_spill] sm:$0xff] %v4730_v60  ;;  %v4740_v19 = vld [vmem:[#allocation6 + $0x408] sm:$0xff]  ;;  %v4751_v25 = vmul.f32 0.001, %v4725_v47  ;;  %v4774_v37 = vld [vmem:[#allocation6 + $0x410] sm:$0xff]  ;;  %3009 = vmatprep.subr.bf16.mxu0 %v4730_v60  ;;  %v4818_v60 = vpack.c.bf16 %v4500_v39, %v4492_v16  ;;  %v4840_v39 = vpack.c.bf16 %v4540_v20, %v4532_v49 }
  0x99   :  { %6939 = vst [vmem:[#allocation215_spill] sm:$0xff] %v4733_v58  ;;  %6940 = vst [vmem:[#allocation216_spill] sm:$0xff] %v4736_v30  ;;  %v4754_v57 = vmul.f32 0.001, %v4738_v62  ;;  %v4758_v30 = vld [vmem:[#allocation6 + $0x400] sm:$0xff]  ;;  %v4762_v58 = vpack.c.bf16 %v4430_v40, %v4417_v63  ;;  %v4781_v63 = vpack.c.bf16 %v4450_v7, %v4442_v10  ;;  %v4800_v7 = vpack.c.bf16 %v4480_v3, %v4467_v13  ;;  %v4812_v45 = vld [vmem:[#allocation6 + $0x430] sm:$0xff] }
  0x9a   :  { %6941 = vst [vmem:[#allocation217_spill] sm:$0xff] %v4744_v46  ;;  %6942 = vst [vmem:[#allocation218_spill] sm:$0xff] %v4748_v18  ;;  %v4769_v26 = vmul.f32 0.001, %v4740_v19  ;;  %v4772_v34 = vmul.f32 0.001, %v4756_v59  ;;  %v4822_v13 = vpack.c.bf16 %v4515_v27, %v4502_v48  ;;  %v4859_v49 = vpack.c.bf16 %v4567_v11, %v4552_v15 }
  0x9b   :  { %6943 = vst [vmem:[#allocation219_spill] sm:$0xff] %v4751_v25  ;;  %6944 = vst [vmem:[#allocation220_spill] sm:$0xff] %v4754_v57  ;;  %v4776_v57 = vld [vmem:[#allocation6 + $0x428] sm:$0xff]  ;;  %v4788_v14 = vmul.f32 0.001, %v4758_v30  ;;  %v4830_v3 = vld [vmem:[#allocation6 + $0x458] sm:$0xff]  ;;  %3011 = vmatpush1.bf16.msra.mxu0 %v4744_v46  ;;  %v4872_v46 = vpack.c.bf16 %v4582_v17, %v4569_v36 }
  0x9c   :  { %6945 = vst [vmem:[#allocation221_spill] sm:$0xff] %v4762_v58  ;;  %6946 = vst [vmem:[#allocation222_spill] sm:$0xff] %v4766_v2  ;;  %v4791_v40 = vmul.f32 0.001, %v4774_v37  ;;  %v4807_v10 = vmul.f32 0.001, %v4776_v57  ;;  %3013 = vmatprep.subr.bf16.mxu0 %v4748_v18 }
  0x9d   :  { %6947 = vst [vmem:[#allocation223_spill] sm:$0xff] %v4769_v26  ;;  %6948 = vst [vmem:[#allocation224_spill] sm:$0xff] %v4772_v34  ;;  %v4793_v34 = vld [vmem:[#allocation6 + $0x438] sm:$0xff]  ;;  %v4795_v26 = vld [vmem:[#allocation6 + $0x420] sm:$0xff]  ;;  %v4828_v43 = vmul.f32 0.001, %v4812_v45 }
  0x9e   :  { %6949 = vst [vmem:[#allocation225_spill] sm:$0xff] %v4781_v63  ;;  %6950 = vst [vmem:[#allocation226_spill] sm:$0xff] %v4785_v1  ;;  %v4810_v23 = vmul.f32 0.001, %v4793_v34  ;;  %v4825_v29 = vmul.f32 0.001, %v4795_v26 }
  0x9f   :  { %6951 = vst [vmem:[#allocation227_spill] sm:$0xff] %v4788_v14  ;;  %6952 = vst [vmem:[#allocation228_spill] sm:$0xff] %v4791_v40  ;;  %v4814_v40 = vld [vmem:[#allocation6 + $0x448] sm:$0xff]  ;;  %v4846_v16 = vmul.f32 0.001, %v4830_v3  ;;  %v4848_v27 = vld [vmem:[#allocation6 + $0x450] sm:$0xff]  ;;  %3015 = vmatpush1.bf16.msra.mxu0 %v4762_v58 }
  0xa0   :  { %6953 = vst [vmem:[#allocation229_spill] sm:$0xff] %v4800_v7  ;;  %6954 = vst [vmem:[#allocation230_spill] sm:$0xff] %v4804_v12  ;;  %v4843_v48 = vmul.f32 0.001, %v4814_v40  ;;  %v4888_v18 = vld [vmem:[#allocation6 + $0x460] sm:$0xff]  ;;  %v379_v14 = vld [vmem:[#allocation9 + $0x10] sm:$0xff]  ;;  %3017 = vmatprep.subr.bf16.mxu0 %v4766_v2 }
  0xa1   :  { %6955 = vst [vmem:[#allocation231_spill] sm:$0xff] %v4807_v10  ;;  %6956 = vst [vmem:[#allocation232_spill] sm:$0xff] %v4810_v23  ;;  %v4832_v23 = vld [vmem:[#allocation6 + $0x440] sm:$0xff]  ;;  %v4836_v10 = vpack.c.bf16 %v4530_v5, %v4517_v42  ;;  %v4855_v42 = vpack.c.bf16 %v4550_v28, %v4542_v44  ;;  %v4865_v5 = vmul.f32 0.001, %v4848_v27  ;;  %v4876_v28 = vpack.c.bf16 %v4592_v8, %v4584_v38  ;;  %v380_v44 = vld [vmem:[#allocation9 + $0x18] sm:$0xff] }
  0xa2   :  { %6957 = vst [vmem:[#allocation233_spill] sm:$0xff] %v4818_v60  ;;  %6958 = vst [vmem:[#allocation234_spill] sm:$0xff] %v4822_v13  ;;  %v4862_v20 = vmul.f32 0.001, %v4832_v23  ;;  %v576_v17 = vmul.f32 0.999, %v380_v44  ;;  %v4892_v8 = vpack.c.bf16 %v4617_v21, %v4604_v33 }
  0xa3   :  { %6959 = vst [vmem:[#allocation235_spill] sm:$0xff] %v4825_v29  ;;  %6960 = vst [vmem:[#allocation236_spill] sm:$0xff] %v4828_v43  ;;  %v4850_v43 = vld [vmem:[#allocation6 + $0x468] sm:$0xff]  ;;  %v4894_v38 = vld [vmem:[#allocation6 + $0x470] sm:$0xff]  ;;  %v575_v25 = vmul.f32 0.999, %v379_v14  ;;  %3019 = vmatpush1.bf16.msra.mxu0 %v4781_v63 }
  0xa4   :  { %6961 = vst [vmem:[#allocation237_spill] sm:$0xff] %v4836_v10  ;;  %6962 = vst [vmem:[#allocation238_spill] sm:$0xff] %v4840_v39  ;;  %v4879_v11 = vmul.f32 0.001, %v4850_v43  ;;  %v960_v21 = vadd.f32 %v4077_v52, %v576_v17  ;;  %v4917_v58 = vld [vmem:[#allocation6 + $0x480] sm:$0xff]  ;;  %3021 = vmatprep.subr.bf16.mxu0 %v4785_v1  ;;  %v390_v1 = vld [vmem:[#allocation9 + $0x68] sm:$0xff] }
  0xa5   :  { %6963 = vst [vmem:[#allocation239_spill] sm:$0xff] %v4843_v48  ;;  %6964 = vst [vmem:[#allocation240_spill] sm:$0xff] %v4846_v16  ;;  %v4867_v16 = vld [vmem:[#allocation6 + $0x478] sm:$0xff]  ;;  %v378_v48 = vld [vmem:[#allocation9 + $0x8] sm:$0xff] }
  0xa6   :  { %6965 = vst [vmem:[#allocation241_spill] sm:$0xff] %v4855_v42  ;;  %6966 = vst [vmem:[#allocation242_spill] sm:$0xff] %v4859_v49  ;;  %v4882_v15 = vmul.f32 0.001, %v4867_v16  ;;  %v574_v36 = vmul.f32 0.999, %v378_v48  ;;  %v3128_v29 = vpack.c.bf16 %v380_v44, %v378_v48 }
  0xa7   :  { %6967 = vst [vmem:[#allocation243_spill] sm:$0xff] %v4862_v20  ;;  %6968 = vst [vmem:[#allocation244_spill] sm:$0xff] %v4865_v5  ;;  %v377_v5 = vld [vmem:[#allocation9] sm:$0xff]  ;;  %v4886_v20 = vpack.c.bf16 %v4602_v9, %v4594_v4  ;;  %v4900_v9 = vmul.f32 0.001, %v4888_v18  ;;  %v4905_v48 = vld [vmem:[#allocation6 + $0x498] sm:$0xff]  ;;  %3023 = vmatpush1.bf16.msra.mxu0 %v4800_v7 }
  0xa8   :  { %6969 = vst [vmem:[#allocation245_spill] sm:$0xff] %v4872_v46  ;;  %6970 = vst [vmem:[#allocation246_spill] sm:$0xff] %v4876_v28  ;;  %v3130_v28 = vpack.c.bf16 %v379_v14, %v377_v5  ;;  %v4903_v4 = vmul.f32 0.001, %v4894_v38  ;;  %v958_v33 = vadd.f32 %v4075_v51, %v574_v36  ;;  %3129 = vmatprep.subr.bf16.mxu1 %v3128_v29  ;;  %v382_v44 = vld [vmem:[#allocation9 + $0x28] sm:$0xff]  ;;  %v384_v51 = vld [vmem:[#allocation9 + $0x38] sm:$0xff]  ;;  %3025 = vmatprep.subr.bf16.mxu0 %v4804_v12 }
  0xa9   :  { %6971 = vst [vmem:[#allocation247_spill] sm:$0xff] %v4879_v11  ;;  %6972 = vst [vmem:[#allocation248_spill] sm:$0xff] %v4882_v15  ;;  %v4896_v11 = vld [vmem:[#allocation6 + $0x488] sm:$0xff]  ;;  %v573_v15 = vmul.f32 0.999, %v377_v5  ;;  %v4912_v14 = vpack.c.bf16 %v4635_v32, %v4619_v61  ;;  %v381_v52 = vld [vmem:[#allocation9 + $0x20] sm:$0xff] }
  0xaa   :  { %6973 = vst [vmem:[#allocation249_spill] sm:$0xff] %v4886_v20  ;;  %6974 = vst [vmem:[#allocation250_spill] sm:$0xff] %v4892_v8  ;;  %v4915_v5 = vmul.f32 0.001, %v4896_v11  ;;  %3131 = vmatpush1.bf16.msra.mxu1 %v3130_v28  ;;  %v383_v29 = vld [vmem:[#allocation9 + $0x30] sm:$0xff]  ;;  %v6979_v36 = vld [vmem:[#allocation195_spill] sm:$0xff] }
  0xab   :  { %6975 = vst [vmem:[#allocation251_spill] sm:$0xff] %v4900_v9  ;;  %6976 = vst [vmem:[#allocation252_spill] sm:$0xff] %v4903_v4  ;;  %v957_v4 = vadd.f32 %v4079_v53, %v573_v15  ;;  %v959_v9 = vadd.f32 %v4084_v55, %v575_v25  ;;  %v4923_v17 = vpack.c.bf16 %v6979_v36, %v4637_v35  ;;  %v4926_v61 = vmul.f32 0.001, %v4905_v48  ;;  %v4930_v53 = vld [vmem:[#allocation6 + $0x4a8] sm:$0xff]  ;;  %v4941_v36 = vld [vmem:[#allocation6 + $0x4a0] sm:$0xff] }
  0xac   :  { %6977 = vst [vmem:[#allocation253_spill] sm:$0xff] %v4912_v14  ;;  %6978 = vst [vmem:[#allocation254_spill] sm:$0xff] %v4915_v5  ;;  %v578_v32 = vmul.f32 0.999, %v382_v44  ;;  %v580_v2 = vmul.f32 0.999, %v384_v51  ;;  %v3132_v55 = vpack.c.bf16 %v384_v51, %v382_v44  ;;  %v3134_v15 = vpack.c.bf16 %v383_v29, %v381_v52  ;;  %3027 = vmatpush1.bf16.msra.mxu0 %v4818_v60 }
  0xad   :  { %6980 = vst [vmem:[#allocation195_spill] sm:$0xff] %v4923_v17  ;;  %6981 = vst [vmem:[#allocation255_spill] sm:$0xff] %v4926_v61  ;;  %v4928_v5 = vld [vmem:[#allocation6 + $0x490] sm:$0xff]  ;;  %v577_v25 = vmul.f32 0.999, %v381_v52  ;;  %v6986_v44 = vld [vmem:[#allocation198_spill] sm:$0xff]  ;;  %3029 = vmatprep.subr.bf16.mxu0 %v4822_v13 }
  0xae   :  { %1150 = vst [vmem:[#allocation11 + $0x8] sm:$0xff] %v958_v33  ;;  %1152 = vst [vmem:[#allocation11 + $0x18] sm:$0xff] %v960_v21  ;;  %v579_v28 = vmul.f32 0.999, %v383_v29  ;;  %v4934_v35 = vmul.f32 0.001, %v4917_v58  ;;  %v4948_v51 = vpack.c.bf16 %v6986_v44, %v4647_v6  ;;  %3133 = vmatprep.subr.bf16.mxu1 %v3132_v55  ;;  %v4964_v55 = vpack.c.bf16 %v4687_v56, %v4672_v50 }
  0xaf   :  { %1149 = vst [vmem:[#allocation11] sm:$0xff] %v957_v4  ;;  %1151 = vst [vmem:[#allocation11 + $0x10] sm:$0xff] %v959_v9  ;;  %v4937_v33 = vmul.f32 0.001, %v4928_v5  ;;  %v4939_v21 = vld [vmem:[#allocation6 + $0x4b8] sm:$0xff]  ;;  %v6984_v61 = vld [vmem:[#allocation57_spill] sm:$0xff]  ;;  %3135 = vmatpush1.bf16.msra.mxu1 %v3134_v15 }
  0xb0   :  { %6982 = vst [vmem:[#allocation256_spill] sm:$0xff] %v4934_v35  ;;  %v962_v17 = vadd.f32 %v6984_v61, %v578_v32  ;;  %v6985_v4 = vld [vmem:[#allocation59_spill] sm:$0xff]  ;;  %6987 = vst [vmem:[#allocation57_spill] sm:$0xff] %v4948_v51  ;;  %v4951_v52 = vmul.f32 0.001, %v4930_v53  ;;  %v6988_v29 = vld [vmem:[#allocation60_spill] sm:$0xff]  ;;  %3031 = vmatpush1.bf16.msra.mxu0 %v4836_v10 }
  0xb1   :  { %6983 = vst [vmem:[#allocation257_spill] sm:$0xff] %v4937_v33  ;;  %v964_v9 = vadd.f32 %v6985_v4, %v580_v2  ;;  %v961_v63 = vadd.f32 %v6988_v29, %v577_v25  ;;  %v6989_v33 = vld [vmem:[#allocation61_spill] sm:$0xff]  ;;  %v386_v14 = vld [vmem:[#allocation9 + $0x48] sm:$0xff]  ;;  %v388_v8 = vld [vmem:[#allocation9 + $0x58] sm:$0xff]  ;;  %v4960_v32 = vmul.f32 0.001, %v4939_v21  ;;  %3033 = vmatprep.subr.bf16.mxu0 %v4840_v39 }
  0xb2   :  { %v963_v35 = vadd.f32 %v6989_v33, %v579_v28  ;;  %v385_v20 = vld [vmem:[#allocation9 + $0x40] sm:$0xff]  ;;  %v6990_v61 = vld [vmem:[#allocation202_spill] sm:$0xff]  ;;  %1154 = vst [vmem:[#allocation11 + $0x28] sm:$0xff] %v962_v17  ;;  %v582_v6 = vmul.f32 0.999, %v386_v14  ;;  %6992 = vst [vmem:[#allocation198_spill] sm:$0xff] %v4964_v55  ;;  %v3136_v28 = vpack.c.bf16 %v388_v8, %v386_v14  ;;  %v4983_v14 = vpack.c.bf16 %v4708_v31, %v4699_v0 }
  0xb3   :  { %v4957_v2 = vpack.c.bf16 %v6990_v61, %v4657_v24  ;;  %1156 = vst [vmem:[#allocation11 + $0x38] sm:$0xff] %v964_v9  ;;  %v584_v4 = vmul.f32 0.999, %v388_v8  ;;  %v4967_v25 = vmul.f32 0.001, %v4941_v36  ;;  %1153 = vst [vmem:[#allocation11 + $0x20] sm:$0xff] %v961_v63 }
  0xb4   :  { %1155 = vst [vmem:[#allocation11 + $0x30] sm:$0xff] %v963_v35  ;;  %v387_v24 = vld [vmem:[#allocation9 + $0x50] sm:$0xff]  ;;  %v581_v33 = vmul.f32 0.999, %v385_v20  ;;  %v4972_v17 = vld [vmem:[#allocation6 + $0x4c8] sm:$0xff]  ;;  %v6993_v15 = vld [vmem:[#allocation62_spill] sm:$0xff]  ;;  %3137 = vmatprep.subr.bf16.mxu1 %v3136_v28  ;;  %3035 = vmatpush1.bf16.msra.mxu0 %v4855_v42 }
  0xb5   :  { %6991 = vst [vmem:[#allocation59_spill] sm:$0xff] %v4957_v2  ;;  %v4970_v44 = vld [vmem:[#allocation6 + $0x4b0] sm:$0xff]  ;;  %v966_v9 = vadd.f32 %v6993_v15, %v582_v6  ;;  %v6994_v29 = vld [vmem:[#allocation63_spill] sm:$0xff]  ;;  %v583_v56 = vmul.f32 0.999, %v387_v24  ;;  %v3138_v50 = vpack.c.bf16 %v387_v24, %v385_v20  ;;  %v6995_v63 = vld [vmem:[#allocation208_spill] sm:$0xff]  ;;  %v4993_v15 = vpack.c.bf16 %v4723_v54, %v4710_v22  ;;  %3037 = vmatprep.subr.bf16.mxu0 %v4859_v49 }
  0xb6   :  { %v968_v61 = vadd.f32 %v6994_v29, %v584_v4  ;;  %v4979_v8 = vpack.c.bf16 %v6995_v63, %v4689_v41  ;;  %6997 = vst [vmem:[#allocation61_spill] sm:$0xff] %v4983_v14  ;;  %v4986_v35 = vmul.f32 0.001, %v4970_v44  ;;  %v4988_v7 = vld [vmem:[#allocation6 + $0x4d8] sm:$0xff]  ;;  %v6999_v6 = vld [vmem:[#allocation64_spill] sm:$0xff]  ;;  %v389_v24 = vld [vmem:[#allocation9 + $0x60] sm:$0xff]  ;;  %v5007_v54 = vpack.c.bf16 %v4738_v62, %v4725_v47 }
  0xb7   :  { %v965_v4 = vadd.f32 %v6999_v6, %v581_v33  ;;  %v392_v20 = vld [vmem:[#allocation9 + $0x78] sm:$0xff]  ;;  %7000 = vst [vmem:[#allocation62_spill] sm:$0xff] %v4993_v15  ;;  %v4996_v41 = vmul.f32 0.001, %v4972_v17  ;;  %v4999_v31 = vmul.f32 0.001, %v4988_v7  ;;  %3139 = vmatpush1.bf16.msra.mxu1 %v3138_v50 }
  0xb8   :  { %6996 = vst [vmem:[#allocation60_spill] sm:$0xff] %v4979_v8  ;;  %6998 = vst [vmem:[#allocation202_spill] sm:$0xff] %v4986_v35  ;;  %v5001_v0 = vld [vmem:[#allocation6 + $0x4c0] sm:$0xff]  ;;  %v7003_v29 = vld [vmem:[#allocation65_spill] sm:$0xff]  ;;  %v586_v63 = vmul.f32 0.999, %v390_v1  ;;  %v3140_v12 = vpack.c.bf16 %v392_v20, %v390_v1  ;;  %3039 = vmatpush1.bf16.msra.mxu0 %v4872_v46 }
  0xb9   :  { %7001 = vst [vmem:[#allocation63_spill] sm:$0xff] %v4996_v41  ;;  %7002 = vst [vmem:[#allocation208_spill] sm:$0xff] %v4999_v31  ;;  %v967_v28 = vadd.f32 %v7003_v29, %v583_v56  ;;  %v391_v33 = vld [vmem:[#allocation9 + $0x70] sm:$0xff]  ;;  %v588_v6 = vmul.f32 0.999, %v392_v20  ;;  %v5018_v1 = vld [vmem:[#allocation6 + $0x4e8] sm:$0xff] }
  0xba   :  { %1158 = vst [vmem:[#allocation11 + $0x48] sm:$0xff] %v966_v9  ;;  %1160 = vst [vmem:[#allocation11 + $0x58] sm:$0xff] %v968_v61  ;;  %v585_v22 = vmul.f32 0.999, %v389_v24  ;;  %v5009_v31 = vld [vmem:[#allocation6 + $0x4d0] sm:$0xff]  ;;  %v3142_v56 = vpack.c.bf16 %v391_v33, %v389_v24  ;;  %v7007_v29 = vld [vmem:[#allocation68_spill] sm:$0xff]  ;;  %3141 = vmatprep.subr.bf16.mxu1 %v3140_v12  ;;  %v5029_v24 = vpack.c.bf16 %v4774_v37, %v4758_v30 }
  0xbb   :  { %1157 = vst [vmem:[#allocation11 + $0x40] sm:$0xff] %v965_v4  ;;  %7004 = vst [vmem:[#allocation64_spill] sm:$0xff] %v5007_v54  ;;  %v5012_v9 = vmul.f32 0.001, %v5001_v0  ;;  %v587_v61 = vmul.f32 0.999, %v391_v33  ;;  %v972_v47 = vadd.f32 %v7007_v29, %v588_v6  ;;  %v5043_v37 = vpack.c.bf16 %v4793_v34, %v4776_v57 }
  0xbc   :  { %1159 = vst [vmem:[#allocation11 + $0x50] sm:$0xff] %v967_v28  ;;  %v5016_v50 = vmul.f32 0.001, %v5009_v31  ;;  %v7006_v4 = vld [vmem:[#allocation66_spill] sm:$0xff]  ;;  %v7008_v62 = vld [vmem:[#allocation69_spill] sm:$0xff]  ;;  %v394_v41 = vld [vmem:[#allocation9 + $0x88] sm:$0xff]  ;;  %v5025_v28 = vpack.c.bf16 %v4756_v59, %v4740_v19  ;;  %3143 = vmatpush1.bf16.msra.mxu1 %v3142_v56 }
  0xbd   :  { %v970_v20 = vadd.f32 %v7006_v4, %v586_v63  ;;  %v969_v60 = vadd.f32 %v7008_v62, %v585_v22  ;;  %v396_v35 = vld [vmem:[#allocation9 + $0x98] sm:$0xff]  ;;  %7010 = vst [vmem:[#allocation68_spill] sm:$0xff] %v5029_v24  ;;  %v5034_v13 = vmul.f32 0.001, %v5018_v1  ;;  %v7012_v63 = vld [vmem:[#allocation71_spill] sm:$0xff]  ;;  %v395_v22 = vld [vmem:[#allocation9 + $0x90] sm:$0xff] }
  0xbe   :  { %7005 = vst [vmem:[#allocation65_spill] sm:$0xff] %v5016_v50  ;;  %7009 = vst [vmem:[#allocation66_spill] sm:$0xff] %v5025_v28  ;;  %v5031_v33 = vld [vmem:[#allocation6 + $0x4f8] sm:$0xff]  ;;  %v971_v6 = vadd.f32 %v7012_v63, %v587_v61  ;;  %v393_v12 = vld [vmem:[#allocation9 + $0x80] sm:$0xff]  ;;  %v590_v59 = vmul.f32 0.999, %v394_v41  ;;  %v3144_v30 = vpack.c.bf16 %v396_v35, %v394_v41 }
  0xbf   :  { %7011 = vst [vmem:[#allocation69_spill] sm:$0xff] %v5034_v13  ;;  %v5038_v4 = vmul.f32 0.001, %v5031_v33  ;;  %1162 = vst [vmem:[#allocation11 + $0x68] sm:$0xff] %v970_v20  ;;  %v592_v19 = vmul.f32 0.999, %v396_v35  ;;  %v3146_v62 = vpack.c.bf16 %v395_v22, %v393_v12 }
  0xc0   :  { %1164 = vst [vmem:[#allocation11 + $0x78] sm:$0xff] %v972_v47  ;;  %1161 = vst [vmem:[#allocation11 + $0x60] sm:$0xff] %v969_v60  ;;  %v5045_v29 = vld [vmem:[#allocation6 + $0x4e0] sm:$0xff]  ;;  %v589_v61 = vmul.f32 0.999, %v393_v12  ;;  %v5050_v60 = vpack.c.bf16 %v4812_v45, %v4795_v26  ;;  %v5052_v20 = vld [vmem:[#allocation6 + $0x4f0] sm:$0xff]  ;;  %3145 = vmatprep.subr.bf16.mxu1 %v3144_v30  ;;  %v5063_v12 = vpack.c.bf16 %v4830_v3, %v4814_v40 }
  0xc1   :  { %7013 = vst [vmem:[#allocation71_spill] sm:$0xff] %v5038_v4  ;;  %7014 = vst [vmem:[#allocation258_spill] sm:$0xff] %v5043_v37  ;;  %v591_v56 = vmul.f32 0.999, %v395_v22  ;;  %v5055_v35 = vmul.f32 0.001, %v5045_v29  ;;  %3147 = vmatpush1.bf16.msra.mxu1 %v3146_v62  ;;  %v5076_v30 = vpack.c.bf16 %v4848_v27, %v4832_v23 }
  0xc2   :  { %1163 = vst [vmem:[#allocation11 + $0x70] sm:$0xff] %v971_v6  ;;  %7015 = vst [vmem:[#allocation259_spill] sm:$0xff] %v5050_v60  ;;  %v5057_v41 = vld [vmem:[#allocation6 + $0x508] sm:$0xff]  ;;  %v7018_v47 = vld [vmem:[#allocation73_spill] sm:$0xff]  ;;  %v5066_v45 = vmul.f32 0.001, %v5052_v20 }
  0xc3   :  { %7016 = vst [vmem:[#allocation260_spill] sm:$0xff] %v5055_v35  ;;  %v7017_v57 = vld [vmem:[#allocation72_spill] sm:$0xff]  ;;  %v976_v63 = vadd.f32 %v7018_v47, %v592_v19  ;;  %v5068_v26 = vld [vmem:[#allocation6 + $0x518] sm:$0xff]  ;;  %v5070_v22 = vld [vmem:[#allocation6 + $0x500] sm:$0xff] }
  0xc4   :  { %v974_v34 = vadd.f32 %v7017_v57, %v590_v59  ;;  %v398_v6 = vld [vmem:[#allocation9 + $0xa8] sm:$0xff]  ;;  %7019 = vst [vmem:[#allocation72_spill] sm:$0xff] %v5063_v12  ;;  %7020 = vst [vmem:[#allocation73_spill] sm:$0xff] %v5066_v45  ;;  %v7021_v39 = vld [vmem:[#allocation74_spill] sm:$0xff]  ;;  %v5086_v23 = vmul.f32 0.001, %v5068_v26 }
  0xc5   :  { %v973_v10 = vadd.f32 %v7021_v39, %v589_v61  ;;  %v7022_v35 = vld [vmem:[#allocation75_spill] sm:$0xff]  ;;  %v400_v59 = vld [vmem:[#allocation9 + $0xb8] sm:$0xff]  ;;  %7023 = vst [vmem:[#allocation74_spill] sm:$0xff] %v5076_v30  ;;  %v5078_v40 = vld [vmem:[#allocation6 + $0x510] sm:$0xff]  ;;  %v594_v3 = vmul.f32 0.999, %v398_v6 }
  0xc6   :  { %v975_v4 = vadd.f32 %v7022_v35, %v591_v56  ;;  %v397_v19 = vld [vmem:[#allocation9 + $0xa0] sm:$0xff]  ;;  %1166 = vst [vmem:[#allocation11 + $0x88] sm:$0xff] %v974_v34  ;;  %1168 = vst [vmem:[#allocation11 + $0x98] sm:$0xff] %v976_v63  ;;  %v596_v57 = vmul.f32 0.999, %v400_v59  ;;  %v3148_v47 = vpack.c.bf16 %v400_v59, %v398_v6  ;;  %v399_v45 = vld [vmem:[#allocation9 + $0xb0] sm:$0xff] }
  0xc7   :  { %v5082_v39 = vmul.f32 0.001, %v5057_v41  ;;  %1165 = vst [vmem:[#allocation11 + $0x80] sm:$0xff] %v973_v10  ;;  %v593_v61 = vmul.f32 0.999, %v397_v19  ;;  %v3150_v62 = vpack.c.bf16 %v399_v45, %v397_v19  ;;  %7025 = vst [vmem:[#allocation261_spill] sm:$0xff] %v5086_v23 }
  0xc8   :  { %1167 = vst [vmem:[#allocation11 + $0x90] sm:$0xff] %v975_v4  ;;  %v595_v56 = vmul.f32 0.999, %v399_v45  ;;  %v5089_v27 = vmul.f32 0.001, %v5070_v22  ;;  %v5091_v35 = vld [vmem:[#allocation6 + $0x528] sm:$0xff]  ;;  %3149 = vmatprep.subr.bf16.mxu1 %v3148_v47  ;;  %v5097_v4 = vpack.c.bf16 %v4867_v16, %v4850_v43 }
  0xc9   :  { %7024 = vst [vmem:[#allocation75_spill] sm:$0xff] %v5082_v39  ;;  %v7027_v34 = vld [vmem:[#allocation77_spill] sm:$0xff]  ;;  %v7028_v6 = vld [vmem:[#allocation78_spill] sm:$0xff]  ;;  %v402_v10 = vld [vmem:[#allocation9 + $0xc8] sm:$0xff]  ;;  %v5100_v45 = vmul.f32 0.001, %v5078_v40  ;;  %3151 = vmatpush1.bf16.msra.mxu1 %v3150_v62 }
  0xca   :  { %7026 = vst [vmem:[#allocation262_spill] sm:$0xff] %v5089_v27  ;;  %v978_v63 = vadd.f32 %v7027_v34, %v594_v3  ;;  %v980_v59 = vadd.f32 %v7028_v6, %v596_v57  ;;  %7029 = vst [vmem:[#allocation77_spill] sm:$0xff] %v5097_v4  ;;  %v7031_v19 = vld [vmem:[#allocation80_spill] sm:$0xff]  ;;  %v7032_v42 = vld [vmem:[#allocation81_spill] sm:$0xff]  ;;  %v5106_v3 = vpack.c.bf16 %v4894_v38, %v4888_v18  ;;  %v5109_v57 = vmul.f32 0.001, %v5091_v35 }
  0xcb   :  { %7030 = vst [vmem:[#allocation78_spill] sm:$0xff] %v5100_v45  ;;  %v977_v49 = vadd.f32 %v7031_v19, %v593_v61  ;;  %v979_v23 = vadd.f32 %v7032_v42, %v595_v56  ;;  %v404_v27 = vld [vmem:[#allocation9 + $0xd8] sm:$0xff]  ;;  %v401_v39 = vld [vmem:[#allocation9 + $0xc0] sm:$0xff]  ;;  %v403_v13 = vld [vmem:[#allocation9 + $0xd0] sm:$0xff]  ;;  %v598_v43 = vmul.f32 0.999, %v402_v10 }
  0xcc   :  { %7033 = vst [vmem:[#allocation80_spill] sm:$0xff] %v5106_v3  ;;  %7034 = vst [vmem:[#allocation81_spill] sm:$0xff] %v5109_v57  ;;  %v600_v16 = vmul.f32 0.999, %v404_v27  ;;  %v5112_v47 = vld [vmem:[#allocation6 + $0x538] sm:$0xff]  ;;  %v5114_v42 = vld [vmem:[#allocation6 + $0x520] sm:$0xff]  ;;  %v3152_v61 = vpack.c.bf16 %v404_v27, %v402_v10  ;;  %v3154_v18 = vpack.c.bf16 %v403_v13, %v401_v39 }
  0xcd   :  { %1170 = vst [vmem:[#allocation11 + $0xa8] sm:$0xff] %v978_v63  ;;  %1172 = vst [vmem:[#allocation11 + $0xb8] sm:$0xff] %v980_v59  ;;  %v597_v56 = vmul.f32 0.999, %v401_v39  ;;  %v599_v62 = vmul.f32 0.999, %v403_v13 }
  0xce   :  { %1169 = vst [vmem:[#allocation11 + $0xa0] sm:$0xff] %v977_v49  ;;  %1171 = vst [vmem:[#allocation11 + $0xb0] sm:$0xff] %v979_v23  ;;  %v7035_v38 = vld [vmem:[#allocation246_spill] sm:$0xff]  ;;  %v5118_v34 = vmul.f32 0.001, %v5112_v47  ;;  %v5120_v63 = vld [vmem:[#allocation6 + $0x530] sm:$0xff]  ;;  %v5129_v49 = vpack.c.bf16 %v4905_v48, %v4896_v11  ;;  %3153 = vmatprep.subr.bf16.mxu1 %v3152_v61 }
  0xcf   :  { %3041 = vmatprep.subr.bf16.mxu0 %v7035_v38  ;;  %v5123_v6 = vmul.f32 0.001, %v5114_v42  ;;  %v7038_v59 = vld [vmem:[#allocation82_spill] sm:$0xff]  ;;  %v7039_v46 = vld [vmem:[#allocation83_spill] sm:$0xff]  ;;  %v5132_v13 = vmul.f32 0.001, %v5120_v63  ;;  %3155 = vmatpush1.bf16.msra.mxu1 %v3154_v18 }
  0xd0   :  { %7036 = vst [vmem:[#allocation263_spill] sm:$0xff] %v5118_v34  ;;  %v982_v19 = vadd.f32 %v7038_v59, %v598_v43  ;;  %v984_v57 = vadd.f32 %v7039_v46, %v600_v16  ;;  %7040 = vst [vmem:[#allocation82_spill] sm:$0xff] %v5129_v49  ;;  %v7042_v39 = vld [vmem:[#allocation84_spill] sm:$0xff]  ;;  %v7043_v27 = vld [vmem:[#allocation85_spill] sm:$0xff]  ;;  %v5138_v43 = vpack.c.bf16 %v4928_v5, %v4917_v58 }
  0xd1   :  { %7037 = vst [vmem:[#allocation264_spill] sm:$0xff] %v5123_v6  ;;  %7041 = vst [vmem:[#allocation83_spill] sm:$0xff] %v5132_v13  ;;  %v981_v23 = vadd.f32 %v7042_v39, %v597_v56  ;;  %v983_v10 = vadd.f32 %v7043_v27, %v599_v62  ;;  %v406_v38 = vld [vmem:[#allocation9 + $0xe8] sm:$0xff]  ;;  %v408_v34 = vld [vmem:[#allocation9 + $0xf8] sm:$0xff]  ;;  %v5142_v46 = vpack.c.bf16 %v4939_v21, %v4930_v53 }
  0xd2   :  { %v405_v45 = vld [vmem:[#allocation9 + $0xe0] sm:$0xff]  ;;  %7044 = vst [vmem:[#allocation84_spill] sm:$0xff] %v5138_v43  ;;  %v5144_v11 = vld [vmem:[#allocation6 + $0x548] sm:$0xff]  ;;  %1174 = vst [vmem:[#allocation11 + $0xc8] sm:$0xff] %v982_v19  ;;  %v602_v48 = vmul.f32 0.999, %v406_v38  ;;  %v5149_v56 = vpack.c.bf16 %v4970_v44, %v4941_v36  ;;  %v3156_v5 = vpack.c.bf16 %v408_v34, %v406_v38  ;;  %v5167_v38 = vpack.c.bf16 %v5009_v31, %v5001_v0 }
  0xd3   :  { %7045 = vst [vmem:[#allocation85_spill] sm:$0xff] %v5142_v46  ;;  %1176 = vst [vmem:[#allocation11 + $0xd8] sm:$0xff] %v984_v57  ;;  %v604_v16 = vmul.f32 0.999, %v408_v34  ;;  %v7046_v61 = vld [vmem:[#allocation249_spill] sm:$0xff]  ;;  %v7049_v62 = vld [vmem:[#allocation250_spill] sm:$0xff] }
  0xd4   :  { %3043 = vmatpush1.bf16.msra.mxu0 %v7046_v61  ;;  %7047 = vst [vmem:[#allocation265_spill] sm:$0xff] %v5149_v56  ;;  %v5152_v58 = vmul.f32 0.001, %v5144_v11  ;;  %1173 = vst [vmem:[#allocation11 + $0xc0] sm:$0xff] %v981_v23  ;;  %v407_v53 = vld [vmem:[#allocation9 + $0xf0] sm:$0xff]  ;;  %v5155_v57 = vld [vmem:[#allocation6 + $0x558] sm:$0xff]  ;;  %v5163_v23 = vpack.c.bf16 %v4988_v7, %v4972_v17  ;;  %3157 = vmatprep.subr.bf16.mxu1 %v3156_v5 }
  0xd5   :  { %1175 = vst [vmem:[#allocation11 + $0xd0] sm:$0xff] %v983_v10  ;;  %v601_v21 = vmul.f32 0.999, %v405_v45  ;;  %3045 = vmatprep.subr.bf16.mxu0 %v7049_v62  ;;  %v5157_v18 = vld [vmem:[#allocation6 + $0x540] sm:$0xff]  ;;  %v7051_v39 = vld [vmem:[#allocation88_spill] sm:$0xff]  ;;  %v3158_v44 = vpack.c.bf16 %v407_v53, %v405_v45  ;;  %v5172_v10 = vld [vmem:[#allocation6 + $0x550] sm:$0xff]  ;;  %v5177_v45 = vpack.c.bf16 %v5031_v33, %v5018_v1 }
  0xd6   :  { %7048 = vst [vmem:[#allocation266_spill] sm:$0xff] %v5152_v58  ;;  %v7050_v59 = vld [vmem:[#allocation87_spill] sm:$0xff]  ;;  %v988_v27 = vadd.f32 %v7051_v39, %v604_v16  ;;  %v603_v36 = vmul.f32 0.999, %v407_v53  ;;  %v410_v61 = vld [vmem:[#allocation9 + $0x108] sm:$0xff]  ;;  %7053 = vst [vmem:[#allocation88_spill] sm:$0xff] %v5167_v38 }
  0xd7   :  { %v986_v19 = vadd.f32 %v7050_v59, %v602_v48  ;;  %7052 = vst [vmem:[#allocation87_spill] sm:$0xff] %v5163_v23  ;;  %v5170_v34 = vmul.f32 0.001, %v5155_v57  ;;  %v7055_v48 = vld [vmem:[#allocation90_spill] sm:$0xff]  ;;  %v409_v39 = vld [vmem:[#allocation9 + $0x100] sm:$0xff]  ;;  %v5185_v31 = vld [vmem:[#allocation6 + $0x568] sm:$0xff]  ;;  %3159 = vmatpush1.bf16.msra.mxu1 %v3158_v44 }
  0xd8   :  { %v985_v59 = vadd.f32 %v7055_v48, %v601_v21  ;;  %v412_v16 = vld [vmem:[#allocation9 + $0x118] sm:$0xff]  ;;  %7056 = vst [vmem:[#allocation90_spill] sm:$0xff] %v5177_v45  ;;  %v5180_v7 = vmul.f32 0.001, %v5157_v18  ;;  %v5183_v17 = vmul.f32 0.001, %v5172_v10 }
  0xd9   :  { %7054 = vst [vmem:[#allocation267_spill] sm:$0xff] %v5170_v34  ;;  %1178 = vst [vmem:[#allocation11 + $0xe8] sm:$0xff] %v986_v19  ;;  %v7059_v0 = vld [vmem:[#allocation91_spill] sm:$0xff]  ;;  %v411_v53 = vld [vmem:[#allocation9 + $0x110] sm:$0xff]  ;;  %v606_v48 = vmul.f32 0.999, %v410_v61  ;;  %v3160_v33 = vpack.c.bf16 %v412_v16, %v410_v61 }
  0xda   :  { %7057 = vst [vmem:[#allocation268_spill] sm:$0xff] %v5180_v7  ;;  %7058 = vst [vmem:[#allocation269_spill] sm:$0xff] %v5183_v17  ;;  %v987_v5 = vadd.f32 %v7059_v0, %v603_v36  ;;  %v7060_v21 = vld [vmem:[#allocation253_spill] sm:$0xff]  ;;  %v608_v1 = vmul.f32 0.999, %v412_v16  ;;  %v7061_v34 = vld [vmem:[#allocation195_spill] sm:$0xff]  ;;  %v5192_v17 = vpack.c.bf16 %v5052_v20, %v5045_v29  ;;  %v3162_v44 = vpack.c.bf16 %v411_v53, %v409_v39 }
  0xdb   :  { %1180 = vst [vmem:[#allocation11 + $0xf8] sm:$0xff] %v988_v27  ;;  %3047 = vmatpush1.bf16.msra.mxu0 %v7060_v21  ;;  %1177 = vst [vmem:[#allocation11 + $0xe0] sm:$0xff] %v985_v59  ;;  %v605_v62 = vmul.f32 0.999, %v409_v39  ;;  %v5194_v7 = vld [vmem:[#allocation6 + $0x578] sm:$0xff]  ;;  %v5199_v27 = vld [vmem:[#allocation6 + $0x560] sm:$0xff]  ;;  %3161 = vmatprep.subr.bf16.mxu1 %v3160_v33 }
  0xdc   :  { %3049 = vmatprep.subr.bf16.mxu0 %v7061_v34  ;;  %7062 = vst [vmem:[#allocation91_spill] sm:$0xff] %v5192_v17  ;;  %v5197_v19 = vmul.f32 0.001, %v5185_v31  ;;  %1179 = vst [vmem:[#allocation11 + $0xf0] sm:$0xff] %v987_v5  ;;  %v607_v36 = vmul.f32 0.999, %v411_v53  ;;  %3163 = vmatpush1.bf16.msra.mxu1 %v3162_v44 }
  0xdd   :  { %v5202_v59 = vmul.f32 0.001, %v5194_v7  ;;  %v5204_v61 = vld [vmem:[#allocation6 + $0x570] sm:$0xff]  ;;  %v7065_v16 = vld [vmem:[#allocation92_spill] sm:$0xff]  ;;  %v7067_v20 = vld [vmem:[#allocation94_spill] sm:$0xff] }
  0xde   :  { %7063 = vst [vmem:[#allocation270_spill] sm:$0xff] %v5197_v19  ;;  %v990_v0 = vadd.f32 %v7065_v16, %v606_v48  ;;  %v7066_v34 = vld [vmem:[#allocation93_spill] sm:$0xff]  ;;  %v989_v21 = vadd.f32 %v7067_v20, %v605_v62  ;;  %v414_v58 = vld [vmem:[#allocation9 + $0x128] sm:$0xff]  ;;  %v416_v13 = vld [vmem:[#allocation9 + $0x138] sm:$0xff]  ;;  %v5211_v19 = vpack.c.bf16 %v5068_v26, %v5057_v41  ;;  %v5214_v39 = vmul.f32 0.001, %v5199_v27 }
  0xdf   :  { %7064 = vst [vmem:[#allocation271_spill] sm:$0xff] %v5202_v59  ;;  %v992_v29 = vadd.f32 %v7066_v34, %v608_v1  ;;  %v5217_v5 = vmul.f32 0.001, %v5204_v61  ;;  %v7071_v53 = vld [vmem:[#allocation95_spill] sm:$0xff]  ;;  %v415_v34 = vld [vmem:[#allocation9 + $0x130] sm:$0xff]  ;;  %3051 = vmatpush1.bf16.msra.mxu0 %v4948_v51  ;;  %v5223_v62 = vpack.c.bf16 %v5078_v40, %v5070_v22  ;;  %v5225_v1 = vld [vmem:[#allocation6 + $0x588] sm:$0xff]  ;;  %v3164_v16 = vpack.c.bf16 %v416_v13, %v414_v58 }
  0xe0   :  { %7068 = vst [vmem:[#allocation92_spill] sm:$0xff] %v5211_v19  ;;  %7069 = vst [vmem:[#allocation93_spill] sm:$0xff] %v5214_v39  ;;  %v991_v59 = vadd.f32 %v7071_v53, %v607_v36  ;;  %v413_v48 = vld [vmem:[#allocation9 + $0x120] sm:$0xff]  ;;  %v5227_v41 = vld [vmem:[#allocation6 + $0x598] sm:$0xff]  ;;  %v610_v26 = vmul.f32 0.999, %v414_v58  ;;  %3053 = vmatprep.subr.bf16.mxu0 %v4957_v2  ;;  %v5235_v40 = vpack.c.bf16 %v5112_v47, %v5091_v35 }
  0xe1   :  { %7070 = vst [vmem:[#allocation94_spill] sm:$0xff] %v5217_v5  ;;  %7072 = vst [vmem:[#allocation95_spill] sm:$0xff] %v5223_v62  ;;  %v612_v33 = vmul.f32 0.999, %v416_v13  ;;  %v5231_v36 = vmul.f32 0.001, %v5225_v1  ;;  %v3166_v22 = vpack.c.bf16 %v415_v34, %v413_v48  ;;  %3165 = vmatprep.subr.bf16.mxu1 %v3164_v16 }
  0xe2   :  { %1182 = vst [vmem:[#allocation11 + $0x108] sm:$0xff] %v990_v0  ;;  %1184 = vst [vmem:[#allocation11 + $0x118] sm:$0xff] %v992_v29  ;;  %v609_v44 = vmul.f32 0.999, %v413_v48  ;;  %v611_v20 = vmul.f32 0.999, %v415_v34  ;;  %v5248_v48 = vpack.c.bf16 %v5120_v63, %v5114_v42 }
  0xe3   :  { %1181 = vst [vmem:[#allocation11 + $0x100] sm:$0xff] %v989_v21  ;;  %7073 = vst [vmem:[#allocation272_spill] sm:$0xff] %v5231_v36  ;;  %v5238_v0 = vmul.f32 0.001, %v5227_v41  ;;  %v5240_v21 = vld [vmem:[#allocation6 + $0x580] sm:$0xff]  ;;  %v5242_v29 = vld [vmem:[#allocation6 + $0x590] sm:$0xff]  ;;  %3167 = vmatpush1.bf16.msra.mxu1 %v3166_v22  ;;  %3055 = vmatpush1.bf16.msra.mxu0 %v4964_v55 }
  0xe4   :  { %1183 = vst [vmem:[#allocation11 + $0x110] sm:$0xff] %v991_v59  ;;  %7074 = vst [vmem:[#allocation273_spill] sm:$0xff] %v5235_v40  ;;  %v7076_v13 = vld [vmem:[#allocation97_spill] sm:$0xff]  ;;  %v7077_v53 = vld [vmem:[#allocation98_spill] sm:$0xff]  ;;  %v5251_v35 = vmul.f32 0.001, %v5240_v21  ;;  %3057 = vmatprep.subr.bf16.mxu0 %v4979_v8 }
  0xe5   :  { %7075 = vst [vmem:[#allocation274_spill] sm:$0xff] %v5238_v0  ;;  %v994_v58 = vadd.f32 %v7076_v13, %v610_v26  ;;  %v996_v2 = vadd.f32 %v7077_v53, %v612_v33  ;;  %v418_v59 = vld [vmem:[#allocation9 + $0x148] sm:$0xff]  ;;  %7078 = vst [vmem:[#allocation97_spill] sm:$0xff] %v5248_v48  ;;  %v7081_v0 = vld [vmem:[#allocation101_spill] sm:$0xff]  ;;  %v5260_v33 = vpack.c.bf16 %v5155_v57, %v5144_v11 }
  0xe6   :  { %7079 = vst [vmem:[#allocation98_spill] sm:$0xff] %v5251_v35  ;;  %v5253_v47 = vld [vmem:[#allocation6 + $0x5a8] sm:$0xff]  ;;  %v995_v36 = vadd.f32 %v7081_v0, %v611_v20  ;;  %v420_v5 = vld [vmem:[#allocation9 + $0x158] sm:$0xff]  ;;  %v417_v26 = vld [vmem:[#allocation9 + $0x140] sm:$0xff]  ;;  %v614_v42 = vmul.f32 0.999, %v418_v59 }
  0xe7   :  { %v7080_v34 = vld [vmem:[#allocation100_spill] sm:$0xff]  ;;  %1186 = vst [vmem:[#allocation11 + $0x128] sm:$0xff] %v994_v58  ;;  %1188 = vst [vmem:[#allocation11 + $0x138] sm:$0xff] %v996_v2  ;;  %v616_v63 = vmul.f32 0.999, %v420_v5  ;;  %v3168_v16 = vpack.c.bf16 %v420_v5, %v418_v59  ;;  %v419_v13 = vld [vmem:[#allocation9 + $0x150] sm:$0xff]  ;;  %v5271_v2 = vpack.c.bf16 %v5172_v10, %v5157_v18  ;;  %3059 = vmatpush1.bf16.msra.mxu0 %v4983_v14 }
  0xe8   :  { %v993_v51 = vadd.f32 %v7080_v34, %v609_v44  ;;  %7082 = vst [vmem:[#allocation100_spill] sm:$0xff] %v5260_v33  ;;  %v422_v53 = vld [vmem:[#allocation9 + $0x168] sm:$0xff]  ;;  %v5264_v44 = vmul.f32 0.001, %v5242_v29  ;;  %v5267_v20 = vmul.f32 0.001, %v5253_v47  ;;  %v3170_v11 = vpack.c.bf16 %v419_v13, %v417_v26  ;;  %3061 = vmatprep.subr.bf16.mxu0 %v4993_v15 }
  0xe9   :  { %1187 = vst [vmem:[#allocation11 + $0x130] sm:$0xff] %v995_v36  ;;  %v613_v22 = vmul.f32 0.999, %v417_v26  ;;  %7085 = vst [vmem:[#allocation276_spill] sm:$0xff] %v5271_v2  ;;  %v7086_v57 = vld [vmem:[#allocation102_spill] sm:$0xff]  ;;  %v7087_v0 = vld [vmem:[#allocation103_spill] sm:$0xff]  ;;  %3169 = vmatprep.subr.bf16.mxu1 %v3168_v16 }
  0xea   :  { %7083 = vst [vmem:[#allocation101_spill] sm:$0xff] %v5264_v44  ;;  %7084 = vst [vmem:[#allocation275_spill] sm:$0xff] %v5267_v20  ;;  %v998_v5 = vadd.f32 %v7086_v57, %v614_v42  ;;  %v1000_v58 = vadd.f32 %v7087_v0, %v616_v63  ;;  %v615_v59 = vmul.f32 0.999, %v419_v13  ;;  %v424_v34 = vld [vmem:[#allocation9 + $0x178] sm:$0xff]  ;;  %v421_v8 = vld [vmem:[#allocation9 + $0x160] sm:$0xff]  ;;  %3171 = vmatpush1.bf16.msra.mxu1 %v3170_v11 }
  0xeb   :  { %1185 = vst [vmem:[#allocation11 + $0x120] sm:$0xff] %v993_v51  ;;  %v423_v55 = vld [vmem:[#allocation9 + $0x170] sm:$0xff]  ;;  %v5278_v51 = vld.sshfl [vmem:[%s6845_s0 + $0x8] sm:$0x33 pattern:$0x76325410]  ;;  %v3172_v10 = vpack.c.bf16 %v424_v34, %v422_v53  ;;  %3063 = vmatpush1.bf16.msra.mxu0 %v5007_v54 }
  0xec   :  { %v7088_v36 = vld [vmem:[#allocation104_spill] sm:$0xff]  ;;  %v618_v20 = vmul.f32 0.999, %v422_v53  ;;  %v620_v18 = vmul.f32 0.999, %v424_v34  ;;  %v428_v42 = vld [vmem:[#allocation9 + $0x198] sm:$0xff]  ;;  %v3174_v0 = vpack.c.bf16 %v423_v55, %v421_v8  ;;  %3065 = vmatprep.subr.bf16.mxu0 %v5025_v28 }
  0xed   :  { %v997_v26 = vadd.f32 %v7088_v36, %v613_v22  ;;  %v426_v44 = vld [vmem:[#allocation9 + $0x188] sm:$0xff]  ;;  %1190 = vst [vmem:[#allocation11 + $0x148] sm:$0xff] %v998_v5  ;;  %1192 = vst [vmem:[#allocation11 + $0x158] sm:$0xff] %v1000_v58  ;;  %v7089_v63 = vld [vmem:[#allocation105_spill] sm:$0xff]  ;;  %v617_v13 = vmul.f32 0.999, %v421_v8  ;;  %3173 = vmatprep.subr.bf16.mxu1 %v3172_v10 }
  0xee   :  { %v999_v16 = vadd.f32 %v7089_v63, %v615_v59  ;;  %v619_v57 = vmul.f32 0.999, %v423_v55  ;;  %v425_v35 = vld [vmem:[#allocation9 + $0x180] sm:$0xff]  ;;  %v427_v39 = vld [vmem:[#allocation9 + $0x190] sm:$0xff]  ;;  %v7091_v36 = vld [vmem:[#allocation108_spill] sm:$0xff]  ;;  %v3176_v63 = vpack.c.bf16 %v428_v42, %v426_v44  ;;  %3175 = vmatpush1.bf16.msra.mxu1 %v3174_v0 }
  0xef   :  { %1189 = vst [vmem:[#allocation11 + $0x140] sm:$0xff] %v997_v26  ;;  %v7090_v22 = vld [vmem:[#allocation107_spill] sm:$0xff]  ;;  %v1004_v53 = vadd.f32 %v7091_v36, %v620_v18  ;;  %v622_v34 = vmul.f32 0.999, %v426_v44  ;;  %v624_v6 = vmul.f32 0.999, %v428_v42  ;;  %v3178_v10 = vpack.c.bf16 %v427_v39, %v425_v35 }
  0xf0   :  { %v1002_v11 = vadd.f32 %v7090_v22, %v618_v20  ;;  %1191 = vst [vmem:[#allocation11 + $0x150] sm:$0xff] %v999_v16  ;;  %v7092_v5 = vld [vmem:[#allocation110_spill] sm:$0xff]  ;;  %v7093_v14 = vld [vmem:[#allocation111_spill] sm:$0xff]  ;;  %v621_v50 = vmul.f32 0.999, %v425_v35  ;;  %v430_v55 = vld [vmem:[#allocation9 + $0x1a8] sm:$0xff]  ;;  %v1385_v16 = vcombine.high %v5278_v51, %v5278_v51  ;;  %3177 = vmatprep.subr.bf16.mxu1 %v3176_v63 }
  0xf1   :  { %v1001_v58 = vadd.f32 %v7092_v5, %v617_v13  ;;  %v1003_v59 = vadd.f32 %v7093_v14, %v619_v57  ;;  %v432_v8 = vld [vmem:[#allocation9 + $0x1b8] sm:$0xff]  ;;  %1196 = vst [vmem:[#allocation11 + $0x178] sm:$0xff] %v1004_v53  ;;  %v7094_v26 = vld [vmem:[#allocation112_spill] sm:$0xff]  ;;  %v7095_v20 = vld [vmem:[#allocation113_spill] sm:$0xff]  ;;  %v623_v18 = vmul.f32 0.999, %v427_v39 }
  0xf2   :  { %1194 = vst [vmem:[#allocation11 + $0x168] sm:$0xff] %v1002_v11  ;;  %v1006_v15 = vadd.f32 %v7094_v26, %v622_v34  ;;  %v1008_v22 = vadd.f32 %v7095_v20, %v624_v6  ;;  %v7096_v14 = vld [vmem:[#allocation114_spill] sm:$0xff]  ;;  %v626_v42 = vmul.f32 0.999, %v430_v55  ;;  %v628_v13 = vmul.f32 0.999, %v432_v8  ;;  %3179 = vmatpush1.bf16.msra.mxu1 %v3178_v10 }
  0xf3   :  { %1193 = vst [vmem:[#allocation11 + $0x160] sm:$0xff] %v1001_v58  ;;  %1195 = vst [vmem:[#allocation11 + $0x170] sm:$0xff] %v1003_v59  ;;  %v1005_v44 = vadd.f32 %v7096_v14, %v621_v50  ;;  %v429_v57 = vld [vmem:[#allocation9 + $0x1a0] sm:$0xff]  ;;  %v431_v0 = vld [vmem:[#allocation9 + $0x1b0] sm:$0xff]  ;;  %v3180_v35 = vpack.c.bf16 %v432_v8, %v430_v55 }
  0xf4   :  { %1198 = vst [vmem:[#allocation11 + $0x188] sm:$0xff] %v1006_v15  ;;  %1200 = vst [vmem:[#allocation11 + $0x198] sm:$0xff] %v1008_v22  ;;  %v7097_v6 = vld [vmem:[#allocation115_spill] sm:$0xff]  ;;  %v625_v11 = vmul.f32 0.999, %v429_v57  ;;  %v434_v53 = vld [vmem:[#allocation9 + $0x1c8] sm:$0xff] }
  0xf5   :  { %v1007_v39 = vadd.f32 %v7097_v6, %v623_v18  ;;  %v627_v36 = vmul.f32 0.999, %v431_v0  ;;  %v436_v51 = vld [vmem:[#allocation9 + $0x1d8] sm:$0xff]  ;;  %1197 = vst [vmem:[#allocation11 + $0x180] sm:$0xff] %v1005_v44  ;;  %v7098_v34 = vld [vmem:[#allocation117_spill] sm:$0xff]  ;;  %v5298_v26 = vld [vmem:[#allocation9 + $0x1c0] sm:$0xff]  ;;  %v3182_v18 = vpack.c.bf16 %v431_v0, %v429_v57  ;;  %3181 = vmatprep.subr.bf16.mxu1 %v3180_v35 }
  0xf6   :  { %v1010_v5 = vadd.f32 %v7098_v34, %v626_v42  ;;  %v7099_v58 = vld [vmem:[#allocation118_spill] sm:$0xff]  ;;  %v630_v59 = vmul.f32 0.999, %v434_v53  ;;  %v632_v63 = vmul.f32 0.999, %v436_v51  ;;  %v7100_v20 = vld [vmem:[#allocation189_spill] sm:$0xff] }
  0xf7   :  { %v1012_v50 = vadd.f32 %v7099_v58, %v628_v13  ;;  %1528 = vmatmul.mubr.f32.vlgmr.msra.gmra.mrb[0].mxu0 %v7100_v20  ;;  %1199 = vst [vmem:[#allocation11 + $0x190] sm:$0xff] %v1007_v39  ;;  %v7101_v15 = vld [vmem:[#allocation121_spill] sm:$0xff]  ;;  %v7102_v55 = vld [vmem:[#allocation122_spill] sm:$0xff]  ;;  %v629_v44 = vmul.f32 0.999, %v5298_v26  ;;  %v7103_v42 = vld [vmem:[#allocation123_spill] sm:$0xff]  ;;  %v3184_v58 = vpack.c.bf16 %v436_v51, %v434_v53  ;;  %3183 = vmatpush1.bf16.msra.mxu1 %v3182_v18 }
  0xf8   :  { %v1009_v22 = vadd.f32 %v7101_v15, %v625_v11  ;;  %v1011_v8 = vadd.f32 %v7102_v55, %v627_v36  ;;  %v435_v14 = vld [vmem:[#allocation9 + $0x1d0] sm:$0xff]  ;;  %3067 = vmatpush1.bf16.msra.mxu0 %v5029_v24  ;;  %1598 = vmatprep.mubr.f32.mxu0 %v1385_v16  ;;  %1202 = vst [vmem:[#allocation11 + $0x1a8] sm:$0xff] %v1010_v5  ;;  %v438_v10 = vld [vmem:[#allocation9 + $0x1e8] sm:$0xff]  ;;  %v440_v20 = vld [vmem:[#allocation9 + $0x1f8] sm:$0xff] }
  0xf9   :  { %1204 = vst [vmem:[#allocation11 + $0x1b8] sm:$0xff] %v1012_v50  ;;  %v1014_v13 = vadd.f32 %v7103_v42, %v630_v59  ;;  %v7104_v6 = vld [vmem:[#allocation125_spill] sm:$0xff]  ;;  %v631_v39 = vmul.f32 0.999, %v435_v14  ;;  %v5310_v57 = vld [vmem:[%s7105_s20] sm:$0xff]  ;;  %3069 = vmatprep.subr.bf16.mxu0 %v5043_v37  ;;  %v5315_v16 = vpack.c.bf16 %v5194_v7, %v5185_v31  ;;  %v7108_v50 = vld [vmem:[#allocation128_spill] sm:$0xff]  ;;  %3185 = vmatprep.subr.bf16.mxu1 %v3184_v58 }
  0xfa   :  { %v1016_v34 = vadd.f32 %v7104_v6, %v632_v63  ;;  %1201 = vst [vmem:[#allocation11 + $0x1a0] sm:$0xff] %v1009_v22  ;;  %1203 = vst [vmem:[#allocation11 + $0x1b0] sm:$0xff] %v1011_v8  ;;  %v7107_v0 = vld [vmem:[#allocation126_spill] sm:$0xff]  ;;  %v634_v36 = vmul.f32 0.999, %v438_v10  ;;  %v5318_v51 = vld [vmem:[#allocation9 + $0x1e0] sm:$0xff]  ;;  %v3186_v63 = vpack.c.bf16 %v435_v14, %v5298_v26  ;;  %v3188_v8 = vpack.c.bf16 %v440_v20, %v438_v10 }
  0xfb   :  { %7106 = vst [vmem:[#allocation102_spill] sm:$0xff] %v5315_v16  ;;  %v1013_v11 = vadd.f32 %v7107_v0, %v629_v44  ;;  %v636_v53 = vmul.f32 0.999, %v440_v20  ;;  %v5320_v5 = vld [vmem:[#allocation9 + $0x1f0] sm:$0xff]  ;;  %1206 = vst [vmem:[#allocation11 + $0x1c8] sm:$0xff] %v1014_v13  ;;  %v1015_v59 = vadd.f32 %v7108_v50, %v631_v39  ;;  %v7110_v22 = vld [vmem:[#allocation131_spill] sm:$0xff] }
  0xfc   :  { %1208 = vst [vmem:[#allocation11 + $0x1d8] sm:$0xff] %v1016_v34  ;;  %v633_v7 = vmul.f32 0.999, %v5318_v51  ;;  %v635_v31 = vmul.f32 0.999, %v5320_v5  ;;  %v7109_v35 = vld [vmem:[#allocation129_spill] sm:$0xff]  ;;  %3071 = vmatpush1.bf16.msra.mxu0 %v5050_v60  ;;  %3187 = vmatpush1.bf16.msra.mxu1 %v3186_v63 }
  0xfd   :  { %1205 = vst [vmem:[#allocation11 + $0x1c0] sm:$0xff] %v1013_v11  ;;  %v1018_v15 = vadd.f32 %v7109_v35, %v634_v36  ;;  %v1020_v55 = vadd.f32 %v7110_v22, %v636_v53  ;;  %v7111_v44 = vld [vmem:[#allocation124_spill] sm:$0xff]  ;;  %v5334_v6 = vld [vmem:[#allocation9 + $0x218] sm:$0xff]  ;;  %1207 = vst [vmem:[#allocation11 + $0x1d0] sm:$0xff] %v1015_v59  ;;  %3073 = vmatprep.subr.bf16.mxu0 %v5063_v12  ;;  %v5348_v11 = vpack.c.bf16 %v5204_v61, %v5199_v27 }
  0xfe   :  { %v5330_v42 = vrot.slane %v5310_v57, %v7111_v44  ;;  %v5332_v13 = vld [vmem:[#allocation9 + $0x208] sm:$0xff]  ;;  %v7114_v14 = vld [vmem:[#allocation133_spill] sm:$0xff]  ;;  %v640_v10 = vmul.f32 0.999, %v5334_v6  ;;  %v5341_v20 = vld [vmem:[#allocation9 + $0x200] sm:$0xff]  ;;  %3189 = vmatprep.subr.bf16.mxu1 %v3188_v8  ;;  %v5391_v8 = vpack.c.bf16 %v5227_v41, %v5225_v1 }
  0xff   :  { %v7113_v26 = vld [vmem:[#allocation132_spill] sm:$0xff]  ;;  %v1019_v34 = vadd.f32 %v7114_v14, %v635_v31  ;;  %v638_v39 = vmul.f32 0.999, %v5332_v13  ;;  %v5343_v0 = vld [vmem:[#allocation9 + $0x210] sm:$0xff]  ;;  %7115 = vst [vmem:[#allocation104_spill] sm:$0xff] %v5348_v11  ;;  %v5350_v58 = vld [vmem:[#allocation6 + $0x5b8] sm:$0xff] }
 0x100   :  { %7112 = vst [vmem:[#allocation103_spill] sm:$0xff] %v5330_v42  ;;  %v1017_v18 = vadd.f32 %v7113_v26, %v633_v7  ;;  %1210 = vst [vmem:[#allocation11 + $0x1e8] sm:$0xff] %v1018_v15  ;;  %v5354_v36 = vcombine.high %v5330_v42, %v5330_v42  ;;  %v637_v53 = vmul.f32 0.999, %v5341_v20  ;;  %v639_v50 = vmul.f32 0.999, %v5343_v0  ;;  %3075 = vmatpush1.bf16.msra.mxu0 %v5076_v30 }
 0x101   :  { %1212 = vst [vmem:[#allocation11 + $0x1f8] sm:$0xff] %v1020_v55  ;;  %v5358_v59 = vld [vmem:[#allocation9 + $0x228] sm:$0xff]  ;;  %v5361_v7 = vmul.f32 0.001, %v5350_v58  ;;  %1211 = vst [vmem:[#allocation11 + $0x1f0] sm:$0xff] %v1019_v34  ;;  %v7117_v27 = vld [vmem:[#allocation134_spill] sm:$0xff]  ;;  %v3190_v55 = vpack.c.bf16 %v5320_v5, %v5318_v51  ;;  %v3192_v51 = vpack.c.bf16 %v5334_v6, %v5332_v13  ;;  %3077 = vmatprep.subr.bf16.mxu0 %v5097_v4 }
 0x102   :  { %1209 = vst [vmem:[#allocation11 + $0x1e0] sm:$0xff] %v1017_v18  ;;  %v1022_v61 = vadd.f32 %v7117_v27, %v638_v39  ;;  %v7118_v31 = vld [vmem:[#allocation135_spill] sm:$0xff]  ;;  %v5365_v15 = vld [vmem:[#allocation9 + $0x238] sm:$0xff]  ;;  %v642_v22 = vmul.f32 0.999, %v5358_v59  ;;  %1718 = vmatprep.mubr.f32.mxu1 %v5354_v36  ;;  %v7119_v26 = vld [vmem:[#allocation137_spill] sm:$0xff] }
 0x103   :  { %7116 = vst [vmem:[#allocation105_spill] sm:$0xff] %v5361_v7  ;;  %v1024_v35 = vadd.f32 %v7118_v31, %v640_v10  ;;  %v1021_v14 = vadd.f32 %v7119_v26, %v637_v53  ;;  %v7120_v12 = vld [vmem:[#allocation138_spill] sm:$0xff]  ;;  %v644_v18 = vmul.f32 0.999, %v5365_v15  ;;  %v5374_v34 = vld [vmem:[#allocation9 + $0x220] sm:$0xff]  ;;  %v5376_v39 = vld [vmem:[#allocation9 + $0x230] sm:$0xff]  ;;  %3191 = vmatpush1.bf16.msra.mxu1 %v3190_v55 }
 0x104   :  { %v1023_v60 = vadd.f32 %v7120_v12, %v639_v50  ;;  %1214 = vst [vmem:[#allocation11 + $0x208] sm:$0xff] %v1022_v61  ;;  %v7121_v5 = vld [vmem:[#allocation140_spill] sm:$0xff]  ;;  %v641_v10 = vmul.f32 0.999, %v5374_v34  ;;  %v643_v12 = vmul.f32 0.999, %v5376_v39  ;;  %3079 = vmatpush1.bf16.msra.mxu0 %v5106_v3  ;;  %3193 = vmatprep.subr.bf16.mxu1 %v3192_v51  ;;  %v5426_v51 = vpack.c.bf16 %v5242_v29, %v5240_v21 }
 0x105   :  { %1216 = vst [vmem:[#allocation11 + $0x218] sm:$0xff] %v1024_v35  ;;  %v1026_v63 = vadd.f32 %v7121_v5, %v642_v22  ;;  %v5384_v53 = vld [vmem:[#allocation9 + $0x248] sm:$0xff]  ;;  %v5386_v50 = vld [vmem:[#allocation9 + $0x258] sm:$0xff]  ;;  %7122 = vst [vmem:[#allocation107_spill] sm:$0xff] %v5391_v8  ;;  %3081 = vmatprep.subr.bf16.mxu0 %v5129_v49 }
 0x106   :  { %1213 = vst [vmem:[#allocation11 + $0x200] sm:$0xff] %v1021_v14  ;;  %1215 = vst [vmem:[#allocation11 + $0x210] sm:$0xff] %v1023_v60  ;;  %v7123_v27 = vld [vmem:[#allocation141_spill] sm:$0xff]  ;;  %v646_v6 = vmul.f32 0.999, %v5384_v53  ;;  %v5396_v31 = vld [vmem:[#allocation9 + $0x240] sm:$0xff]  ;;  %v3194_v14 = vpack.c.bf16 %v5343_v0, %v5341_v20  ;;  %1719 = vmatmul.mubr.f32.vlgmr.msra.gmra.mrb[0].mxu1 %v5330_v42 }
 0x107   :  { %v1028_v13 = vadd.f32 %v7123_v27, %v644_v18  ;;  %v648_v61 = vmul.f32 0.999, %v5386_v50  ;;  %v5398_v35 = vld [vmem:[#allocation9 + $0x250] sm:$0xff]  ;;  %1218 = vst [vmem:[#allocation11 + $0x228] sm:$0xff] %v1026_v63  ;;  %v7124_v22 = vld [vmem:[#allocation142_spill] sm:$0xff]  ;;  %v7125_v5 = vld [vmem:[#allocation143_spill] sm:$0xff] }
 0x108   :  { %v1025_v26 = vadd.f32 %v7124_v22, %v641_v10  ;;  %v1027_v4 = vadd.f32 %v7125_v5, %v643_v12  ;;  %v645_v1 = vmul.f32 0.999, %v5396_v31  ;;  %v647_v41 = vmul.f32 0.999, %v5398_v35  ;;  %v5404_v60 = vld [vmem:[#allocation9 + $0x268] sm:$0xff]  ;;  %v7127_v30 = vld [vmem:[#allocation145_spill] sm:$0xff]  ;;  %3195 = vmatpush1.bf16.msra.mxu1 %v3194_v14  ;;  %3083 = vmatpush1.bf16.msra.mxu0 %v5138_v43 }
 0x109   :  { %1220 = vst [vmem:[#allocation11 + $0x238] sm:$0xff] %v1028_v13  ;;  %v7126_v18 = vld [vmem:[#allocation144_spill] sm:$0xff]  ;;  %v1032_v37 = vadd.f32 %v7127_v30, %v648_v61  ;;  %v5410_v63 = vld [vmem:[#allocation9 + $0x278] sm:$0xff]  ;;  %v650_v10 = vmul.f32 0.999, %v5404_v60  ;;  %v3196_v12 = vpack.c.bf16 %v5365_v15, %v5358_v59  ;;  %v7128_v55 = vld [vmem:[#allocation147_spill] sm:$0xff]  ;;  %3085 = vmatprep.subr.bf16.mxu0 %v5142_v46 }
 0x10a   :  { %v1030_v27 = vadd.f32 %v7126_v18, %v646_v6  ;;  %1217 = vst [vmem:[#allocation11 + $0x220] sm:$0xff] %v1025_v26  ;;  %1219 = vst [vmem:[#allocation11 + $0x230] sm:$0xff] %v1027_v4  ;;  %v1029_v22 = vadd.f32 %v7128_v55, %v645_v1  ;;  %v7129_v20 = vld [vmem:[#allocation148_spill] sm:$0xff]  ;;  %v652_v13 = vmul.f32 0.999, %v5410_v63  ;;  %v5419_v6 = vld [vmem:[#allocation9 + $0x260] sm:$0xff]  ;;  %v3198_v1 = vpack.c.bf16 %v5376_v39, %v5374_v34 }
 0x10b   :  { %v1031_v0 = vadd.f32 %v7129_v20, %v647_v41  ;;  %v5421_v30 = vld [vmem:[#allocation9 + $0x270] sm:$0xff]  ;;  %7130 = vst [vmem:[#allocation108_spill] sm:$0xff] %v5426_v51  ;;  %1224 = vst [vmem:[#allocation11 + $0x258] sm:$0xff] %v1032_v37  ;;  %v7131_v59 = vld [vmem:[#allocation150_spill] sm:$0xff]  ;;  %v649_v15 = vmul.f32 0.999, %v5419_v6  ;;  %3197 = vmatprep.subr.bf16.mxu1 %v3196_v12 }
 0x10c   :  { %1222 = vst [vmem:[#allocation11 + $0x248] sm:$0xff] %v1030_v27  ;;  %v1034_v4 = vadd.f32 %v7131_v59, %v650_v10  ;;  %v651_v61 = vmul.f32 0.999, %v5421_v30  ;;  %v5431_v26 = vld [vmem:[#allocation9 + $0x288] sm:$0xff]  ;;  %v5433_v5 = vld [vmem:[#allocation9 + $0x298] sm:$0xff]  ;;  %1221 = vst [vmem:[#allocation11 + $0x240] sm:$0xff] %v1029_v22  ;;  %3199 = vmatpush1.bf16.msra.mxu1 %v3198_v1  ;;  %3087 = vmatpush1.bf16.msra.mxu0 %v5149_v56 }
 0x10d   :  { %1223 = vst [vmem:[#allocation11 + $0x250] sm:$0xff] %v1031_v0  ;;  %v7132_v21 = vld [vmem:[#allocation151_spill] sm:$0xff]  ;;  %v654_v37 = vmul.f32 0.999, %v5431_v26  ;;  %v656_v41 = vmul.f32 0.999, %v5433_v5  ;;  %3089 = vmatprep.subr.bf16.mxu0 %v5163_v23 }
 0x10e   :  { %v1036_v29 = vadd.f32 %v7132_v21, %v652_v13  ;;  %v5441_v18 = vld [vmem:[#allocation9 + $0x280] sm:$0xff]  ;;  %v5443_v27 = vld [vmem:[#allocation9 + $0x290] sm:$0xff]  ;;  %1226 = vst [vmem:[#allocation11 + $0x268] sm:$0xff] %v1034_v4  ;;  %v7133_v10 = vld [vmem:[#allocation152_spill] sm:$0xff]  ;;  %v3200_v13 = vpack.c.bf16 %v5386_v50, %v5384_v53 }
 0x10f   :  { %v1033_v55 = vadd.f32 %v7133_v10, %v649_v15  ;;  %v7134_v20 = vld [vmem:[#allocation153_spill] sm:$0xff]  ;;  %v653_v34 = vmul.f32 0.999, %v5441_v18  ;;  %v655_v39 = vmul.f32 0.999, %v5443_v27  ;;  %v5449_v22 = vld [vmem:[#allocation9 + $0x2a8] sm:$0xff] }
 0x110   :  { %v1035_v59 = vadd.f32 %v7134_v20, %v651_v61  ;;  %v5452_v0 = vld [vmem:[#allocation6 + $0x5a0] sm:$0xff]  ;;  %1228 = vst [vmem:[#allocation11 + $0x278] sm:$0xff] %v1036_v29  ;;  %v7135_v14 = vld [vmem:[#allocation154_spill] sm:$0xff]  ;;  %v658_v10 = vmul.f32 0.999, %v5449_v22  ;;  %v7138_v12 = vld [vmem:[#allocation157_spill] sm:$0xff]  ;;  %3201 = vmatprep.subr.bf16.mxu1 %v3200_v13  ;;  %3091 = vmatpush1.bf16.msra.mxu0 %v5167_v38 }
 0x111   :  { %v1038_v4 = vadd.f32 %v7135_v14, %v654_v37  ;;  %v7136_v15 = vld [vmem:[#allocation155_spill] sm:$0xff]  ;;  %v5458_v61 = vld [vmem:[#allocation9 + $0x2b8] sm:$0xff]  ;;  %v5463_v20 = vmul.f32 0.001, %v5452_v0  ;;  %1225 = vst [vmem:[#allocation11 + $0x260] sm:$0xff] %v1033_v55  ;;  %v1037_v43 = vadd.f32 %v7138_v12, %v653_v34  ;;  %v5470_v37 = vld [vmem:[#allocation9 + $0x2b0] sm:$0xff]  ;;  %3093 = vmatprep.subr.bf16.mxu0 %v5177_v45 }
 0x112   :  { %v1040_v21 = vadd.f32 %v7136_v15, %v656_v41  ;;  %1227 = vst [vmem:[#allocation11 + $0x270] sm:$0xff] %v1035_v59  ;;  %v7139_v49 = vld [vmem:[#allocation158_spill] sm:$0xff]  ;;  %v660_v50 = vmul.f32 0.999, %v5458_v61  ;;  %v5468_v29 = vld [vmem:[#allocation9 + $0x2a0] sm:$0xff]  ;;  %v3202_v41 = vpack.c.bf16 %v5398_v35, %v5396_v31  ;;  %v7140_v14 = vld [vmem:[#allocation160_spill] sm:$0xff] }
 0x113   :  { %7137 = vst [vmem:[#allocation110_spill] sm:$0xff] %v5463_v20  ;;  %v1039_v53 = vadd.f32 %v7139_v49, %v655_v39  ;;  %1230 = vst [vmem:[#allocation11 + $0x288] sm:$0xff] %v1038_v4  ;;  %v1042_v15 = vadd.f32 %v7140_v14, %v658_v10  ;;  %v657_v55 = vmul.f32 0.999, %v5468_v29  ;;  %v659_v59 = vmul.f32 0.999, %v5470_v37 }
 0x114   :  { %1232 = vst [vmem:[#allocation11 + $0x298] sm:$0xff] %v1040_v21  ;;  %v5477_v34 = vld [vmem:[#allocation9 + $0x2c8] sm:$0xff]  ;;  %v5479_v49 = vld [vmem:[#allocation9 + $0x2d8] sm:$0xff]  ;;  %v3204_v39 = vpack.c.bf16 %v5410_v63, %v5404_v60  ;;  %1229 = vst [vmem:[#allocation11 + $0x280] sm:$0xff] %v1037_v43  ;;  %3203 = vmatpush1.bf16.msra.mxu1 %v3202_v41  ;;  %v3208_v41 = vpack.c.bf16 %v5433_v5, %v5431_v26  ;;  %3095 = vmatpush1.bf16.msra.mxu0 %v5192_v17 }
 0x115   :  { %1231 = vst [vmem:[#allocation11 + $0x290] sm:$0xff] %v1039_v53  ;;  %v7141_v12 = vld [vmem:[#allocation161_spill] sm:$0xff]  ;;  %v662_v35 = vmul.f32 0.999, %v5477_v34  ;;  %v664_v4 = vmul.f32 0.999, %v5479_v49  ;;  %3097 = vmatprep.subr.bf16.mxu0 %v5211_v19 }
 0x116   :  { %v1044_v31 = vadd.f32 %v7141_v12, %v660_v50  ;;  %v5486_v21 = vld [vmem:[#allocation9 + $0x2c0] sm:$0xff]  ;;  %v5488_v10 = vld [vmem:[#allocation9 + $0x2d0] sm:$0xff]  ;;  %1234 = vst [vmem:[#allocation11 + $0x2a8] sm:$0xff] %v1042_v15  ;;  %v7142_v1 = vld [vmem:[#allocation162_spill] sm:$0xff]  ;;  %3205 = vmatprep.subr.bf16.mxu1 %v3204_v39 }
 0x117   :  { %v5491_v14 = vld [vmem:[#allocation6 + $0x5b0] sm:$0xff]  ;;  %v1041_v60 = vadd.f32 %v7142_v1, %v657_v55  ;;  %v7143_v43 = vld [vmem:[#allocation163_spill] sm:$0xff]  ;;  %v661_v53 = vmul.f32 0.999, %v5486_v21  ;;  %v663_v50 = vmul.f32 0.999, %v5488_v10 }
 0x118   :  { %v1043_v63 = vadd.f32 %v7143_v43, %v659_v59  ;;  %v5497_v12 = vld [vmem:[#allocation9 + $0x2e8] sm:$0xff]  ;;  %v5501_v46 = vmul.f32 0.001, %v5491_v14  ;;  %1236 = vst [vmem:[#allocation11 + $0x2b8] sm:$0xff] %v1044_v31  ;;  %v7146_v3 = vld [vmem:[#allocation165_spill] sm:$0xff]  ;;  %v5507_v1 = vld [vmem:[#allocation9 + $0x2f8] sm:$0xff]  ;;  %3099 = vmatpush1.bf16.msra.mxu0 %v5223_v62 }
 0x119   :  { %v5503_v56 = vld [vmem:[#allocation6 + $0x5c8] sm:$0xff]  ;;  %v1048_v55 = vadd.f32 %v7146_v3, %v664_v4  ;;  %v666_v59 = vmul.f32 0.999, %v5497_v12  ;;  %1233 = vst [vmem:[#allocation11 + $0x2a0] sm:$0xff] %v1041_v60  ;;  %v7148_v23 = vld [vmem:[#allocation167_spill] sm:$0xff]  ;;  %v3206_v3 = vpack.c.bf16 %v5421_v30, %v5419_v6  ;;  %v7150_v4 = vld [vmem:[#allocation170_spill] sm:$0xff]  ;;  %3101 = vmatprep.subr.bf16.mxu0 %v5235_v40 }
 0x11a   :  { %7144 = vst [vmem:[#allocation111_spill] sm:$0xff] %v5501_v46  ;;  %v7145_v13 = vld [vmem:[#allocation164_spill] sm:$0xff]  ;;  %v5511_v43 = vmul.f32 0.001, %v5503_v56  ;;  %1235 = vst [vmem:[#allocation11 + $0x2b0] sm:$0xff] %v1043_v63  ;;  %v1045_v24 = vadd.f32 %v7148_v23, %v661_v53  ;;  %v5516_v31 = vld [vmem:[#allocation9 + $0x2e0] sm:$0xff] }
 0x11b   :  { %v1046_v15 = vadd.f32 %v7145_v13, %v662_v35  ;;  %v7149_v28 = vld [vmem:[#allocation168_spill] sm:$0xff]  ;;  %v668_v42 = vmul.f32 0.999, %v5507_v1  ;;  %v5518_v35 = vld [vmem:[#allocation9 + $0x2f0] sm:$0xff]  ;;  %1240 = vst [vmem:[#allocation11 + $0x2d8] sm:$0xff] %v1048_v55  ;;  %v1050_v13 = vadd.f32 %v7150_v4, %v666_v59  ;;  %v7151_v6 = vld [vmem:[#allocation171_spill] sm:$0xff]  ;;  %3207 = vmatpush1.bf16.msra.mxu1 %v3206_v3 }
 0x11c   :  { %7147 = vst [vmem:[#allocation112_spill] sm:$0xff] %v5511_v43  ;;  %v1047_v54 = vadd.f32 %v7149_v28, %v663_v50  ;;  %v665_v60 = vmul.f32 0.999, %v5516_v31  ;;  %v667_v23 = vmul.f32 0.999, %v5518_v35  ;;  %v5525_v63 = vld [vmem:[#allocation9 + $0x308] sm:$0xff]  ;;  %3209 = vmatprep.subr.bf16.mxu1 %v3208_v41  ;;  %v5578_v41 = vpack.c.bf16 %v5350_v58, %v5253_v47  ;;  %3103 = vmatpush1.bf16.msra.mxu0 %v5248_v48 }
 0x11d   :  { %1238 = vst [vmem:[#allocation11 + $0x2c8] sm:$0xff] %v1046_v15  ;;  %v5527_v28 = vld [vmem:[#allocation9 + $0x318] sm:$0xff]  ;;  %1237 = vst [vmem:[#allocation11 + $0x2c0] sm:$0xff] %v1045_v24  ;;  %v1052_v30 = vadd.f32 %v7151_v6, %v668_v42  ;;  %v670_v53 = vmul.f32 0.999, %v5525_v63  ;;  %v5535_v15 = vld [vmem:[#allocation9 + $0x300] sm:$0xff]  ;;  %3105 = vmatprep.subr.bf16.mxu0 %v5260_v33 }
 0x11e   :  { %1239 = vst [vmem:[#allocation11 + $0x2d0] sm:$0xff] %v1047_v54  ;;  %v672_v50 = vmul.f32 0.999, %v5527_v28  ;;  %v5537_v55 = vld [vmem:[#allocation9 + $0x310] sm:$0xff]  ;;  %v5540_v59 = vld [vmem:[#allocation6 + $0x5d8] sm:$0xff]  ;;  %1242 = vst [vmem:[#allocation11 + $0x2e8] sm:$0xff] %v1050_v13 }
 0x11f   :  { %v7152_v39 = vld [vmem:[#allocation172_spill] sm:$0xff]  ;;  %v7153_v26 = vld [vmem:[#allocation173_spill] sm:$0xff]  ;;  %v669_v54 = vmul.f32 0.999, %v5535_v15  ;;  %v671_v42 = vmul.f32 0.999, %v5537_v55 }
 0x120   :  { %v1049_v4 = vadd.f32 %v7152_v39, %v665_v60  ;;  %v1051_v24 = vadd.f32 %v7153_v26, %v667_v23  ;;  %v5546_v5 = vld [vmem:[#allocation9 + $0x328] sm:$0xff]  ;;  %v5549_v6 = vmul.f32 0.001, %v5540_v59  ;;  %1244 = vst [vmem:[#allocation11 + $0x2f8] sm:$0xff] %v1052_v30  ;;  %v7155_v38 = vld [vmem:[#allocation174_spill] sm:$0xff]  ;;  %v7156_v45 = vld [vmem:[#allocation175_spill] sm:$0xff]  ;;  %v3210_v60 = vpack.c.bf16 %v5443_v27, %v5441_v18  ;;  %3107 = vmatpush1.bf16.msra.mxu0 %v5271_v2 }
 0x121   :  { %v1054_v43 = vadd.f32 %v7155_v38, %v670_v53  ;;  %v1056_v46 = vadd.f32 %v7156_v45, %v672_v50  ;;  %v5553_v20 = vld [vmem:[#allocation9 + $0x338] sm:$0xff]  ;;  %v674_v13 = vmul.f32 0.999, %v5546_v5  ;;  %v7157_v23 = vld [vmem:[#allocation177_spill] sm:$0xff]  ;;  %v3212_v45 = vpack.c.bf16 %v5458_v61, %v5449_v22  ;;  %v7159_v18 = vld [vmem:[#allocation180_spill] sm:$0xff]  ;;  %7160 = vst [vmem:[#allocation114_spill] sm:$0xff] %v5578_v41  ;;  %3109 = vmatprep.subr.bf16.mxu0 %v5315_v16 }
 0x122   :  { %7154 = vst [vmem:[#allocation113_spill] sm:$0xff] %v5549_v6  ;;  %1241 = vst [vmem:[#allocation11 + $0x2e0] sm:$0xff] %v1049_v4  ;;  %v1053_v39 = vadd.f32 %v7157_v23, %v669_v54  ;;  %v7158_v26 = vld [vmem:[#allocation178_spill] sm:$0xff]  ;;  %v676_v30 = vmul.f32 0.999, %v5553_v20  ;;  %v5561_v6 = vld [vmem:[#allocation9 + $0x320] sm:$0xff]  ;;  %3211 = vmatpush1.bf16.msra.mxu1 %v3210_v60 }
 0x123   :  { %1243 = vst [vmem:[#allocation11 + $0x2f0] sm:$0xff] %v1051_v24  ;;  %v1055_v7 = vadd.f32 %v7158_v26, %v671_v42  ;;  %v5563_v38 = vld [vmem:[#allocation9 + $0x330] sm:$0xff]  ;;  %1246 = vst [vmem:[#allocation11 + $0x308] sm:$0xff] %v1054_v43  ;;  %v1058_v27 = vadd.f32 %v7159_v18, %v674_v13  ;;  %v673_v3 = vmul.f32 0.999, %v5561_v6  ;;  %v5571_v50 = vld [vmem:[#allocation9 + $0x348] sm:$0xff]  ;;  %3213 = vmatprep.subr.bf16.mxu1 %v3212_v45 }
 0x124   :  { %1248 = vst [vmem:[#allocation11 + $0x318] sm:$0xff] %v1056_v46  ;;  %v675_v53 = vmul.f32 0.999, %v5563_v38  ;;  %v5573_v4 = vld [vmem:[#allocation9 + $0x358] sm:$0xff]  ;;  %1245 = vst [vmem:[#allocation11 + $0x300] sm:$0xff] %v1053_v39  ;;  %v7161_v22 = vld [vmem:[#allocation181_spill] sm:$0xff]  ;;  %v3214_v39 = vpack.c.bf16 %v5470_v37, %v5468_v29  ;;  %v5613_v45 = vpack.c.bf16 %v5491_v14, %v5452_v0  ;;  %3111 = vmatpush1.bf16.msra.mxu0 %v5348_v11 }
 0x125   :  { %1247 = vst [vmem:[#allocation11 + $0x310] sm:$0xff] %v1055_v7  ;;  %v1060_v46 = vadd.f32 %v7161_v22, %v676_v30  ;;  %v678_v61 = vmul.f32 0.999, %v5571_v50  ;;  %v680_v43 = vmul.f32 0.999, %v5573_v4  ;;  %v5583_v24 = vld [vmem:[#allocation9 + $0x340] sm:$0xff]  ;;  %3113 = vmatprep.subr.bf16.mxu0 %v5391_v8 }
 0x126   :  { %v5585_v54 = vld [vmem:[#allocation9 + $0x350] sm:$0xff]  ;;  %1250 = vst [vmem:[#allocation11 + $0x328] sm:$0xff] %v1058_v27  ;;  %v7162_v42 = vld [vmem:[#allocation182_spill] sm:$0xff]  ;;  %v7163_v23 = vld [vmem:[#allocation183_spill] sm:$0xff]  ;;  %v677_v47 = vmul.f32 0.999, %v5583_v24  ;;  %3215 = vmatpush1.bf16.msra.mxu1 %v3214_v39 }
 0x127   :  { %v1057_v13 = vadd.f32 %v7162_v42, %v673_v3  ;;  %v1059_v26 = vadd.f32 %v7163_v23, %v675_v53  ;;  %v679_v58 = vmul.f32 0.999, %v5585_v54  ;;  %v5591_v7 = vld [vmem:[#allocation9 + $0x368] sm:$0xff]  ;;  %1252 = vst [vmem:[#allocation11 + $0x338] sm:$0xff] %v1060_v46  ;;  %v7165_v22 = vld [vmem:[#allocation185_spill] sm:$0xff]  ;;  %v5597_v27 = vld [vmem:[#allocation9 + $0x378] sm:$0xff]  ;;  %v3216_v53 = vpack.c.bf16 %v5479_v49, %v5477_v34 }
 0x128   :  { %v7164_v30 = vld [vmem:[#allocation184_spill] sm:$0xff]  ;;  %v1064_v19 = vadd.f32 %v7165_v22, %v680_v43  ;;  %v682_v3 = vmul.f32 0.999, %v5591_v7  ;;  %v7166_v60 = vld [vmem:[#allocation187_spill] sm:$0xff]  ;;  %v684_v46 = vmul.f32 0.999, %v5597_v27  ;;  %3115 = vmatpush1.bf16.msra.mxu0 %v5426_v51 }
 0x129   :  { %v1062_v18 = vadd.f32 %v7164_v30, %v678_v61  ;;  %1249 = vst [vmem:[#allocation11 + $0x320] sm:$0xff] %v1057_v13  ;;  %1251 = vst [vmem:[#allocation11 + $0x330] sm:$0xff] %v1059_v26  ;;  %v1061_v42 = vadd.f32 %v7166_v60, %v677_v47  ;;  %v7167_v29 = vld [vmem:[#allocation188_spill] sm:$0xff]  ;;  %v5606_v61 = vld [vmem:[#allocation9 + $0x360] sm:$0xff]  ;;  %3217 = vmatprep.subr.bf16.mxu1 %v3216_v53  ;;  %3117 = vmatprep.subr.bf16.mxu0 %v5578_v41 }
 0x12a   :  { %v1063_v37 = vadd.f32 %v7167_v29, %v679_v58  ;;  %v5608_v43 = vld [vmem:[#allocation9 + $0x370] sm:$0xff]  ;;  %7168 = vst [vmem:[#allocation115_spill] sm:$0xff] %v5613_v45  ;;  %1256 = vst [vmem:[#allocation11 + $0x358] sm:$0xff] %v1064_v19  ;;  %v7169_v34 = vld [vmem:[#allocation191_spill] sm:$0xff]  ;;  %v681_v13 = vmul.f32 0.999, %v5606_v61  ;;  %v3218_v58 = vpack.c.bf16 %v5488_v10, %v5486_v21 }
 0x12b   :  { %1254 = vst [vmem:[#allocation11 + $0x348] sm:$0xff] %v1062_v18  ;;  %v1066_v49 = vadd.f32 %v7169_v34, %v682_v3  ;;  %v683_v23 = vmul.f32 0.999, %v5608_v43  ;;  %v5618_v26 = vld [vmem:[#allocation9 + $0x388] sm:$0xff]  ;;  %v5620_v47 = vld [vmem:[#allocation9 + $0x398] sm:$0xff]  ;;  %1253 = vst [vmem:[#allocation11 + $0x340] sm:$0xff] %v1061_v42 }
 0x12c   :  { %1255 = vst [vmem:[#allocation11 + $0x350] sm:$0xff] %v1063_v37  ;;  %v7170_v30 = vld [vmem:[#allocation192_spill] sm:$0xff]  ;;  %v686_v14 = vmul.f32 0.999, %v5618_v26  ;;  %v688_v19 = vmul.f32 0.999, %v5620_v47  ;;  %v3220_v37 = vpack.c.bf16 %v5507_v1, %v5497_v12  ;;  %3219 = vmatpush1.bf16.msra.mxu1 %v3218_v58  ;;  %3119 = vmatpush1.bf16.msra.mxu0 %v5613_v45 }
 0x12d   :  { %v1068_v0 = vadd.f32 %v7170_v30, %v684_v46  ;;  %v5627_v18 = vld [vmem:[#allocation9 + $0x380] sm:$0xff]  ;;  %v5629_v22 = vld [vmem:[#allocation9 + $0x390] sm:$0xff]  ;;  %1258 = vst [vmem:[#allocation11 + $0x368] sm:$0xff] %v1066_v49  ;;  %v7172_v29 = vld [vmem:[#allocation194_spill] sm:$0xff] }
 0x12e   :  { %v7171_v3 = vld [vmem:[#allocation193_spill] sm:$0xff]  ;;  %v1067_v34 = vadd.f32 %v7172_v29, %v683_v23  ;;  %v685_v21 = vmul.f32 0.999, %v5627_v18  ;;  %v687_v10 = vmul.f32 0.999, %v5629_v22  ;;  %v5635_v42 = vld [vmem:[#allocation9 + $0x3a8] sm:$0xff]  ;;  %3221 = vmatprep.subr.bf16.mxu1 %v3220_v37 }
 0x12f   :  { %v1065_v60 = vadd.f32 %v7171_v3, %v681_v13  ;;  %1260 = vst [vmem:[#allocation11 + $0x378] sm:$0xff] %v1068_v0  ;;  %v7173_v46 = vld [vmem:[#allocation196_spill] sm:$0xff]  ;;  %v7174_v49 = vld [vmem:[#allocation197_spill] sm:$0xff]  ;;  %v5642_v13 = vld [vmem:[#allocation9 + $0x3b8] sm:$0xff]  ;;  %v690_v23 = vmul.f32 0.999, %v5635_v42 }
 0x130   :  { %v1070_v39 = vadd.f32 %v7173_v46, %v686_v14  ;;  %v1072_v30 = vadd.f32 %v7174_v49, %v688_v19  ;;  %1259 = vst [vmem:[#allocation11 + $0x370] sm:$0xff] %v1067_v34  ;;  %v7175_v53 = vld [vmem:[#allocation200_spill] sm:$0xff]  ;;  %v7176_v48 = vld [vmem:[#allocation201_spill] sm:$0xff]  ;;  %v692_v1 = vmul.f32 0.999, %v5642_v13  ;;  %v5651_v0 = vld [vmem:[#allocation9 + $0x3a0] sm:$0xff]  ;;  %v3222_v19 = vpack.c.bf16 %v5518_v35, %v5516_v31 }
 0x131   :  { %1257 = vst [vmem:[#allocation11 + $0x360] sm:$0xff] %v1065_v60  ;;  %v1069_v29 = vadd.f32 %v7175_v53, %v685_v21  ;;  %v1071_v12 = vadd.f32 %v7176_v48, %v687_v10  ;;  %v5653_v14 = vld [vmem:[#allocation9 + $0x3b0] sm:$0xff]  ;;  %v7177_v46 = vld [vmem:[#allocation204_spill] sm:$0xff]  ;;  %v689_v60 = vmul.f32 0.999, %v5651_v0  ;;  %v5662_v48 = vld [vmem:[#allocation9 + $0x3d8] sm:$0xff]  ;;  %v3224_v10 = vpack.c.bf16 %v5527_v28, %v5525_v63 }
 0x132   :  { %1262 = vst [vmem:[#allocation11 + $0x388] sm:$0xff] %v1070_v39  ;;  %1264 = vst [vmem:[#allocation11 + $0x398] sm:$0xff] %v1072_v30  ;;  %v1074_v49 = vadd.f32 %v7177_v46, %v690_v23  ;;  %v691_v34 = vmul.f32 0.999, %v5653_v14  ;;  %v5660_v21 = vld [vmem:[#allocation9 + $0x3c8] sm:$0xff]  ;;  %v7178_v53 = vld [vmem:[#allocation205_spill] sm:$0xff]  ;;  %3223 = vmatpush1.bf16.msra.mxu1 %v3222_v19 }
 0x133   :  { %1261 = vst [vmem:[#allocation11 + $0x380] sm:$0xff] %v1069_v29  ;;  %1263 = vst [vmem:[#allocation11 + $0x390] sm:$0xff] %v1071_v12  ;;  %v1076_v31 = vadd.f32 %v7178_v53, %v692_v1  ;;  %v694_v35 = vmul.f32 0.999, %v5660_v21  ;;  %v696_v39 = vmul.f32 0.999, %v5662_v48  ;;  %v5683_v1 = vpack.c.bf16 %v5540_v59, %v5503_v56  ;;  %3225 = vmatprep.subr.bf16.mxu1 %v3224_v10 }
 0x134   :  { %v5669_v30 = vld [vmem:[#allocation9 + $0x3c0] sm:$0xff]  ;;  %v5671_v23 = vld [vmem:[#allocation9 + $0x3d0] sm:$0xff]  ;;  %1266 = vst [vmem:[#allocation11 + $0x3a8] sm:$0xff] %v1074_v49  ;;  %v7179_v58 = vld [vmem:[#allocation206_spill] sm:$0xff] }
 0x135   :  { %v1073_v46 = vadd.f32 %v7179_v58, %v689_v60  ;;  %v7180_v3 = vld [vmem:[#allocation207_spill] sm:$0xff]  ;;  %v693_v28 = vmul.f32 0.999, %v5669_v30  ;;  %v695_v29 = vmul.f32 0.999, %v5671_v23  ;;  %v5678_v12 = vld [vmem:[#allocation9 + $0x3e8] sm:$0xff]  ;;  %v3226_v58 = vpack.c.bf16 %v5537_v55, %v5535_v15  ;;  %3121 = vmatprep.subr.bf16.mxu0 %v5683_v1 }
 0x136   :  { %v1075_v63 = vadd.f32 %v7180_v3, %v691_v34  ;;  %7181 = vst [vmem:[#allocation117_spill] sm:$0xff] %v5683_v1  ;;  %1268 = vst [vmem:[#allocation11 + $0x3b8] sm:$0xff] %v1076_v31  ;;  %v7182_v53 = vld [vmem:[#allocation209_spill] sm:$0xff]  ;;  %v7183_v49 = vld [vmem:[#allocation210_spill] sm:$0xff]  ;;  %v698_v3 = vmul.f32 0.999, %v5678_v12 }
 0x137   :  { %v1078_v37 = vadd.f32 %v7182_v53, %v694_v35  ;;  %v1080_v2 = vadd.f32 %v7183_v49, %v696_v39  ;;  %v5687_v60 = vld [vmem:[#allocation9 + $0x3f8] sm:$0xff]  ;;  %v5690_v34 = vld [vmem:[#allocation6 + $0x5c0] sm:$0xff]  ;;  %1265 = vst [vmem:[#allocation11 + $0x3a0] sm:$0xff] %v1073_v46  ;;  %v7184_v16 = vld [vmem:[#allocation212_spill] sm:$0xff]  ;;  %v3228_v53 = vpack.c.bf16 %v5553_v20, %v5546_v5  ;;  %3227 = vmatpush1.bf16.msra.mxu1 %v3226_v58 }
 0x138   :  { %1267 = vst [vmem:[#allocation11 + $0x3b0] sm:$0xff] %v1075_v63  ;;  %v1077_v33 = vadd.f32 %v7184_v16, %v693_v28  ;;  %v7185_v56 = vld [vmem:[#allocation213_spill] sm:$0xff]  ;;  %v700_v31 = vmul.f32 0.999, %v5687_v60  ;;  %v5697_v35 = vld [vmem:[#allocation9 + $0x3e0] sm:$0xff]  ;;  %v5706_v46 = vld [vmem:[#allocation9 + $0x408] sm:$0xff]  ;;  %v3232_v58 = vpack.c.bf16 %v5573_v4, %v5571_v50 }
 0x139   :  { %v1079_v59 = vadd.f32 %v7185_v56, %v695_v29  ;;  %v5699_v39 = vld [vmem:[#allocation9 + $0x3f0] sm:$0xff]  ;;  %1270 = vst [vmem:[#allocation11 + $0x3c8] sm:$0xff] %v1078_v37  ;;  %1272 = vst [vmem:[#allocation11 + $0x3d8] sm:$0xff] %v1080_v2  ;;  %v7186_v49 = vld [vmem:[#allocation215_spill] sm:$0xff]  ;;  %v697_v55 = vmul.f32 0.999, %v5697_v35  ;;  %v7188_v2 = vcombine.high %v5310_v57, %v5310_v57  ;;  %3229 = vmatprep.subr.bf16.mxu1 %v3228_v53 }
 0x13a   :  { %v1082_v15 = vadd.f32 %v7186_v49, %v698_v3  ;;  %v699_v16 = vmul.f32 0.999, %v5699_v39  ;;  %v5708_v63 = vld [vmem:[#allocation9 + $0x418] sm:$0xff]  ;;  %v5711_v28 = vld [vmem:[#allocation6 + $0x5d0] sm:$0xff]  ;;  %1269 = vst [vmem:[#allocation11 + $0x3c0] sm:$0xff] %v1077_v33  ;;  %v7187_v20 = vld [vmem:[#allocation216_spill] sm:$0xff] }
 0x13b   :  { %1271 = vst [vmem:[#allocation11 + $0x3d0] sm:$0xff] %v1079_v59  ;;  %v1084_v5 = vadd.f32 %v7187_v20, %v700_v31  ;;  %v5718_v19 = vrot.slane %v7188_v2, %v7111_v44  ;;  %v702_v29 = vmul.f32 0.999, %v5706_v46  ;;  %v704_v37 = vmul.f32 0.999, %v5708_v63  ;;  %v5722_v3 = vld [vmem:[#allocation9 + $0x400] sm:$0xff] }
 0x13c   :  { %v5726_v10 = vmul.f32 0.001, %v5690_v34  ;;  %v5728_v33 = vld [vmem:[#allocation6 + $0x5e8] sm:$0xff]  ;;  %1274 = vst [vmem:[#allocation11 + $0x3e8] sm:$0xff] %v1082_v15  ;;  %v7191_v56 = vld [vmem:[#allocation219_spill] sm:$0xff]  ;;  %v5732_v44 = vld [vmem:[#allocation9 + $0x410] sm:$0xff] }
 0x13d   :  { %7189 = vst [vmem:[#allocation118_spill] sm:$0xff] %v5718_v19  ;;  %v1081_v59 = vadd.f32 %v7191_v56, %v697_v55  ;;  %v7192_v31 = vld [vmem:[#allocation220_spill] sm:$0xff]  ;;  %v701_v49 = vmul.f32 0.999, %v5722_v3  ;;  %v5735_v20 = vld [vmem:[#allocation6 + $0x5f8] sm:$0xff]  ;;  %1276 = vst [vmem:[#allocation11 + $0x3f8] sm:$0xff] %v1084_v5  ;;  %v5739_v2 = vcombine.high %v5718_v19, %v5718_v19  ;;  %v3230_v56 = vpack.c.bf16 %v5563_v38, %v5561_v6 }
 0x13e   :  { %7190 = vst [vmem:[#allocation189_spill] sm:$0xff] %v5726_v10  ;;  %v1083_v57 = vadd.f32 %v7192_v31, %v699_v16  ;;  %v7194_v8 = vld [vmem:[#allocation223_spill] sm:$0xff]  ;;  %v7195_v40 = vld [vmem:[#allocation224_spill] sm:$0xff]  ;;  %v703_v15 = vmul.f32 0.999, %v5732_v44  ;;  %v5746_v16 = vld [vmem:[#allocation9 + $0x438] sm:$0xff] }
 0x13f   :  { %7193 = vst [vmem:[#allocation121_spill] sm:$0xff] %v5739_v2  ;;  %v1086_v11 = vadd.f32 %v7194_v8, %v702_v29  ;;  %v1088_v62 = vadd.f32 %v7195_v40, %v704_v37  ;;  %v5744_v55 = vld [vmem:[#allocation9 + $0x428] sm:$0xff]  ;;  %1273 = vst [vmem:[#allocation11 + $0x3e0] sm:$0xff] %v1081_v59  ;;  %v7196_v5 = vld [vmem:[#allocation227_spill] sm:$0xff]  ;;  %v708_v8 = vmul.f32 0.999, %v5746_v16  ;;  %1789 = vmatprep.mubr.f32.mxu1 %v5739_v2  ;;  %3231 = vmatpush1.bf16.msra.mxu1 %v3230_v56 }
 0x140   :  { %1275 = vst [vmem:[#allocation11 + $0x3f0] sm:$0xff] %v1083_v57  ;;  %v1085_v31 = vadd.f32 %v7196_v5, %v701_v49  ;;  %v706_v17 = vmul.f32 0.999, %v5744_v55  ;;  %v5753_v29 = vld [vmem:[#allocation9 + $0x420] sm:$0xff]  ;;  %v5755_v40 = vld [vmem:[#allocation9 + $0x430] sm:$0xff]  ;;  %v7197_v6 = vld [vmem:[#allocation228_spill] sm:$0xff]  ;;  %v5768_v49 = vpack.c.bf16 %v5711_v28, %v5690_v34  ;;  %3233 = vmatprep.subr.bf16.mxu1 %v3232_v58  ;;  %v3236_v56 = vpack.c.bf16 %v5597_v27, %v5591_v7 }
 0x141   :  { %1278 = vst [vmem:[#allocation11 + $0x408] sm:$0xff] %v1086_v11  ;;  %1280 = vst [vmem:[#allocation11 + $0x418] sm:$0xff] %v1088_v62  ;;  %v1087_v38 = vadd.f32 %v7197_v6, %v703_v15  ;;  %v705_v37 = vmul.f32 0.999, %v5753_v29  ;;  %v707_v59 = vmul.f32 0.999, %v5755_v40  ;;  %v5780_v6 = vpack.c.bf16 %v5735_v20, %v5728_v33 }
 0x142   :  { %v5763_v57 = vld [vmem:[#allocation9 + $0x448] sm:$0xff]  ;;  %7199 = vst [vmem:[#allocation123_spill] sm:$0xff] %v5768_v49  ;;  %v5770_v53 = vld [vmem:[#allocation6 + $0x5e0] sm:$0xff]  ;;  %1277 = vst [vmem:[#allocation11 + $0x400] sm:$0xff] %v1085_v31  ;;  %3123 = vmatpush1.bf16.msra.mxu0 %v5768_v49 }
 0x143   :  { %7198 = vst [vmem:[#allocation122_spill] sm:$0xff] %v5763_v57  ;;  %v7200_v62 = vld [vmem:[#allocation231_spill] sm:$0xff]  ;;  %v7201_v50 = vld [vmem:[#allocation232_spill] sm:$0xff]  ;;  %v5775_v15 = vld [vmem:[#allocation9 + $0x458] sm:$0xff]  ;;  %v710_v5 = vmul.f32 0.999, %v5763_v57  ;;  %3125 = vmatprep.subr.bf16.mxu0 %v5780_v6 }
 0x144   :  { %v1090_v11 = vadd.f32 %v7200_v62, %v706_v17  ;;  %v1092_v4 = vadd.f32 %v7201_v50, %v708_v8  ;;  %7202 = vst [vmem:[#allocation125_spill] sm:$0xff] %v5780_v6  ;;  %v5782_v41 = vld [vmem:[#allocation6 + $0x5f0] sm:$0xff]  ;;  %1279 = vst [vmem:[#allocation11 + $0x410] sm:$0xff] %v1087_v38  ;;  %v7203_v34 = vld [vmem:[#allocation235_spill] sm:$0xff]  ;;  %v712_v31 = vmul.f32 0.999, %v5775_v15  ;;  %v3234_v62 = vpack.c.bf16 %v5585_v54, %v5583_v24 }
 0x145   :  { %v1089_v51 = vadd.f32 %v7203_v34, %v705_v37  ;;  %v7204_v10 = vld [vmem:[#allocation236_spill] sm:$0xff]  ;;  %v5787_v17 = vld [vmem:[#allocation9 + $0x440] sm:$0xff]  ;;  %v5789_v8 = vld [vmem:[#allocation9 + $0x450] sm:$0xff] }
 0x146   :  { %v1091_v2 = vadd.f32 %v7204_v10, %v707_v59  ;;  %7205 = vst [vmem:[#allocation126_spill] sm:$0xff] %v5789_v8  ;;  %1282 = vst [vmem:[#allocation11 + $0x428] sm:$0xff] %v1090_v11  ;;  %v7206_v50 = vld [vmem:[#allocation239_spill] sm:$0xff]  ;;  %v709_v38 = vmul.f32 0.999, %v5787_v17  ;;  %v5796_v34 = vld [vmem:[#allocation9 + $0x468] sm:$0xff]  ;;  %3235 = vmatpush1.bf16.msra.mxu1 %v3234_v62  ;;  %v3240_v62 = vpack.c.bf16 %v5620_v47, %v5618_v26 }
 0x147   :  { %1284 = vst [vmem:[#allocation11 + $0x438] sm:$0xff] %v1092_v4  ;;  %v1094_v57 = vadd.f32 %v7206_v50, %v710_v5  ;;  %v711_v37 = vmul.f32 0.999, %v5789_v8  ;;  %7207 = vst [vmem:[#allocation128_spill] sm:$0xff] %v5796_v34  ;;  %v5798_v10 = vld [vmem:[#allocation9 + $0x478] sm:$0xff]  ;;  %v7209_v24 = vld [vmem:[#allocation240_spill] sm:$0xff]  ;;  %3237 = vmatprep.subr.bf16.mxu1 %v3236_v56 }
 0x148   :  { %7208 = vst [vmem:[#allocation129_spill] sm:$0xff] %v5798_v10  ;;  %1281 = vst [vmem:[#allocation11 + $0x420] sm:$0xff] %v1089_v51  ;;  %v1096_v54 = vadd.f32 %v7209_v24, %v712_v31  ;;  %v714_v59 = vmul.f32 0.999, %v5796_v34  ;;  %v716_v11 = vmul.f32 0.999, %v5798_v10 }
 0x149   :  { %1283 = vst [vmem:[#allocation11 + $0x430] sm:$0xff] %v1091_v2  ;;  %v5806_v4 = vld [vmem:[#allocation9 + $0x460] sm:$0xff]  ;;  %v5808_v5 = vld [vmem:[#allocation9 + $0x470] sm:$0xff]  ;;  %1286 = vst [vmem:[#allocation11 + $0x448] sm:$0xff] %v1094_v57  ;;  %v5819_v2 = vpack.c.bf16 %v5782_v41, %v5770_v53 }
 0x14a   :  { %7210 = vst [vmem:[#allocation131_spill] sm:$0xff] %v5806_v4  ;;  %7211 = vst [vmem:[#allocation124_spill] sm:$0xff] %v5808_v5  ;;  %v7212_v50 = vld [vmem:[#allocation243_spill] sm:$0xff]  ;;  %v7213_v45 = vld [vmem:[#allocation244_spill] sm:$0xff]  ;;  %v713_v51 = vmul.f32 0.999, %v5806_v4 }
 0x14b   :  { %v1093_v58 = vadd.f32 %v7212_v50, %v709_v38  ;;  %v1095_v8 = vadd.f32 %v7213_v45, %v711_v37  ;;  %v715_v7 = vmul.f32 0.999, %v5808_v5  ;;  %v5815_v27 = vld [vmem:[#allocation9 + $0x488] sm:$0xff]  ;;  %7214 = vst [vmem:[#allocation132_spill] sm:$0xff] %v5819_v2  ;;  %1288 = vst [vmem:[#allocation11 + $0x458] sm:$0xff] %v1096_v54  ;;  %v7215_v31 = vld [vmem:[#allocation247_spill] sm:$0xff]  ;;  %v3238_v45 = vpack.c.bf16 %v5608_v43, %v5606_v61 }
 0x14c   :  { %v1098_v24 = vadd.f32 %v7215_v31, %v714_v59  ;;  %v7216_v10 = vld [vmem:[#allocation248_spill] sm:$0xff]  ;;  %v5823_v57 = vld [vmem:[#allocation9 + $0x498] sm:$0xff]  ;;  %v718_v38 = vmul.f32 0.999, %v5815_v27  ;;  %v7217_v37 = vld [vmem:[#allocation251_spill] sm:$0xff]  ;;  %3127 = vmatpush1.bf16.msra.mxu0 %v5819_v2 }
 0x14d   :  { %v1100_v1 = vadd.f32 %v7216_v10, %v716_v11  ;;  %1285 = vst [vmem:[#allocation11 + $0x440] sm:$0xff] %v1093_v58  ;;  %1287 = vst [vmem:[#allocation11 + $0x450] sm:$0xff] %v1095_v8  ;;  %v1097_v50 = vadd.f32 %v7217_v37, %v713_v51  ;;  %v7218_v5 = vld [vmem:[#allocation252_spill] sm:$0xff]  ;;  %v720_v54 = vmul.f32 0.999, %v5823_v57  ;;  %v5831_v34 = vld [vmem:[#allocation9 + $0x480] sm:$0xff]  ;;  %3239 = vmatpush1.bf16.msra.mxu1 %v3238_v45 }
 0x14e   :  { %v1099_v4 = vadd.f32 %v7218_v5, %v715_v7  ;;  %v5833_v59 = vld [vmem:[#allocation9 + $0x490] sm:$0xff]  ;;  %1290 = vst [vmem:[#allocation11 + $0x468] sm:$0xff] %v1098_v24  ;;  %v7219_v61 = vld [vmem:[#allocation254_spill] sm:$0xff]  ;;  %v717_v8 = vmul.f32 0.999, %v5831_v34  ;;  %v5841_v11 = vld [vmem:[#allocation9 + $0x4a8] sm:$0xff]  ;;  %3241 = vmatprep.subr.bf16.mxu1 %v3240_v62 }
 0x14f   :  { %1292 = vst [vmem:[#allocation11 + $0x478] sm:$0xff] %v1100_v1  ;;  %v1102_v43 = vadd.f32 %v7219_v61, %v718_v38  ;;  %v719_v10 = vmul.f32 0.999, %v5833_v59  ;;  %v5843_v5 = vld [vmem:[#allocation9 + $0x4b8] sm:$0xff]  ;;  %1289 = vst [vmem:[#allocation11 + $0x460] sm:$0xff] %v1097_v50  ;;  %v7220_v56 = vld [vmem:[#allocation255_spill] sm:$0xff] }
 0x150   :  { %1291 = vst [vmem:[#allocation11 + $0x470] sm:$0xff] %v1099_v4  ;;  %v1104_v58 = vadd.f32 %v7220_v56, %v720_v54  ;;  %v722_v26 = vmul.f32 0.999, %v5841_v11  ;;  %v724_v47 = vmul.f32 0.999, %v5843_v5  ;;  %v5849_v1 = vld [vmem:[#allocation9 + $0x4a0] sm:$0xff]  ;;  %v3242_v54 = vpack.c.bf16 %v5629_v22, %v5627_v18 }
 0x151   :  { %v5851_v51 = vld [vmem:[#allocation9 + $0x4b0] sm:$0xff]  ;;  %1294 = vst [vmem:[#allocation11 + $0x488] sm:$0xff] %v1102_v43  ;;  %v7221_v7 = vld [vmem:[#allocation256_spill] sm:$0xff]  ;;  %v721_v37 = vmul.f32 0.999, %v5849_v1  ;;  %v5863_v43 = vld [vmem:[#allocation9 + $0x4d8] sm:$0xff] }
 0x152   :  { %v1101_v31 = vadd.f32 %v7221_v7, %v717_v8  ;;  %v7222_v24 = vld [vmem:[#allocation257_spill] sm:$0xff]  ;;  %v723_v50 = vmul.f32 0.999, %v5851_v51  ;;  %v5857_v4 = vld [vmem:[#allocation9 + $0x4c8] sm:$0xff]  ;;  %1296 = vst [vmem:[#allocation11 + $0x498] sm:$0xff] %v1104_v58  ;;  %v1106_v61 = vadd.f32 %v4951_v52, %v722_v26  ;;  %v1108_v56 = vadd.f32 %v4960_v32, %v724_v47  ;;  %v7223_v18 = vld [vmem:[#allocation202_spill] sm:$0xff]  ;;  %3243 = vmatpush1.bf16.msra.mxu1 %v3242_v54 }
 0x153   :  { %v1103_v38 = vadd.f32 %v7222_v24, %v719_v10  ;;  %v726_v8 = vmul.f32 0.999, %v5857_v4  ;;  %v5867_v10 = vmul.f32 0.001, %v5711_v28  ;;  %v1105_v45 = vadd.f32 %v4967_v25, %v721_v37  ;;  %v5873_v58 = vld [vmem:[#allocation9 + $0x4c0] sm:$0xff]  ;;  %v5875_v32 = vld [vmem:[#allocation9 + $0x4d0] sm:$0xff] }
 0x154   :  { %1293 = vst [vmem:[#allocation11 + $0x480] sm:$0xff] %v1101_v31  ;;  %v1107_v22 = vadd.f32 %v7223_v18, %v723_v50  ;;  %v728_v52 = vmul.f32 0.999, %v5863_v43  ;;  %v7224_v26 = vld [vmem:[#allocation51_spill] sm:$0xff]  ;;  %v3244_v28 = vpack.c.bf16 %v5642_v13, %v5635_v42  ;;  %1298 = vst [vmem:[#allocation11 + $0x4a8] sm:$0xff] %v1106_v61  ;;  %v5883_v31 = vld [vmem:[#allocation9 + $0x4e8] sm:$0xff] }
 0x155   :  { %1295 = vst [vmem:[#allocation11 + $0x490] sm:$0xff] %v1103_v38  ;;  %3321 = vmatprep.subr.bf16.mxu0 %v7224_v26  ;;  %1300 = vst [vmem:[#allocation11 + $0x4b8] sm:$0xff] %v1108_v56  ;;  %v7225_v62 = vld [vmem:[#allocation63_spill] sm:$0xff]  ;;  %v725_v7 = vmul.f32 0.999, %v5873_v58  ;;  %v5885_v24 = vld [vmem:[#allocation9 + $0x4f8] sm:$0xff]  ;;  %v3246_v38 = vpack.c.bf16 %v5653_v14, %v5651_v0 }
 0x156   :  { %v1110_v47 = vadd.f32 %v7225_v62, %v726_v8  ;;  %v727_v25 = vmul.f32 0.999, %v5875_v32  ;;  %1297 = vst [vmem:[#allocation11 + $0x4a0] sm:$0xff] %v1105_v45  ;;  %1299 = vst [vmem:[#allocation11 + $0x4b0] sm:$0xff] %v1107_v22  ;;  %v7226_v37 = vld [vmem:[#allocation208_spill] sm:$0xff]  ;;  %v5892_v61 = vld [vmem:[#allocation9 + $0x4e0] sm:$0xff]  ;;  %v3248_v62 = vpack.c.bf16 %v5662_v48, %v5660_v21  ;;  %3245 = vmatprep.subr.bf16.mxu1 %v3244_v28 }
 0x157   :  { %v1112_v50 = vadd.f32 %v7226_v37, %v728_v52  ;;  %v730_v42 = vmul.f32 0.999, %v5883_v31  ;;  %v732_v13 = vmul.f32 0.999, %v5885_v24  ;;  %v5894_v56 = vld [vmem:[#allocation9 + $0x4f0] sm:$0xff]  ;;  %v1109_v0 = vadd.f32 %v5012_v9, %v725_v7  ;;  %v5903_v52 = vld [vmem:[#allocation9 + $0x508] sm:$0xff]  ;;  %3247 = vmatpush1.bf16.msra.mxu1 %v3246_v38 }
 0x158   :  { %v3691_v8 = vld.sshfl [vmem:[%s6845_s0 + $0x8] sm:$0x33 pattern:$0x76325410]  ;;  %1302 = vst [vmem:[#allocation11 + $0x4c8] sm:$0xff] %v1110_v47  ;;  %v7227_v14 = vld [vmem:[#allocation65_spill] sm:$0xff]  ;;  %3249 = vmatprep.subr.bf16.mxu1 %v3248_v62 }
 0x159   :  { %1599 = vmatmul.mubr.f32.vlgmr.msra.gmra.mrb[0].mxu0 %v3691_v8  ;;  %v1111_v45 = vadd.f32 %v7227_v14, %v727_v25  ;;  %v729_v18 = vmul.f32 0.999, %v5892_v61  ;;  %v731_v22 = vmul.f32 0.999, %v5894_v56  ;;  %v7228_v26 = vld [vmem:[#allocation52_spill] sm:$0xff]  ;;  %1304 = vst [vmem:[#allocation11 + $0x4d8] sm:$0xff] %v1112_v50 }
 0x15a   :  { %3323 = vmatpush1.bf16.msra.mxu0 %v7228_v26  ;;  %1933 = vmatprep.mubr.f32.mxu0 %v5354_v36  ;;  %v7229_v54 = vld [vmem:[#allocation69_spill] sm:$0xff]  ;;  %v7230_v37 = vld [vmem:[#allocation71_spill] sm:$0xff]  ;;  %v5911_v7 = vld [vmem:[#allocation9 + $0x518] sm:$0xff]  ;;  %v734_v25 = vmul.f32 0.999, %v5903_v52  ;;  %1301 = vst [vmem:[#allocation11 + $0x4c0] sm:$0xff] %v1109_v0 }
 0x15b   :  { %v1114_v47 = vadd.f32 %v7229_v54, %v730_v42  ;;  %v1116_v9 = vadd.f32 %v7230_v37, %v732_v13  ;;  %v5915_v8 = vmul.f32 0.001, %v5728_v33  ;;  %v7231_v14 = vld [vmem:[#allocation53_spill] sm:$0xff]  ;;  %1303 = vst [vmem:[#allocation11 + $0x4d0] sm:$0xff] %v1111_v45  ;;  %v7232_v36 = vld [vmem:[#allocation260_spill] sm:$0xff]  ;;  %v5921_v42 = vld [vmem:[#allocation9 + $0x500] sm:$0xff]  ;;  %v3250_v54 = vpack.c.bf16 %v5671_v23, %v5669_v30 }
 0x15c   :  { %3325 = vmatprep.subr.bf16.mxu0 %v7231_v14  ;;  %v1113_v26 = vadd.f32 %v7232_v36, %v729_v18  ;;  %v7233_v21 = vld [vmem:[#allocation73_spill] sm:$0xff]  ;;  %v736_v50 = vmul.f32 0.999, %v5911_v7  ;;  %v7234_v33 = vld [vmem:[#allocation75_spill] sm:$0xff]  ;;  %v733_v28 = vmul.f32 0.999, %v5921_v42 }
 0x15d   :  { %v1115_v48 = vadd.f32 %v7233_v21, %v731_v22  ;;  %v5923_v13 = vld [vmem:[#allocation9 + $0x510] sm:$0xff]  ;;  %1306 = vst [vmem:[#allocation11 + $0x4e8] sm:$0xff] %v1114_v47  ;;  %1308 = vst [vmem:[#allocation11 + $0x4f8] sm:$0xff] %v1116_v9  ;;  %v1118_v37 = vadd.f32 %v7234_v33, %v734_v25  ;;  %v5930_v45 = vld [vmem:[#allocation9 + $0x528] sm:$0xff]  ;;  %v3252_v22 = vpack.c.bf16 %v5687_v60, %v5678_v12  ;;  %3251 = vmatpush1.bf16.msra.mxu1 %v3250_v54 }
 0x15e   :  { %v735_v0 = vmul.f32 0.999, %v5923_v13  ;;  %v5932_v18 = vld [vmem:[#allocation9 + $0x538] sm:$0xff]  ;;  %1305 = vst [vmem:[#allocation11 + $0x4e0] sm:$0xff] %v1113_v26  ;;  %v7235_v14 = vld [vmem:[#allocation261_spill] sm:$0xff]  ;;  %v5939_v9 = vld [vmem:[#allocation9 + $0x520] sm:$0xff]  ;;  %v3256_v54 = vpack.c.bf16 %v5708_v63, %v5706_v46 }
 0x15f   :  { %1307 = vst [vmem:[#allocation11 + $0x4f0] sm:$0xff] %v1115_v48  ;;  %v1120_v30 = vadd.f32 %v7235_v14, %v736_v50  ;;  %v738_v23 = vmul.f32 0.999, %v5930_v45  ;;  %v740_v47 = vmul.f32 0.999, %v5932_v18  ;;  %v5941_v25 = vld [vmem:[#allocation9 + $0x530] sm:$0xff]  ;;  %3253 = vmatprep.subr.bf16.mxu1 %v3252_v22 }
 0x160   :  { %v7236_v36 = vld [vmem:[#allocation54_spill] sm:$0xff]  ;;  %1310 = vst [vmem:[#allocation11 + $0x508] sm:$0xff] %v1118_v37  ;;  %v737_v60 = vmul.f32 0.999, %v5939_v9  ;;  %v739_v26 = vmul.f32 0.999, %v5941_v25 }
 0x161   :  { %3327 = vmatpush1.bf16.msra.mxu0 %v7236_v36  ;;  %v7237_v38 = vld [vmem:[#allocation262_spill] sm:$0xff]  ;;  %v5948_v48 = vld [vmem:[#allocation9 + $0x548] sm:$0xff]  ;;  %v5951_v50 = vmul.f32 0.001, %v5735_v20  ;;  %v7239_v14 = vld [vmem:[#allocation55_spill] sm:$0xff]  ;;  %1312 = vst [vmem:[#allocation11 + $0x518] sm:$0xff] %v1120_v30 }
 0x162   :  { %v1117_v21 = vadd.f32 %v7237_v38, %v733_v28  ;;  %v7238_v33 = vld [vmem:[#allocation78_spill] sm:$0xff]  ;;  %3329 = vmatprep.subr.bf16.mxu0 %v7239_v14  ;;  %v7240_v2 = vld [vmem:[#allocation81_spill] sm:$0xff]  ;;  %v7241_v62 = vld [vmem:[#allocation263_spill] sm:$0xff]  ;;  %v742_v28 = vmul.f32 0.999, %v5948_v48 }
 0x163   :  { %v1119_v12 = vadd.f32 %v7238_v33, %v735_v0  ;;  %v1122_v36 = vadd.f32 %v7240_v2, %v738_v23  ;;  %v1124_v37 = vadd.f32 %v7241_v62, %v740_v47  ;;  %v5956_v6 = vld [vmem:[#allocation9 + $0x558] sm:$0xff]  ;;  %v5960_v0 = vmul.f32 0.001, %v5770_v53  ;;  %v7242_v38 = vld [vmem:[#allocation264_spill] sm:$0xff]  ;;  %v7243_v20 = vld [vmem:[#allocation83_spill] sm:$0xff] }
 0x164   :  { %1309 = vst [vmem:[#allocation11 + $0x500] sm:$0xff] %v1117_v21  ;;  %v1121_v33 = vadd.f32 %v7242_v38, %v737_v60  ;;  %v1123_v49 = vadd.f32 %v7243_v20, %v739_v26  ;;  %v744_v14 = vmul.f32 0.999, %v5956_v6  ;;  %v5965_v30 = vld [vmem:[#allocation9 + $0x540] sm:$0xff]  ;;  %v5967_v2 = vld [vmem:[#allocation9 + $0x550] sm:$0xff]  ;;  %v3254_v23 = vpack.c.bf16 %v5699_v39, %v5697_v35  ;;  %v7245_v53 = vld [vmem:[#allocation266_spill] sm:$0xff] }
 0x165   :  { %1311 = vst [vmem:[#allocation11 + $0x510] sm:$0xff] %v1119_v12  ;;  %7244 = vst [vmem:[#allocation133_spill] sm:$0xff] %v5967_v2  ;;  %v1126_v47 = vadd.f32 %v7245_v53, %v742_v28  ;;  %v741_v21 = vmul.f32 0.999, %v5965_v30  ;;  %v743_v12 = vmul.f32 0.999, %v5967_v2 }
 0x166   :  { %1314 = vst [vmem:[#allocation11 + $0x528] sm:$0xff] %v1122_v36  ;;  %1316 = vst [vmem:[#allocation11 + $0x538] sm:$0xff] %v1124_v37  ;;  %v5974_v60 = vld [vmem:[#allocation9 + $0x568] sm:$0xff]  ;;  %v5976_v26 = vld [vmem:[#allocation9 + $0x578] sm:$0xff]  ;;  %3255 = vmatpush1.bf16.msra.mxu1 %v3254_v23  ;;  %v3260_v23 = vpack.c.bf16 %v5746_v16, %v5744_v55 }
 0x167   :  { %7246 = vst [vmem:[#allocation134_spill] sm:$0xff] %v5974_v60  ;;  %7247 = vst [vmem:[#allocation135_spill] sm:$0xff] %v5976_v26  ;;  %v7248_v62 = vld [vmem:[#allocation56_spill] sm:$0xff]  ;;  %v7249_v35 = vld [vmem:[#allocation267_spill] sm:$0xff]  ;;  %v746_v36 = vmul.f32 0.999, %v5974_v60  ;;  %3257 = vmatprep.subr.bf16.mxu1 %v3256_v54 }
 0x168   :  { %3331 = vmatpush1.bf16.msra.mxu0 %v7248_v62  ;;  %1313 = vst [vmem:[#allocation11 + $0x520] sm:$0xff] %v1121_v33  ;;  %1315 = vst [vmem:[#allocation11 + $0x530] sm:$0xff] %v1123_v49  ;;  %v1128_v39 = vadd.f32 %v7249_v35, %v744_v14  ;;  %v748_v37 = vmul.f32 0.999, %v5976_v26  ;;  %v5984_v28 = vld [vmem:[#allocation9 + $0x560] sm:$0xff]  ;;  %v5986_v38 = vld [vmem:[#allocation9 + $0x570] sm:$0xff] }
 0x169   :  { %7250 = vst [vmem:[#allocation137_spill] sm:$0xff] %v5986_v38  ;;  %v7251_v20 = vld [vmem:[#allocation58_spill] sm:$0xff]  ;;  %1318 = vst [vmem:[#allocation11 + $0x548] sm:$0xff] %v1126_v47  ;;  %v7252_v53 = vld [vmem:[#allocation268_spill] sm:$0xff]  ;;  %v745_v46 = vmul.f32 0.999, %v5984_v28  ;;  %1790 = vmatmul.mubr.f32.vlgmr.msra.gmra.mrb[0].mxu1 %v5718_v19 }
 0x16a   :  { %3333 = vmatprep.subr.bf16.mxu0 %v7251_v20  ;;  %v1125_v22 = vadd.f32 %v7252_v53, %v741_v21  ;;  %v7253_v62 = vld [vmem:[#allocation269_spill] sm:$0xff]  ;;  %v747_v63 = vmul.f32 0.999, %v5986_v38  ;;  %v5993_v49 = vld [vmem:[#allocation9 + $0x588] sm:$0xff]  ;;  %v5996_v33 = vmul.f32 0.001, %v5782_v41  ;;  %v3258_v21 = vpack.c.bf16 %v5732_v44, %v5722_v3 }
 0x16b   :  { %v1127_v2 = vadd.f32 %v7253_v62, %v743_v12  ;;  %1320 = vst [vmem:[#allocation11 + $0x558] sm:$0xff] %v1128_v39  ;;  %v7254_v14 = vld [vmem:[#allocation270_spill] sm:$0xff]  ;;  %v7255_v26 = vld [vmem:[#allocation271_spill] sm:$0xff]  ;;  %v750_v47 = vmul.f32 0.999, %v5993_v49  ;;  %v7256_v12 = vld [vmem:[#allocation93_spill] sm:$0xff] }
 0x16c   :  { %v1130_v35 = vadd.f32 %v7254_v14, %v746_v36  ;;  %v1132_v60 = vadd.f32 %v7255_v26, %v748_v37  ;;  %v6000_v20 = vld [vmem:[#allocation9 + $0x598] sm:$0xff]  ;;  %1317 = vst [vmem:[#allocation11 + $0x540] sm:$0xff] %v1125_v22  ;;  %v1129_v53 = vadd.f32 %v7256_v12, %v745_v46  ;;  %v6008_v38 = vld [vmem:[#allocation9 + $0x580] sm:$0xff]  ;;  %v6010_v36 = vld [vmem:[#allocation9 + $0x590] sm:$0xff]  ;;  %3259 = vmatpush1.bf16.msra.mxu1 %v3258_v21 }
 0x16d   :  { %1319 = vst [vmem:[#allocation11 + $0x550] sm:$0xff] %v1127_v2  ;;  %v7257_v62 = vld [vmem:[#allocation94_spill] sm:$0xff]  ;;  %v752_v39 = vmul.f32 0.999, %v6000_v20  ;;  %v7258_v26 = vld [vmem:[#allocation67_spill] sm:$0xff]  ;;  %v7259_v3 = vld [vmem:[#allocation272_spill] sm:$0xff]  ;;  %3261 = vmatprep.subr.bf16.mxu1 %v3260_v23 }
 0x16e   :  { %v1131_v41 = vadd.f32 %v7257_v62, %v747_v63  ;;  %3335 = vmatpush1.bf16.msra.mxu0 %v7258_v26  ;;  %1322 = vst [vmem:[#allocation11 + $0x568] sm:$0xff] %v1130_v35  ;;  %1324 = vst [vmem:[#allocation11 + $0x578] sm:$0xff] %v1132_v60  ;;  %v1134_v44 = vadd.f32 %v7259_v3, %v750_v47  ;;  %v749_v2 = vmul.f32 0.999, %v6008_v38  ;;  %v751_v37 = vmul.f32 0.999, %v6010_v36 }
 0x16f   :  { %v6018_v22 = vld [vmem:[#allocation9 + $0x5a8] sm:$0xff]  ;;  %v6020_v46 = vld [vmem:[#allocation9 + $0x5b8] sm:$0xff]  ;;  %1321 = vst [vmem:[#allocation11 + $0x560] sm:$0xff] %v1129_v53  ;;  %v6026_v60 = vld [vmem:[#allocation9 + $0x5a0] sm:$0xff]  ;;  %v3262_v3 = vpack.c.bf16 %v5755_v40, %v5753_v29 }
 0x170   :  { %7260 = vst [vmem:[#allocation138_spill] sm:$0xff] %v6020_v46  ;;  %v7261_v63 = vld [vmem:[#allocation70_spill] sm:$0xff]  ;;  %1323 = vst [vmem:[#allocation11 + $0x570] sm:$0xff] %v1131_v41  ;;  %v754_v55 = vmul.f32 0.999, %v6018_v22  ;;  %v6028_v35 = vld [vmem:[#allocation9 + $0x5b0] sm:$0xff] }
 0x171   :  { %3337 = vmatprep.subr.bf16.mxu0 %v7261_v63  ;;  %v7262_v54 = vld [vmem:[#allocation274_spill] sm:$0xff]  ;;  %v756_v16 = vmul.f32 0.999, %v6020_v46  ;;  %7263 = vst [vmem:[#allocation140_spill] sm:$0xff] %v6028_v35  ;;  %1326 = vst [vmem:[#allocation11 + $0x588] sm:$0xff] %v1134_v44  ;;  %v7265_v62 = vld [vmem:[#allocation101_spill] sm:$0xff]  ;;  %3263 = vmatpush1.bf16.msra.mxu1 %v3262_v3 }
 0x172   :  { %v1136_v14 = vadd.f32 %v7262_v54, %v752_v39  ;;  %v7264_v47 = vld [vmem:[#allocation98_spill] sm:$0xff]  ;;  %v1135_v26 = vadd.f32 %v7265_v62, %v751_v37  ;;  %v753_v53 = vmul.f32 0.999, %v6026_v60  ;;  %v755_v41 = vmul.f32 0.999, %v6028_v35  ;;  %v6035_v39 = vld [vmem:[#allocation9 + $0x5c8] sm:$0xff] }
 0x173   :  { %v1133_v12 = vadd.f32 %v7264_v47, %v749_v2  ;;  %v7266_v63 = vld [vmem:[#allocation275_spill] sm:$0xff]  ;;  %v7267_v46 = vld [vmem:[#allocation105_spill] sm:$0xff]  ;;  %v6041_v44 = vld [vmem:[#allocation9 + $0x5d8] sm:$0xff]  ;;  %v758_v2 = vmul.f32 0.999, %v6035_v39 }
 0x174   :  { %1328 = vst [vmem:[#allocation11 + $0x598] sm:$0xff] %v1136_v14  ;;  %v1138_v54 = vadd.f32 %v7266_v63, %v754_v55  ;;  %v1140_v19 = vadd.f32 %v7267_v46, %v756_v16  ;;  %v7268_v37 = vld [vmem:[#allocation76_spill] sm:$0xff]  ;;  %v7269_v47 = vld [vmem:[#allocation122_spill] sm:$0xff]  ;;  %1327 = vst [vmem:[#allocation11 + $0x590] sm:$0xff] %v1135_v26  ;;  %v760_v14 = vmul.f32 0.999, %v6041_v44 }
 0x175   :  { %3339 = vmatpush1.bf16.msra.mxu0 %v7268_v37  ;;  %v3264_v62 = vpack.c.bf16 %v5775_v15, %v7269_v47  ;;  %1325 = vst [vmem:[#allocation11 + $0x580] sm:$0xff] %v1133_v12  ;;  %v7270_v21 = vld [vmem:[#allocation110_spill] sm:$0xff]  ;;  %v7271_v29 = vld [vmem:[#allocation111_spill] sm:$0xff]  ;;  %v6052_v46 = vld [vmem:[#allocation9 + $0x5d0] sm:$0xff] }
 0x176   :  { %v1137_v35 = vadd.f32 %v7270_v21, %v753_v53  ;;  %v1139_v40 = vadd.f32 %v7271_v29, %v755_v41  ;;  %v6050_v55 = vld [vmem:[#allocation9 + $0x5c0] sm:$0xff]  ;;  %7272 = vst [vmem:[#allocation141_spill] sm:$0xff] %v6052_v46  ;;  %1330 = vst [vmem:[#allocation11 + $0x5a8] sm:$0xff] %v1138_v54  ;;  %v7274_v23 = vld [vmem:[#allocation112_spill] sm:$0xff]  ;;  %v759_v12 = vmul.f32 0.999, %v6052_v46 }
 0x177   :  { %v7273_v16 = vld [vmem:[#allocation79_spill] sm:$0xff]  ;;  %1332 = vst [vmem:[#allocation11 + $0x5b8] sm:$0xff] %v1140_v19  ;;  %v1142_v63 = vadd.f32 %v7274_v23, %v758_v2  ;;  %v757_v15 = vmul.f32 0.999, %v6050_v55  ;;  %v6058_v26 = vld [vmem:[#allocation9 + $0x5e8] sm:$0xff]  ;;  %v6060_v53 = vld [vmem:[#allocation9 + $0x5f8] sm:$0xff]  ;;  %3265 = vmatprep.subr.bf16.mxu1 %v3264_v62 }
 0x178   :  { %3341 = vmatprep.subr.bf16.mxu0 %v7273_v16  ;;  %7275 = vst [vmem:[#allocation142_spill] sm:$0xff] %v6060_v53  ;;  %v7276_v41 = vld [vmem:[#allocation126_spill] sm:$0xff]  ;;  %1329 = vst [vmem:[#allocation11 + $0x5a0] sm:$0xff] %v1137_v35  ;;  %v7277_v47 = vld [vmem:[#allocation113_spill] sm:$0xff]  ;;  %v762_v54 = vmul.f32 0.999, %v6058_v26  ;;  %v1143_v46 = vadd.f32 %v5867_v10, %v759_v12 }
 0x179   :  { %v3266_v37 = vpack.c.bf16 %v7276_v41, %v5787_v17  ;;  %1331 = vst [vmem:[#allocation11 + $0x5b0] sm:$0xff] %v1139_v40  ;;  %v1144_v21 = vadd.f32 %v7277_v47, %v760_v14  ;;  %v764_v19 = vmul.f32 0.999, %v6060_v53  ;;  %v6067_v2 = vld [vmem:[#allocation9 + $0x5e0] sm:$0xff]  ;;  %v6069_v29 = vld [vmem:[#allocation9 + $0x5f0] sm:$0xff]  ;;  %1334 = vst [vmem:[#allocation11 + $0x5c8] sm:$0xff] %v1142_v63 }
 0x17a   :  { %v7278_v16 = vld [vmem:[#allocation189_spill] sm:$0xff]  ;;  %v761_v17 = vmul.f32 0.999, %v6067_v2  ;;  %v763_v35 = vmul.f32 0.999, %v6069_v29  ;;  %v7279_v40 = vld [vmem:[#allocation86_spill] sm:$0xff]  ;;  %v1146_v53 = vadd.f32 %v5915_v8, %v762_v54 }
 0x17b   :  { %v1141_v23 = vadd.f32 %v7278_v16, %v757_v15  ;;  %3343 = vmatpush1.bf16.msra.mxu0 %v7279_v40  ;;  %v7280_v14 = vld [vmem:[#allocation128_spill] sm:$0xff]  ;;  %v7281_v41 = vld [vmem:[#allocation129_spill] sm:$0xff]  ;;  %1336 = vst [vmem:[#allocation11 + $0x5d8] sm:$0xff] %v1144_v21  ;;  %v1148_v3 = vadd.f32 %v5951_v50, %v764_v19  ;;  %1335 = vst [vmem:[#allocation11 + $0x5d0] sm:$0xff] %v1143_v46  ;;  %3267 = vmatpush1.bf16.msra.mxu1 %v3266_v37 }
 0x17c   :  { %v3268_v47 = vpack.c.bf16 %v7281_v41, %v7280_v14  ;;  %v6083_v63 = vld.sshfl [vmem:[%s7105_s20 + $0x8] sm:$0x33 pattern:$0x76325410]  ;;  %v7282_v10 = vld [vmem:[#allocation89_spill] sm:$0xff]  ;;  %v1145_v15 = vadd.f32 %v5960_v0, %v761_v17  ;;  %v1147_v62 = vadd.f32 %v5996_v33, %v763_v35  ;;  %1338 = vst [vmem:[#allocation11 + $0x5e8] sm:$0xff] %v1146_v53  ;;  %v3272_v0 = vpack.c.bf16 %v5823_v57, %v5815_v27 }
 0x17d   :  { %3345 = vmatprep.subr.bf16.mxu0 %v7282_v10  ;;  %1333 = vst [vmem:[#allocation11 + $0x5c0] sm:$0xff] %v1141_v23  ;;  %v6090_v12 = vcombine.high %v6083_v63, %v6083_v63  ;;  %1340 = vst [vmem:[#allocation11 + $0x5f8] sm:$0xff] %v1148_v3  ;;  %v7283_v8 = vld [vmem:[#allocation131_spill] sm:$0xff]  ;;  %v7284_v50 = vld [vmem:[#allocation124_spill] sm:$0xff]  ;;  %v3274_v46 = vpack.c.bf16 %v5833_v59, %v5831_v34  ;;  %v3276_v37 = vpack.c.bf16 %v5843_v5, %v5841_v11 }
 0x17e   :  { %v3270_v21 = vpack.c.bf16 %v7284_v50, %v7283_v8  ;;  %1337 = vst [vmem:[#allocation11 + $0x5e0] sm:$0xff] %v1145_v15  ;;  %1339 = vst [vmem:[#allocation11 + $0x5f0] sm:$0xff] %v1147_v62  ;;  %v7285_v54 = vld [vmem:[#allocation96_spill] sm:$0xff]  ;;  %3269 = vmatprep.subr.bf16.mxu1 %v3268_v47  ;;  %v7286_v33 = vld [vmem:[#allocation99_spill] sm:$0xff]  ;;  %v3278_v16 = vpack.c.bf16 %v5851_v51, %v5849_v1  ;;  %v3280_v27 = vpack.c.bf16 %v5863_v43, %v5857_v4 }
 0x17f   :  { %1860 = vmatprep.mubr.f32.mxu1 %v6090_v12  ;;  %3347 = vmatpush1.bf16.msra.mxu0 %v7285_v54  ;;  %v7287_v53 = vld [vmem:[#allocation106_spill] sm:$0xff]  ;;  %v7288_v19 = vld [vmem:[#allocation109_spill] sm:$0xff]  ;;  %v7289_v23 = vld [vmem:[#allocation116_spill] sm:$0xff]  ;;  %v3282_v34 = vpack.c.bf16 %v5875_v32, %v5873_v58  ;;  %v3284_v11 = vpack.c.bf16 %v5885_v24, %v5883_v31  ;;  %v3286_v1 = vpack.c.bf16 %v5894_v56, %v5892_v61 }
 0x180   :  { %3349 = vmatprep.subr.bf16.mxu0 %v7286_v33  ;;  %3271 = vmatpush1.bf16.msra.mxu1 %v3270_v21  ;;  %v7290_v57 = vld [vmem:[#allocation120_spill] sm:$0xff]  ;;  %v7291_v59 = vld [vmem:[#allocation127_spill] sm:$0xff]  ;;  %v7292_v5 = vld [vmem:[#allocation130_spill] sm:$0xff]  ;;  %v3288_v4 = vpack.c.bf16 %v5911_v7, %v5903_v52  ;;  %v3290_v58 = vpack.c.bf16 %v5923_v13, %v5921_v42  ;;  %v3292_v31 = vpack.c.bf16 %v5932_v18, %v5930_v45  ;;  %v7315_v21 = vlaneseq }
 0x181   :  { %3273 = vmatprep.subr.bf16.mxu1 %v3272_v0  ;;  %v7293_v51 = vld [vmem:[#allocation136_spill] sm:$0xff]  ;;  %v7294_v43 = vld [vmem:[#allocation139_spill] sm:$0xff]  ;;  %v7295_v32 = vld [vmem:[#allocation146_spill] sm:$0xff]  ;;  %v3294_v61 = vpack.c.bf16 %v5941_v25, %v5939_v9  ;;  %v3296_v52 = vpack.c.bf16 %v5956_v6, %v5948_v48  ;;  %v3304_v6 = vpack.c.bf16 %v6000_v20, %v5993_v49 }
 0x182   :  { %v7296_v24 = vld [vmem:[#allocation149_spill] sm:$0xff]  ;;  %v7297_v56 = vld [vmem:[#allocation156_spill] sm:$0xff]  ;;  %v7298_v7 = vld [vmem:[#allocation159_spill] sm:$0xff]  ;;  %vm1343_vm0 = vcmp.lt.s32.totalorder %v7315_v21, 256 }
 0x183   :  { %3351 = vmatpush1.bf16.msra.mxu0 %v7287_v53  ;;  %v7299_v42 = vld [vmem:[#allocation133_spill] sm:$0xff]  ;;  %v7300_v17 = vld [vmem:[#allocation166_spill] sm:$0xff]  ;;  %v7302_v18 = vld [vmem:[#allocation135_spill] sm:$0xff] }
 0x184   :  { %3353 = vmatprep.subr.bf16.mxu0 %v7288_v19  ;;  %3275 = vmatpush1.bf16.msra.mxu1 %v3274_v46  ;;  %v3298_v13 = vpack.c.bf16 %v7299_v42, %v5965_v30  ;;  %v7301_v45 = vld [vmem:[#allocation134_spill] sm:$0xff]  ;;  %v7303_v40 = vld [vmem:[#allocation169_spill] sm:$0xff]  ;;  %v7305_v14 = vld [vmem:[#allocation176_spill] sm:$0xff]  ;;  %v3306_v30 = vpack.c.bf16 %v6010_v36, %v6008_v38 }
 0x185   :  { %3277 = vmatprep.subr.bf16.mxu1 %v3276_v37  ;;  %v3300_v35 = vpack.c.bf16 %v7302_v18, %v7301_v45  ;;  %v7304_v9 = vld [vmem:[#allocation137_spill] sm:$0xff]  ;;  %v7306_v48 = vld [vmem:[#allocation179_spill] sm:$0xff]  ;;  %v7307_v41 = vld [vmem:[#allocation186_spill] sm:$0xff]  ;;  %v3318_v37 = vpack.c.bf16 %v6069_v29, %v6067_v2 }
 0x186   :  { %v3302_v25 = vpack.c.bf16 %v7304_v9, %v5984_v28  ;;  %v7308_v47 = vld [vmem:[#allocation190_spill] sm:$0xff]  ;;  %v7310_v10 = vld [vmem:[#allocation103_spill] sm:$0xff]  ;;  %v7311_v15 = vld [vmem:[#allocation140_spill] sm:$0xff] }
 0x187   :  { %3355 = vmatpush1.bf16.msra.mxu0 %v7289_v23  ;;  %v7309_v3 = vld [vmem:[#allocation138_spill] sm:$0xff]  ;;  %v3310_v49 = vpack.c.bf16 %v7311_v15, %v6026_v60  ;;  %v7312_v36 = vld [vmem:[#allocation199_spill] sm:$0xff]  ;;  %v7313_v62 = vld [vmem:[#allocation121_spill] sm:$0xff] }
 0x188   :  { %3357 = vmatprep.subr.bf16.mxu0 %v7290_v57  ;;  %3279 = vmatpush1.bf16.msra.mxu1 %v3278_v16  ;;  %v3308_v28 = vpack.c.bf16 %v7309_v3, %v6018_v22  ;;  %v6159_v20 = vld [vmem:[%s6598_s4] sm:$0x3]  ;;  %v3312_v22 = vpack.c.bf16 %v6041_v44, %v6035_v39  ;;  %v7314_v60 = vld [vmem:[#allocation203_spill] sm:$0xff]  ;;  %v7316_v0 = vld [vmem:[#allocation141_spill] sm:$0xff] }
 0x189   :  { %3281 = vmatprep.subr.bf16.mxu1 %v3280_v27  ;;  %v569_v38 = vld [vmem:[%s6600_s6] sm:$0x3]  ;;  %v571_v50 = vmul.f32 0.001, %v6159_v20  ;;  %v3314_v33 = vpack.c.bf16 %v7316_v0, %v6050_v55  ;;  %v7317_v46 = vld [vmem:[#allocation211_spill] sm:$0xff]  ;;  %v7320_v19 = vld [vmem:[#allocation217_spill] sm:$0xff] }
 0x18a   :  { %v570_v8 = vmul.f32 0.999, %v569_v38  ;;  %v7318_v53 = vld [vmem:[#allocation142_spill] sm:$0xff]  ;;  %v7322_v16 = vld [vmem:[#allocation221_spill] sm:$0xff]  ;;  %v2133_v42 = vld [vmem:[%s6603_s9 + $0xa8] sm:$0xff] }
 0x18b   :  { %3359 = vmatpush1.bf16.msra.mxu0 %v7291_v59  ;;  %v3316_v39 = vpack.c.bf16 %v7318_v53, %v6058_v26  ;;  %v7319_v44 = vld [vmem:[#allocation214_spill] sm:$0xff]  ;;  %v7324_v23 = vld [vmem:[#allocation225_spill] sm:$0xff]  ;;  %v7339_v3 = vld [vmem:[#allocation195_spill] sm:$0xff] }
 0x18c   :  { %3361 = vmatprep.subr.bf16.mxu0 %v7292_v5  ;;  %3283 = vmatpush1.bf16.msra.mxu1 %v3282_v34  ;;  %v6171_v54 = vadd.f32 %v571_v50, %v570_v8  ;;  %v7321_v55 = vld [vmem:[#allocation218_spill] sm:$0xff]  ;;  %v7326_v57 = vld [vmem:[#allocation229_spill] sm:$0xff]  ;;  %v7349_v50 = vld [vmem:[#allocation68_spill] sm:$0xff] }
 0x18d   :  { %3285 = vmatprep.subr.bf16.mxu1 %v3284_v11  ;;  %v7323_v26 = vld [vmem:[#allocation222_spill] sm:$0xff]  ;;  %v7328_v2 = vld [vmem:[#allocation233_spill] sm:$0xff]  ;;  %v7351_v21 = vld [vmem:[#allocation259_spill] sm:$0xff] }
 0x18e   :  { %1345 = vst.msk [vmem:[%s6609_s15] sm:$0x3] %vm1343_vm0, %v6171_v54  ;;  %v7325_v27 = vld [vmem:[#allocation226_spill] sm:$0xff]  ;;  %v7330_v59 = vld [vmem:[#allocation237_spill] sm:$0xff]  ;;  %v7352_v0 = vld [vmem:[#allocation72_spill] sm:$0xff] }
 0x18f   :  { %3363 = vmatpush1.bf16.msra.mxu0 %v7293_v51  ;;  %v7327_v34 = vld [vmem:[#allocation230_spill] sm:$0xff]  ;;  %v7344_v38 = vld [vmem:[#allocation61_spill] sm:$0xff]  ;;  %v7355_v53 = vld [vmem:[#allocation80_spill] sm:$0xff] }
 0x190   :  { %3365 = vmatprep.subr.bf16.mxu0 %v7294_v43  ;;  %3287 = vmatpush1.bf16.msra.mxu1 %v3286_v1  ;;  %v7329_v29 = vld [vmem:[#allocation234_spill] sm:$0xff]  ;;  %v2129_v1 = vld [vmem:[%s6603_s9 + $0x88] sm:$0xff] }
 0x191   :  { %3289 = vmatprep.subr.bf16.mxu1 %v3288_v4  ;;  %v7331_v11 = vld [vmem:[#allocation238_spill] sm:$0xff]  ;;  %v2113_v43 = vld [vmem:[%s6603_s9 + $0x8] sm:$0xff] }
 0x192   :  { %v2128_v5 = vld [vmem:[%s6603_s9 + $0x80] sm:$0xff]  ;;  %v2135_v9 = vld [vmem:[%s6603_s9 + $0xb8] sm:$0xff] }
 0x193   :  { %3367 = vmatpush1.bf16.msra.mxu0 %v7295_v32  ;;  %v2112_v51 = vld [vmem:[%s6603_s9] sm:$0xff]  ;;  %v3512_v4 = vpack.c.bf16 %v2129_v1, %v2128_v5  ;;  %v2131_v32 = vld [vmem:[%s6603_s9 + $0x98] sm:$0xff]  ;;  %v7369_v5 = vld [vmem:[#allocation276_spill] sm:$0xff] }
 0x194   :  { %3369 = vmatprep.subr.bf16.mxu0 %v7296_v24  ;;  %3291 = vmatpush1.bf16.msra.mxu1 %v3290_v58  ;;  %v2130_v58 = vld [vmem:[%s6603_s9 + $0x90] sm:$0xff]  ;;  %v2116_v18 = vld [vmem:[%s6603_s9 + $0x20] sm:$0xff] }
 0x195   :  { %3293 = vmatprep.subr.bf16.mxu1 %v3292_v31  ;;  %v3514_v31 = vpack.c.bf16 %v2113_v43, %v2112_v51  ;;  %v3516_v24 = vpack.c.bf16 %v2131_v32, %v2130_v58  ;;  %v7342_v15 = vld [vmem:[#allocation198_spill] sm:$0xff]  ;;  %v7371_v51 = vld [vmem:[#allocation104_spill] sm:$0xff]  ;;  %v7375_v32 = vld [vmem:[#allocation115_spill] sm:$0xff] }
 0x196   :  { %v7348_v8 = vld [vmem:[#allocation118_spill] sm:$0xff]  ;;  %v7373_v43 = vld [vmem:[#allocation108_spill] sm:$0xff] }
 0x197   :  { %3371 = vmatpush1.bf16.msra.mxu0 %v7297_v56  ;;  %v2115_v56 = vld [vmem:[%s6603_s9 + $0x18] sm:$0xff] }
 0x198   :  { %3373 = vmatprep.subr.bf16.mxu0 %v7298_v7  ;;  %3295 = vmatpush1.bf16.msra.mxu1 %v3294_v61  ;;  %v2114_v61 = vld [vmem:[%s6603_s9 + $0x10] sm:$0xff]  ;;  %v7370_v1 = vld [vmem:[#allocation102_spill] sm:$0xff] }
 0x199   :  { %3297 = vmatprep.subr.bf16.mxu1 %v3296_v52  ;;  %v2132_v52 = vld [vmem:[%s6603_s9 + $0xa0] sm:$0xff]  ;;  %v7332_v7 = vld [vmem:[#allocation241_spill] sm:$0xff] }
 0x19a   :  { %v3520_v45 = vpack.c.bf16 %v2133_v42, %v2132_v52  ;;  %v7374_v58 = vld [vmem:[#allocation114_spill] sm:$0xff]  ;;  %v7380_v52 = vld [vmem:[#allocation119_spill] sm:$0xff] }
 0x19b   :  { %3375 = vmatpush1.bf16.msra.mxu0 %v7300_v17  ;;  %v3518_v17 = vpack.c.bf16 %v2115_v56, %v2114_v61  ;;  %v7378_v61 = vld [vmem:[#allocation125_spill] sm:$0xff]  ;;  %v7379_v56 = vld [vmem:[#allocation132_spill] sm:$0xff]  ;;  %v1355_v42 = vsub.s32 1, %v7380_v52 }
 0x19c   :  { %3377 = vmatprep.subr.bf16.mxu0 %v7303_v40  ;;  %3299 = vmatpush1.bf16.msra.mxu1 %v3298_v13  ;;  %v7333_v13 = vld [vmem:[#allocation242_spill] sm:$0xff]  ;;  %v2134_v40 = vld [vmem:[%s6603_s9 + $0xb0] sm:$0xff] }
 0x19d   :  { %3301 = vmatprep.subr.bf16.mxu1 %v3300_v35  ;;  %v2117_v35 = vld [vmem:[%s6603_s9 + $0x28] sm:$0xff] }
 0x19f   :  { %3379 = vmatpush1.bf16.msra.mxu0 %v7305_v14  ;;  %v7335_v14 = vld [vmem:[#allocation246_spill] sm:$0xff] }
 0x1a0   :  { %3381 = vmatprep.subr.bf16.mxu0 %v7306_v48  ;;  %3303 = vmatpush1.bf16.msra.mxu1 %v3302_v25  ;;  %v7334_v25 = vld [vmem:[#allocation245_spill] sm:$0xff]  ;;  %v3524_v48 = vpack.c.bf16 %v2135_v9, %v2134_v40 }
 0x1a1   :  { %3305 = vmatprep.subr.bf16.mxu1 %v3304_v6  ;;  %v3522_v6 = vpack.c.bf16 %v2117_v35, %v2116_v18 }
 0x1a3   :  { %3383 = vmatpush1.bf16.msra.mxu0 %v7307_v41  ;;  %v7337_v41 = vld [vmem:[#allocation250_spill] sm:$0xff] }
 0x1a4   :  { %3385 = vmatprep.subr.bf16.mxu0 %v7308_v47  ;;  %3307 = vmatpush1.bf16.msra.mxu1 %v3306_v30  ;;  %v7336_v30 = vld [vmem:[#allocation249_spill] sm:$0xff] }
 0x1a5   :  { %3309 = vmatprep.subr.bf16.mxu1 %v3308_v28  ;;  %v7338_v47 = vld [vmem:[#allocation253_spill] sm:$0xff] }
 0x1a6   :  { %1934 = vmatmul.mubr.f32.vlgmr.msra.gmra.mrb[2].mxu0 %v7310_v10  ;;  %v7340_v28 = vld [vmem:[#allocation57_spill] sm:$0xff]  ;;  %v7341_v10 = vld [vmem:[#allocation59_spill] sm:$0xff] }
 0x1a7   :  { %3387 = vmatpush1.bf16.msra.mxu0 %v7312_v36  ;;  %2004 = vmatprep.mubr.f32.mxu0 %v7313_v62  ;;  %v7345_v36 = vld [vmem:[#allocation62_spill] sm:$0xff]  ;;  %v7346_v62 = vld [vmem:[#allocation64_spill] sm:$0xff] }
 0x1a8   :  { %3389 = vmatprep.subr.bf16.mxu0 %v7314_v60  ;;  %3311 = vmatpush1.bf16.msra.mxu1 %v3310_v49  ;;  %v7343_v49 = vld [vmem:[#allocation60_spill] sm:$0xff]  ;;  %v7350_v60 = vld [vmem:[#allocation258_spill] sm:$0xff] }
 0x1a9   :  { %3313 = vmatprep.subr.bf16.mxu1 %v3312_v22  ;;  %v7347_v22 = vld [vmem:[#allocation66_spill] sm:$0xff] }
 0x1ab   :  { %3391 = vmatpush1.bf16.msra.mxu0 %v7317_v46  ;;  %v7354_v46 = vld [vmem:[#allocation77_spill] sm:$0xff] }
 0x1ac   :  { %3393 = vmatprep.subr.bf16.mxu0 %v7319_v44  ;;  %3315 = vmatpush1.bf16.msra.mxu1 %v3314_v33  ;;  %v7353_v33 = vld [vmem:[#allocation74_spill] sm:$0xff]  ;;  %v7357_v44 = vld [vmem:[#allocation84_spill] sm:$0xff] }
 0x1ad   :  { %3317 = vmatprep.subr.bf16.mxu1 %v3316_v39  ;;  %v7356_v39 = vld [vmem:[#allocation82_spill] sm:$0xff] }
 0x1af   :  { %3395 = vmatpush1.bf16.msra.mxu0 %v7320_v19  ;;  %v7359_v19 = vld [vmem:[#allocation265_spill] sm:$0xff] }
 0x1b0   :  { %3397 = vmatprep.subr.bf16.mxu0 %v7321_v55  ;;  %3319 = vmatpush1.bf16.msra.mxu1 %v3318_v37  ;;  %v7358_v37 = vld [vmem:[#allocation85_spill] sm:$0xff]  ;;  %v7361_v55 = vld [vmem:[#allocation88_spill] sm:$0xff] }
 0x1b1   :  { %3513 = vmatprep.subr.bf16.mxu1 %v3512_v4  ;;  %v7372_v4 = vld [vmem:[#allocation107_spill] sm:$0xff] }
 0x1b3   :  { %3399 = vmatpush1.bf16.msra.mxu0 %v7322_v16  ;;  %1861 = vmatmul.mubr.f32.vlgmr.msra.gmra.mrb[0].mxu1 %v6083_v63  ;;  %v7362_v16 = vld [vmem:[#allocation90_spill] sm:$0xff] }
 0x1b4   :  { %3401 = vmatprep.subr.bf16.mxu0 %v7323_v26  ;;  %3515 = vmatpush3.bf16.msra.mxu1 %v3514_v31  ;;  %v7363_v26 = vld [vmem:[#allocation91_spill] sm:$0xff]  ;;  %v7376_v31 = vld [vmem:[#allocation117_spill] sm:$0xff] }
 0x1b5   :  { %3517 = vmatprep.subr.bf16.mxu1 %v3516_v24  ;;  %v7377_v24 = vld [vmem:[#allocation123_spill] sm:$0xff] }
 0x1b7   :  { %3403 = vmatpush1.bf16.msra.mxu0 %v7324_v23  ;;  %v7364_v23 = vld [vmem:[#allocation92_spill] sm:$0xff] }
 0x1b8   :  { %3405 = vmatprep.subr.bf16.mxu0 %v7325_v27  ;;  %3519 = vmatpush3.bf16.msra.mxu1 %v3518_v17  ;;  %v7365_v27 = vld [vmem:[#allocation95_spill] sm:$0xff]  ;;  %v1356_v17 = vrot.slane %v6159_v20, %v1355_v42 }
 0x1b9   :  { %3521 = vmatprep.subr.bf16.mxu1 %v3520_v45 }
 0x1bb   :  { %3407 = vmatpush1.bf16.msra.mxu0 %v7326_v57  ;;  %v7366_v57 = vld [vmem:[#allocation273_spill] sm:$0xff] }
 0x1bc   :  { %3409 = vmatprep.subr.bf16.mxu0 %v7327_v34  ;;  %3523 = vmatpush3.bf16.msra.mxu1 %v3522_v6  ;;  %v2118_v34 = vld [vmem:[%s6603_s9 + $0x30] sm:$0xff] }
 0x1bd   :  { %3525 = vmatprep.subr.bf16.mxu1 %v3524_v48 }
 0x1bf   :  { %3411 = vmatpush1.bf16.msra.mxu0 %v7328_v2  ;;  %v2119_v2 = vld [vmem:[%s6603_s9 + $0x38] sm:$0xff] }
 0x1c0   :  { %3413 = vmatprep.subr.bf16.mxu0 %v7329_v29  ;;  %v3526_v29 = vpack.c.bf16 %v2119_v2, %v2118_v34 }
 0x1c2   :  { %3527 = vmatpush3.bf16.msra.mxu1 %v3526_v29 }
 0x1c3   :  { %3415 = vmatpush1.bf16.msra.mxu0 %v7330_v59  ;;  %v7367_v59 = vld [vmem:[#allocation97_spill] sm:$0xff] }
 0x1c4   :  { %3417 = vmatprep.subr.bf16.mxu0 %v7331_v11  ;;  %v7368_v11 = vld [vmem:[#allocation100_spill] sm:$0xff] }
 0x1c7   :  { %3419 = vmatpush1.bf16.msra.mxu0 %v7332_v7  ;;  %v1351_v7 = vsub.s32 0, %v7380_v52 }
 0x1c8   :  { %3421 = vmatprep.subr.bf16.mxu0 %v7333_v13 }
 0x1c9   :  { %v1352_v13 = vrot.slane %v6159_v20, %v1351_v7  ;;  %v2137_v20 = vld [vmem:[%s6603_s9 + $0xc8] sm:$0xff] }
 0x1cb   :  { %3423 = vmatpush1.bf16.msra.mxu0 %v7334_v25 }
 0x1cc   :  { %3425 = vmatprep.subr.bf16.mxu0 %v7335_v14 }
 0x1cf   :  { %3427 = vmatpush1.bf16.msra.mxu0 %v7336_v30 }
 0x1d0   :  { %3429 = vmatprep.subr.bf16.mxu0 %v7337_v41  ;;  %v2136_v41 = vld [vmem:[%s6603_s9 + $0xc0] sm:$0xff] }
 0x1d3   :  { %3431 = vmatpush1.bf16.msra.mxu0 %v7338_v47  ;;  %v3528_v47 = vpack.c.bf16 %v2137_v20, %v2136_v41  ;;  %v2231_v41 = vld [vmem:[%s6605_s11 + $0x48] sm:$0xff] }
 0x1d4   :  { %3433 = vmatprep.subr.bf16.mxu0 %v7339_v3  ;;  %v2120_v3 = vld [vmem:[%s6603_s9 + $0x40] sm:$0xff] }
 0x1d5   :  { %3529 = vmatprep.subr.bf16.mxu1 %v3528_v47  ;;  %v2232_v47 = vld [vmem:[%s6605_s11 + $0x50] sm:$0xff] }
 0x1d7   :  { %3435 = vmatpush1.bf16.msra.mxu0 %v7340_v28  ;;  %v2121_v28 = vld [vmem:[%s6603_s9 + $0x48] sm:$0xff] }
 0x1d8   :  { %3437 = vmatprep.subr.bf16.mxu0 %v7341_v10  ;;  %v3530_v10 = vpack.c.bf16 %v2121_v28, %v2120_v3  ;;  %v2233_v3 = vld [vmem:[%s6605_s11 + $0x58] sm:$0xff] }
 0x1d9   :  { %v3560_v28 = vpack.c.bf16 %v2233_v3, %v2232_v47 }
 0x1da   :  { %3531 = vmatpush3.bf16.msra.mxu1 %v3530_v10  ;;  %v2332_v10 = vld [vmem:[%s6601_s7 + $0x80] sm:$0xff] }
 0x1db   :  { %3439 = vmatpush1.bf16.msra.mxu0 %v7342_v15  ;;  %v2138_v15 = vld [vmem:[%s6603_s9 + $0xd0] sm:$0xff] }
 0x1dc   :  { %3441 = vmatprep.subr.bf16.mxu0 %v7343_v49  ;;  %v2139_v49 = vld [vmem:[%s6603_s9 + $0xd8] sm:$0xff] }
 0x1df   :  { %3443 = vmatpush1.bf16.msra.mxu0 %v7344_v38  ;;  %v3532_v38 = vpack.c.bf16 %v2139_v49, %v2138_v15  ;;  %v2333_v15 = vld [vmem:[%s6601_s7 + $0x88] sm:$0xff] }
 0x1e0   :  { %3445 = vmatprep.subr.bf16.mxu0 %v7345_v36  ;;  %v2122_v36 = vld [vmem:[%s6603_s9 + $0x50] sm:$0xff]  ;;  %v6414_v49 = vpack.c.bf16 %v2333_v15, %v2332_v10 }
 0x1e1   :  { %3533 = vmatprep.subr.bf16.mxu1 %v3532_v38  ;;  %v3775_v38 = vmov 0.0  }
 0x1e3   :  { %3447 = vmatpush1.bf16.msra.mxu0 %v7346_v62  ;;  %v2123_v62 = vld [vmem:[%s6603_s9 + $0x58] sm:$0xff] }
 0x1e4   :  { %3449 = vmatprep.subr.bf16.mxu0 %v7347_v22  ;;  %v2140_v22 = vld [vmem:[%s6603_s9 + $0xe0] sm:$0xff] }
 0x1e6   :  { %2005 = vmatmul.mubr.f32.vlgmr.msra.gmra.mrb[2].mxu0 %v7348_v8  ;;  %v3534_v8 = vpack.c.bf16 %v2123_v62, %v2122_v36  ;;  %v2750_v62 = vld [vmem:[%s6604_s10] ss:$0 sm:$0xff] }
 0x1e7   :  { %3451 = vmatpush1.bf16.msra.mxu0 %v7349_v50  ;;  %2075 = vmatprep.mubr.f32.mxu0 %v6090_v12  ;;  %v7360_v12 = vld [vmem:[#allocation87_spill] sm:$0xff] }
 0x1e8   :  { %3453 = vmatprep.subr.bf16.mxu0 %v7350_v60  ;;  %v2141_v50 = vld [vmem:[%s6603_s9 + $0xe8] sm:$0xff]  ;;  %v2124_v60 = vld [vmem:[%s6603_s9 + $0x60] sm:$0xff]  ;;  %3535 = vmatpush3.bf16.msra.mxu1 %v3534_v8 }
 0x1eb   :  { %3455 = vmatpush1.bf16.msra.mxu0 %v7351_v21  ;;  %v2125_v21 = vld [vmem:[%s6603_s9 + $0x68] sm:$0xff] }
 0x1ec   :  { %3457 = vmatprep.subr.bf16.mxu0 %v7352_v0  ;;  %v3536_v0 = vpack.c.bf16 %v2141_v50, %v2140_v22  ;;  %v2316_v50 = vld [vmem:[%s6601_s7] sm:$0xff] }
 0x1ee   :  { %3537 = vmatprep.subr.bf16.mxu1 %v3536_v0  ;;  %v2335_v0 = vld [vmem:[%s6601_s7 + $0x98] sm:$0xff] }
 0x1ef   :  { %3459 = vmatpush1.bf16.msra.mxu0 %v7353_v33  ;;  %v2142_v33 = vld [vmem:[%s6603_s9 + $0xf0] sm:$0xff] }
 0x1f0   :  { %3461 = vmatprep.subr.bf16.mxu0 %v7354_v46  ;;  %v2143_v46 = vld [vmem:[%s6603_s9 + $0xf8] sm:$0xff] }
 0x1f3   :  { %3463 = vmatpush1.bf16.msra.mxu0 %v7355_v53  ;;  %v3538_v53 = vpack.c.bf16 %v2125_v21, %v2124_v60  ;;  %v2317_v60 = vld [vmem:[%s6601_s7 + $0x8] sm:$0xff]  ;;  %v2334_v21 = vld [vmem:[%s6601_s7 + $0x90] sm:$0xff] }
 0x1f4   :  { %3465 = vmatprep.subr.bf16.mxu0 %v7356_v39  ;;  %v3540_v39 = vpack.c.bf16 %v2143_v46, %v2142_v33  ;;  %v6432_v46 = vpack.c.bf16 %v2317_v60, %v2316_v50 }
 0x1f5   :  { %3539 = vmatpush3.bf16.msra.mxu1 %v3538_v53 }
 0x1f6   :  { %3541 = vmatprep.subr.bf16.mxu1 %v3540_v39  ;;  %v6434_v39 = vpack.c.bf16 %v2335_v0, %v2334_v21 }
 0x1f7   :  { %3467 = vmatpush1.bf16.msra.mxu0 %v7357_v44  ;;  %v2126_v44 = vld [vmem:[%s6603_s9 + $0x70] sm:$0xff] }
 0x1f8   :  { %3469 = vmatprep.subr.bf16.mxu0 %v7358_v37  ;;  %v2127_v37 = vld [vmem:[%s6603_s9 + $0x78] sm:$0xff] }
 0x1fb   :  { %3471 = vmatpush1.bf16.msra.mxu0 %v7359_v19  ;;  %v3542_v19 = vpack.c.bf16 %v2127_v37, %v2126_v44  ;;  %v2318_v44 = vld [vmem:[%s6601_s7 + $0x10] sm:$0xff]  ;;  %v2319_v37 = vld [vmem:[%s6601_s7 + $0x18] sm:$0xff] }
 0x1fc   :  { %3473 = vmatprep.subr.bf16.mxu0 %v7360_v12 }
 0x1fd   :  { %3543 = vmatpush3.bf16.msra.mxu1 %v3542_v19  ;;  %v2336_v19 = vld [vmem:[%s6601_s7 + $0xa0] sm:$0xff] }
 0x1ff   :  { %3475 = vmatpush1.bf16.msra.mxu0 %v7361_v55 }
 0x200   :  { %3477 = vmatprep.subr.bf16.mxu0 %v7362_v16 }
 0x203   :  { %3479 = vmatpush1.bf16.msra.mxu0 %v7363_v26 }
 0x204   :  { %3481 = vmatprep.subr.bf16.mxu0 %v7364_v23 }
 0x207   :  { %3483 = vmatpush1.bf16.msra.mxu0 %v7365_v27 }
 0x208   :  { %3485 = vmatprep.subr.bf16.mxu0 %v7366_v57 }
 0x20b   :  { %3487 = vmatpush1.bf16.msra.mxu0 %v7367_v59  ;;  %v2090_v59 = vrot.slane %v6171_v54, %v1351_v7 }
 0x20c   :  { %3489 = vmatprep.subr.bf16.mxu0 %v7368_v11 }
 0x20f   :  { %3491 = vmatpush1.bf16.msra.mxu0 %v7369_v5 }
 0x210   :  { %3493 = vmatprep.subr.bf16.mxu0 %v7370_v1 }
 0x213   :  { %3495 = vmatpush1.bf16.msra.mxu0 %v7371_v51  ;;  %v2094_v51 = vrot.slane %v6171_v54, %v1355_v42  ;;  %v2222_v54 = vld [vmem:[%s6605_s11] sm:$0xff]  ;;  %v2223_v42 = vld [vmem:[%s6605_s11 + $0x8] sm:$0xff] }
 0x214   :  { %3497 = vmatprep.subr.bf16.mxu0 %v7372_v4 }
 0x217   :  { %3499 = vmatpush1.bf16.msra.mxu0 %v7373_v43 }
 0x218   :  { %3501 = vmatprep.subr.bf16.mxu0 %v7374_v58 }
 0x21b   :  { %3503 = vmatpush1.bf16.msra.mxu0 %v7375_v32 }
 0x21c   :  { %3505 = vmatprep.subr.bf16.mxu0 %v7376_v31 }
 0x21f   :  { %3507 = vmatpush1.bf16.msra.mxu0 %v7377_v24 }
 0x220   :  { %3509 = vmatprep.subr.bf16.mxu0 %v7378_v61 }
 0x223   :  { %3511 = vmatpush1.bf16.msra.mxu0 %v7379_v56 }
 0x226   :  { %2076 = vmatmul.mubr.f32.vlgmr.msra.gmra.mrb[2].mxu0 %v6083_v63 }
 0x22c   :  { %v1600_v45 = vpop.f32.mrb[0].mxu0 }
 0x22d   :  { %v3658_v18 = vadd.f32 %v1600_v45, %v1352_v13  ;;  %v1602_v35 = vpop.f32.mrb[1].mxu0  ;;  %v3773_v45 = vmov 0.0|0.0  }
 0x22e   :  { %v3659_v40 = vadd.f32 %v1602_v35, %v1356_v17  ;;  %v2224_v17 = vld [vmem:[%s6605_s11 + $0x10] sm:$0xff]  ;;  %3544 = vmatprep.subr.bf16.mxu1 %v3773_v45  ;;  %v2225_v35 = vld [vmem:[%s6605_s11 + $0x18] sm:$0xff] }
 0x22f   :  { %v1605_v9 = vmax.f32 %v3658_v18, 0.0  ;;  %v3545_v18 = vpack.c.bf16 %v2223_v42, %v2222_v54  ;;  %v2326_v54 = vld [vmem:[%s6601_s7 + $0x50] sm:$0xff]  ;;  %v2327_v42 = vld [vmem:[%s6601_s7 + $0x58] sm:$0xff] }
 0x230   :  { %v1606_v25 = vmax.f32 %v3659_v40, 0.0  ;;  %v3548_v40 = vpack.c.bf16 %v2225_v35, %v2224_v17  ;;  %v2344_v17 = vld [vmem:[%s6601_s7 + $0xe0] sm:$0xff] }
 0x231   :  { %v1607_v14 = vmul.f32 %v1605_v9, %v1605_v9 }
 0x232   :  { %v1608_v6 = vmul.f32 %v1606_v25, %v1606_v25 }
 0x233   :  { %v1610_v63 = vsel %vm1609_vm1, %v1607_v14, 0.0 }
 0x234   :  { %v1611_v48 = vsel %vm1609_vm1, %v1608_v6, 0.0  ;;  %v2228_v6 = vld [vmem:[%s6605_s11 + $0x30] sm:$0xff] }
 0x235   :  { %v1612_v30 = vadd.f32 %v1611_v48, %v1610_v63  ;;  %v2229_v63 = vld [vmem:[%s6605_s11 + $0x38] sm:$0xff] }
 0x236   :  { %v3554_v48 = vpack.c.bf16 %v2229_v63, %v2228_v6 }
 0x237   :  { %1613 = vadd.xlane.f32.xlu0 %v1612_v30  ;;  %v2230_v30 = vld [vmem:[%s6605_s11 + $0x40] sm:$0xff] }
 0x238   :  { %v3557_v20 = vpack.c.bf16 %v2231_v41, %v2230_v30  ;;  %v2331_v30 = vld [vmem:[%s6601_s7 + $0x78] sm:$0xff] }
 0x286   :  { %v1862_v12 = vpop.f32.mrb[0].mxu1 }
 0x287   :  { %v1864_v55 = vpop.f32.mrb[1].mxu1  ;;  %v1867_v2 = vmul.f32 0.999, %v1862_v12  ;;  %v2337_v12 = vld [vmem:[%s6601_s7 + $0xa8] sm:$0xff] }
 0x288   :  { %v1868_v5 = vmul.f32 0.999, %v1864_v55  ;;  %v3568_v55 = vpack.c.bf16 %v2319_v37, %v2318_v44 }
 0x2c4   :  { %v1614_v16 = vpop.xlane.xlu0 %1613 }
 0x2c5   :  { %v1615_v26 = vmax.f32 %v1614_v16, 1e-24  ;;  %v3570_v16 = vpack.c.bf16 %v2337_v12, %v2336_v19 }
 0x2c7   :  { %3683 = vrsqrt.f32 %v1615_v26  ;;  %v2320_v26 = vld [vmem:[%s6601_s7 + $0x20] sm:$0xff] }
 0x2d1   :  { %v3684_v23 = vpop.eup %3683 }
 0x2d2   :  { %v6352_v27 = vmul.f32 %v3684_v23, %v1606_v25  ;;  %v6354_v57 = vmul.f32 %v3684_v23, %v1605_v9  ;;  %v2226_v9 = vld [vmem:[%s6605_s11 + $0x20] sm:$0xff]  ;;  %v2227_v25 = vld [vmem:[%s6605_s11 + $0x28] sm:$0xff] }
 0x2d3   :  { %v3551_v14 = vpack.c.bf16 %v2227_v25, %v2226_v9  ;;  %v2321_v23 = vld [vmem:[%s6601_s7 + $0x28] sm:$0xff]  ;;  %v2346_v25 = vld [vmem:[%s6601_s7 + $0xf0] sm:$0xff] }
 0x2d4   :  { %2215 = vmatprep.mubr.f32.mxu1 %v6352_v27  ;;  %v2329_v9 = vld [vmem:[%s6601_s7 + $0x68] sm:$0xff] }
 0x2d5   :  { %2216 = vmatmul.mubr.f32.vlgmr.msra.gmra.mrb[2].mxu1 %v6354_v57 }
 0x2d6   :  { %3546 = vmatpush3.bf16.msra.mxu1 %v3545_v18  ;;  %2933 = vmatprep.mubr.msk.f32.mxu1 %vm3774_vm2, %v3775_v38  ;;  %v3584_v18 = vpack.c.bf16 %v2327_v42, %v2326_v54 }
 0x2d7   :  { %3547 = vmatprep.subr.bf16.mxu1 %v3773_v45 }
 0x2da   :  { %3549 = vmatpush3.bf16.msra.mxu1 %v3548_v40  ;;  %v2328_v40 = vld [vmem:[%s6601_s7 + $0x60] sm:$0xff] }
 0x2db   :  { %3550 = vmatprep.subr.bf16.mxu1 %v3773_v45  ;;  %v3588_v6 = vpack.c.bf16 %v2329_v9, %v2328_v40 }
 0x2de   :  { %3552 = vmatpush3.bf16.msra.mxu1 %v3551_v14  ;;  %v2347_v14 = vld [vmem:[%s6601_s7 + $0xf8] sm:$0xff] }
 0x2df   :  { %3553 = vmatprep.subr.bf16.mxu1 %v3773_v45  ;;  %v3590_v63 = vpack.c.bf16 %v2347_v14, %v2346_v25 }
 0x2e2   :  { %3555 = vmatpush3.bf16.msra.mxu1 %v3554_v48  ;;  %v2330_v48 = vld [vmem:[%s6601_s7 + $0x70] sm:$0xff] }
 0x2e3   :  { %3556 = vmatprep.subr.bf16.mxu1 %v3773_v45  ;;  %v3592_v41 = vpack.c.bf16 %v2331_v30, %v2330_v48 }
 0x2e6   :  { %3558 = vmatpush3.bf16.msra.mxu1 %v3557_v20 }
 0x2e7   :  { %3559 = vmatprep.subr.bf16.mxu1 %v3773_v45  ;;  %v2345_v45 = vld [vmem:[%s6601_s7 + $0xe8] sm:$0xff] }
 0x2e8   :  { %v3586_v35 = vpack.c.bf16 %v2345_v45, %v2344_v17 }
 0x2ea   :  { %3561 = vmatpush3.bf16.msra.mxu1 %v3560_v28 }
 0x2eb   :  { %3563 = vmatprep.subr.bf16.mxu1 %v6414_v49 }
 0x2f9   :  { %v2077_v34 = vpop.f32.mrb[2].mxu0 }
 0x2fa   :  { %v2082_v29 = vmul.f32 0.001, %v2077_v34  ;;  %v2079_v11 = vpop.f32.mrb[3].mxu0  ;;  %v2338_v34 = vld [vmem:[%s6601_s7 + $0xb0] sm:$0xff] }
 0x2fb   :  { %v2083_v1 = vmul.f32 0.001, %v2079_v11  ;;  %v2323_v11 = vld [vmem:[%s6601_s7 + $0x38] sm:$0xff] }
 0x2fc   :  { %v2084_v4 = vadd.f32 %v2082_v29, %v1867_v2  ;;  %v3572_v2 = vpack.c.bf16 %v2321_v23, %v2320_v26 }
 0x2fd   :  { %v2085_v43 = vadd.f32 %v2083_v1, %v1868_v5  ;;  %v2340_v5 = vld [vmem:[%s6601_s7 + $0xc0] sm:$0xff]  ;;  %v2341_v1 = vld [vmem:[%s6601_s7 + $0xc8] sm:$0xff] }
 0x2fe   :  { %v2097_v58 = vadd.f32 %v2090_v59, %v2084_v4  ;;  %v2322_v59 = vld [vmem:[%s6601_s7 + $0x30] sm:$0xff]  ;;  %v3578_v4 = vpack.c.bf16 %v2341_v1, %v2340_v5 }
 0x2ff   :  { %v2098_v32 = vadd.f32 %v2094_v51, %v2085_v43  ;;  %v3576_v51 = vpack.c.bf16 %v2323_v11, %v2322_v59  ;;  %v2324_v43 = vld [vmem:[%s6601_s7 + $0x40] sm:$0xff]  ;;  %v7384_v11 = vld [vmem:[#allocation20_spill] sm:$0xff]  ;;  %v7385_v1 = vld [vmem:[#allocation37_spill] sm:$0xff] }
 0x300   :  { %v6362_v31 = vmax.f32 %v2097_v58, 0.0  ;;  %v2325_v58 = vld [vmem:[%s6601_s7 + $0x48] sm:$0xff] }
 0x301   :  { %v6364_v24 = vmax.f32 %v2098_v32, 0.0  ;;  %v7383_v59 = vld [vmem:[#allocation19_spill] sm:$0xff] }
 0x302   :  { %v2101_v61 = vmul.f32 %v6362_v31, %v6362_v31  ;;  %v3628_v5 = vpack.c.bf16 %v7384_v11, %v7383_v59 }
 0x303   :  { %v2102_v56 = vmul.f32 %v6364_v24, %v6364_v24 }
 0x304   :  { %v2103_v7 = vsel %vm1609_vm1, %v2101_v61, 0.0  ;;  %v2342_v61 = vld [vmem:[%s6601_s7 + $0xd0] sm:$0xff] }
 0x305   :  { %v2104_v52 = vsel %vm1609_vm1, %v2102_v56, 0.0  ;;  %v2343_v56 = vld [vmem:[%s6601_s7 + $0xd8] sm:$0xff] }
 0x306   :  { %v2105_v13 = vadd.f32 %v2104_v52, %v2103_v7  ;;  %v3580_v7 = vpack.c.bf16 %v2325_v58, %v2324_v43 }
 0x308   :  { %2106 = vadd.xlane.f32.xlu0 %v2105_v13  ;;  %v3582_v13 = vpack.c.bf16 %v2343_v56, %v2342_v61 }
 0x395   :  { %v2107_v32 = vpop.xlane.xlu0 %2106 }
 0x396   :  { %v2108_v52 = vmax.f32 %v2107_v32, 1e-24 }
 0x398   :  { %3685 = vrsqrt.f32 %v2108_v52 }
 0x3a2   :  { %v3686_v20 = vpop.eup %3685 }
 0x3a3   :  { %v2111_v47 = vmul.f32 %v3686_v20, %v6364_v24  ;;  %v2751_v24 = vld [vmem:[%s6606_s12] ss:$0 sm:$0xff] }
 0x3a8   :  { %v2789_v36 = vpop.f32.mrb[2].mxu1 }
 0x3a9   :  { %v2790_v22 = vpop.f32.mrb[3].mxu1 }
 0x3aa   :  { %v2791_v8 = vadd.f32 %v2790_v22, %v2789_v36 }
 0x3ac   :  { %v2218_v33 = vadd.f32 %v2791_v8, %v2750_v62 }
 0x3ae   :  { %v2221_v53 = vmax.f32 %v2218_v33, 0.0 }
 0x3b0   :  { %2934 = vmatmul.mubr.msk.f32.vlgmr.msra.gmra.mrb[4].mxu1 %vm2241_vm3, %v2221_v53 }
 0x3b1   :  { %3565 = vmatpush3.bf16.msra.mxu1 %v6432_v46  ;;  %2419 = vmatprep.mubr.f32.mxu1 %v6352_v27  ;;  %v2339_v27 = vld [vmem:[%s6601_s7 + $0xb8] sm:$0xff] }
 0x3b2   :  { %3567 = vmatprep.subr.bf16.mxu1 %v6434_v39  ;;  %v3574_v29 = vpack.c.bf16 %v2339_v27, %v2338_v34  ;;  %v7381_v27 = vld [vmem:[#allocation35_spill] sm:$0xff] }
 0x3b5   :  { %3569 = vmatpush3.bf16.msra.mxu1 %v3568_v55 }
 0x3b6   :  { %3571 = vmatprep.subr.bf16.mxu1 %v3570_v16 }
 0x3b9   :  { %3573 = vmatpush3.bf16.msra.mxu1 %v3572_v2 }
 0x3ba   :  { %3575 = vmatprep.subr.bf16.mxu1 %v3574_v29 }
 0x3bd   :  { %3577 = vmatpush3.bf16.msra.mxu1 %v3576_v51 }
 0x3be   :  { %3579 = vmatprep.subr.bf16.mxu1 %v3578_v4 }
 0x3c1   :  { %3581 = vmatpush3.bf16.msra.mxu1 %v3580_v7 }
 0x3c2   :  { %3583 = vmatprep.subr.bf16.mxu1 %v3582_v13 }
 0x3c5   :  { %3585 = vmatpush3.bf16.msra.mxu1 %v3584_v18 }
 0x3c6   :  { %3587 = vmatprep.subr.bf16.mxu1 %v3586_v35 }
 0x3c9   :  { %3589 = vmatpush3.bf16.msra.mxu1 %v3588_v6 }
 0x3ca   :  { %3591 = vmatprep.subr.bf16.mxu1 %v3590_v63 }
 0x3cd   :  { %3593 = vmatpush3.bf16.msra.mxu1 %v3592_v41 }
 0x3ce   :  { %3595 = vmatprep.subr.bf16.mxu1 %v6414_v49  ;;  %v2753_v49 = vld [vmem:[%s6602_s8] ss:$0 sm:$0xff] }
 0x3d0   :  { %2420 = vmatmul.mubr.f32.vlgmr.msra.gmra.mrb[6].mxu1 %v6354_v57  ;;  %v2110_v57 = vmul.f32 %v3686_v20, %v6362_v31 }
 0x3d1   :  { %3597 = vmatpush3.bf16.msra.mxu1 %v6432_v46  ;;  %2496 = vmatprep.mubr.f32.mxu1 %v2111_v47 }
 0x3d2   :  { %3599 = vmatprep.subr.bf16.mxu1 %v6434_v39 }
 0x3d5   :  { %3601 = vmatpush3.bf16.msra.mxu1 %v3568_v55 }
 0x3d6   :  { %3603 = vmatprep.subr.bf16.mxu1 %v3570_v16 }
 0x3d9   :  { %3605 = vmatpush3.bf16.msra.mxu1 %v3572_v2  ;;  %v7382_v2 = vld [vmem:[#allocation36_spill] sm:$0xff] }
 0x3da   :  { %3607 = vmatprep.subr.bf16.mxu1 %v3574_v29  ;;  %v3626_v29 = vpack.c.bf16 %v7382_v2, %v7381_v27 }
 0x3dd   :  { %3609 = vmatpush3.bf16.msra.mxu1 %v3576_v51  ;;  %v7386_v51 = vld [vmem:[#allocation38_spill] sm:$0xff] }
 0x3de   :  { %3611 = vmatprep.subr.bf16.mxu1 %v3578_v4  ;;  %v3630_v4 = vpack.c.bf16 %v7386_v51, %v7385_v1 }
 0x3e1   :  { %3613 = vmatpush3.bf16.msra.mxu1 %v3580_v7 }
 0x3e2   :  { %3615 = vmatprep.subr.bf16.mxu1 %v3582_v13 }
 0x3e5   :  { %3617 = vmatpush3.bf16.msra.mxu1 %v3584_v18 }
 0x3e6   :  { %3619 = vmatprep.subr.bf16.mxu1 %v3586_v35 }
 0x3e9   :  { %3621 = vmatpush3.bf16.msra.mxu1 %v3588_v6 }
 0x3ea   :  { %3623 = vmatprep.subr.bf16.mxu1 %v3590_v63 }
 0x3ed   :  { %3625 = vmatpush3.bf16.msra.mxu1 %v3592_v41 }
 0x3f0   :  { %2497 = vmatmul.mubr.f32.vlgmr.msra.gmra.mrb[8].mxu1 %v2110_v57 }
 0x483   :  { %v2311_v3 = vpop.f32.mrb[4].mxu1 }
 0x484   :  { %v2312_v28 = vadd.f32 %v2751_v24, %v2311_v3  ;;  %v2935_v10 = vpop.f32.mrb[5].mxu1 }
 0x486   :  { %2315 = vst [vmem:[%s6611_s17] sm:$0x3] %v2312_v28 }
 0x4a3   :  { %v2837_v15 = vpop.f32.mrb[6].mxu1 }
 0x4a4   :  { %v2838_v38 = vpop.f32.mrb[7].mxu1 }
 0x4a5   :  { %v2839_v36 = vadd.f32 %v2838_v38, %v2837_v15 }
 0x4a7   :  { %v2422_v31 = vadd.f32 %v2839_v36, %v2753_v49 }
 0x4a9   :  { %v2425_v62 = vmul.f32 %v2422_v31, %v2422_v31 }
 0x4ab   :  { %v2426_v22 = vsel %vm1609_vm1, %v2425_v62, 0.0 }
 0x4ac   :  { %2427 = vadd.xlane.f32.xlu1 %v2426_v22 }
 0x4c3   :  { %v2872_v8 = vpop.f32.mrb[8].mxu1 }
 0x4c4   :  { %v2873_v50 = vpop.f32.mrb[9].mxu1 }
 0x4c5   :  { %v2874_v60 = vadd.f32 %v2873_v50, %v2872_v8 }
 0x4c7   :  { %v2499_v21 = vadd.f32 %v2874_v60, %v2753_v49 }
 0x4c9   :  { %v2502_v0 = vmul.f32 %v2499_v21, %v2499_v21 }
 0x4cb   :  { %v2503_v33 = vsel %vm1609_vm1, %v2502_v0, 0.0 }
 0x4cc   :  { %2504 = vadd.xlane.f32.xlu1 %v2503_v33 }
 0x539   :  { %v2428_v46 = vpop.xlane.xlu1 %2427 }
 0x53a   :  { %v2429_v53 = vmax.f32 %v2428_v46, 1e-24 }
 0x53c   :  { %3687 = vrsqrt.f32 %v2429_v53 }
 0x546   :  { %v3688_v37 = vpop.eup %3687 }
 0x547   :  { %v2431_v12 = vmul.f32 %v3688_v37, %v2422_v31 }
 0x549   :  { %2907 = vmatprep.mubr.f32.mxu1 %v2431_v12 }
 0x559   :  { %v2505_v39 = vpop.xlane.xlu1 %2504 }
 0x55a   :  { %v2506_v44 = vmax.f32 %v2505_v39, 1e-24 }
 0x55c   :  { %3689 = vrsqrt.f32 %v2506_v44 }
 0x566   :  { %v3690_v19 = vpop.eup %3689 }
 0x567   :  { %v2508_v55 = vmul.f32 %v3690_v19, %v2499_v21 }
 0x569   :  { %v2509_v16 = vmul.f32 %v2508_v55, %v2431_v12 }
 0x56b   :  { %v2510_v26 = vsel %vm1609_vm1, %v2509_v16, 0.0 }
 0x56c   :  { %2511 = vadd.xlane.f32.xlu0 %v2510_v26 }
 0x5f9   :  { %v2512_v23 = vpop.xlane.xlu0 %2511 }
 0x5fa   :  { %v2513_v34 = vmul.f32 14.285714, %v2512_v23 }
 0x5fc   :  { %2514 = vst [vmem:[%s6610_s16] sm:$0x3] %v2513_v34 }
 0x5fd   :  { %3762 = dma.done.wait [#allocation4], 4096 }
 0x5fe   :  { %3763 = vsyncadd [#allocation4], 4294963200  ;;  %2635 = vst [vmem:[#allocation3] sm:$0x3] %v2508_v55  ;;  %3627 = vmatprep.subr.bf16.mxu1 %v3626_v29  ;;  %s7387_s26 = sld [smem:[#allocation277_spill]]  ;;  %v7388_v43 = vld [vmem:[#allocation21_spill] sm:$0xff] }
 0x5ff   :  { %3629 = vmatpush3.bf16.xpose.msra.mxu1 %v3628_v5  ;;  %v7389_v58 = vld [vmem:[#allocation22_spill] sm:$0xff]  ;;  %v7390_v61 = vld [vmem:[#allocation39_spill] sm:$0xff]  ;;  %v7391_v56 = vld [vmem:[#allocation40_spill] sm:$0xff] }
 0x600   :  { %3631 = vmatprep.subr.bf16.mxu1 %v3630_v4  ;;  %v3632_v32 = vpack.c.bf16 %v7389_v58, %v7388_v43  ;;  %v3634_v7 = vpack.c.bf16 %v7391_v56, %v7390_v61  ;;  %v7392_v13 = vld [vmem:[#allocation23_spill] sm:$0xff]  ;;  %v7393_v54 = vld [vmem:[#allocation24_spill] sm:$0xff]  ;;  %v7394_v17 = vld [vmem:[#allocation41_spill] sm:$0xff] }
 0x601   :  { %v3636_v42 = vpack.c.bf16 %v7393_v54, %v7392_v13  ;;  %v7395_v45 = vld [vmem:[#allocation42_spill] sm:$0xff]  ;;  %v7396_v35 = vld [vmem:[#allocation25_spill] sm:$0xff]  ;;  %v7398_v25 = vld [vmem:[#allocation43_spill] sm:$0xff] }
 0x602   :  { %v3638_v18 = vpack.c.bf16 %v7395_v45, %v7394_v17  ;;  %v7397_v40 = vld [vmem:[#allocation26_spill] sm:$0xff]  ;;  %v7399_v14 = vld [vmem:[#allocation44_spill] sm:$0xff]  ;;  %v7400_v63 = vld [vmem:[#allocation27_spill] sm:$0xff] }
 0x603   :  { %v3640_v9 = vpack.c.bf16 %v7397_v40, %v7396_v35  ;;  %v3642_v6 = vpack.c.bf16 %v7399_v14, %v7398_v25  ;;  %v7401_v48 = vld [vmem:[#allocation28_spill] sm:$0xff]  ;;  %v7402_v41 = vld [vmem:[#allocation45_spill] sm:$0xff]  ;;  %v7403_v20 = vld [vmem:[#allocation46_spill] sm:$0xff] }
 0x604   :  { %s2637_s6 = scalar_lea.vmem %s6612_s18, %s7387_s26  ;;  %v3644_v30 = vpack.c.bf16 %v7401_v48, %v7400_v63  ;;  %v3646_v47 = vpack.c.bf16 %v7403_v20, %v7402_v41  ;;  %v7404_v57 = vld [vmem:[#allocation29_spill] sm:$0xff]  ;;  %v7405_v24 = vld [vmem:[#allocation30_spill] sm:$0xff]  ;;  %v7406_v28 = vld [vmem:[#allocation47_spill] sm:$0xff] }
 0x605   :  { %v2656_v52 = vld [vmem:[#allocation3] sm:$0x3]  ;;  %v3648_v3 = vpack.c.bf16 %v7405_v24, %v7404_v57  ;;  %v7407_v10 = vld [vmem:[#allocation48_spill] sm:$0xff]  ;;  %v7408_v49 = vld [vmem:[#allocation31_spill] sm:$0xff] }
 0x606   :  { %2657 = vst [vmem:[%s2637_s6] sm:$0x3] %v2656_v52  ;;  %v3650_v15 = vpack.c.bf16 %v7407_v10, %v7406_v28  ;;  %v7409_v38 = vld [vmem:[#allocation32_spill] sm:$0xff]  ;;  %v7410_v31 = vld [vmem:[#allocation49_spill] sm:$0xff]  ;;  %v7411_v62 = vld [vmem:[#allocation50_spill] sm:$0xff] }
 0x607   :  { %3633 = vmatpush3.bf16.xpose.msra.mxu1 %v3632_v32  ;;  %v3652_v36 = vpack.c.bf16 %v7409_v38, %v7408_v49  ;;  %v3654_v22 = vpack.c.bf16 %v7411_v62, %v7410_v31  ;;  %v7412_v8 = vld [vmem:[#allocation33_spill] sm:$0xff]  ;;  %v7413_v50 = vld [vmem:[#allocation34_spill] sm:$0xff] }
 0x608   :  { %3635 = vmatprep.subr.bf16.mxu1 %v3634_v7  ;;  %v3656_v60 = vpack.c.bf16 %v7413_v50, %v7412_v8 }
 0x60f   :  { %3637 = vmatpush3.bf16.xpose.msra.mxu1 %v3636_v42 }
 0x610   :  { %3639 = vmatprep.subr.bf16.mxu1 %v3638_v18 }
 0x617   :  { %3641 = vmatpush3.bf16.xpose.msra.mxu1 %v3640_v9 }
 0x618   :  { %3643 = vmatprep.subr.bf16.mxu1 %v3642_v6 }
 0x61f   :  { %3645 = vmatpush3.bf16.xpose.msra.mxu1 %v3644_v30 }
 0x620   :  { %3647 = vmatprep.subr.bf16.mxu1 %v3646_v47 }
 0x627   :  { %3649 = vmatpush3.bf16.xpose.msra.mxu1 %v3648_v3 }
 0x628   :  { %3651 = vmatprep.subr.bf16.mxu1 %v3650_v15 }
 0x62f   :  { %3653 = vmatpush3.bf16.xpose.msra.mxu1 %v3652_v36 }
 0x630   :  { %3655 = vmatprep.subr.bf16.mxu1 %v3654_v22 }
 0x637   :  { %3657 = vmatpush3.bf16.xpose.msra.mxu1 %v3656_v60 }
 0x63e   :  { %2908 = vmatmul.mubr.f32.vlgmr.msra.gmra.mrb[10].mxu1 %v2431_v12 }
 0x711   :  { %v2616_v21 = vpop.f32.mrb[10].mxu1 }
 0x712   :  { %v2621_v0 = vmul.f32 14.285714, %v2616_v21  ;;  %v2618_v33 = vpop.f32.mrb[11].mxu1 }
 0x713   :  { %v2622_v46 = vmul.f32 14.285714, %v2618_v33 }
 0x715   :  { %v2625_v53 = vcombine.low %v2621_v0, %v2622_v46 }
 0x717   :  { %2754 = vst.sshfl [vmem:[%s6610_s16 + $0x2] sm:$0x33 pattern:$0x76325410] %v2625_v53 }
 0x718   :  { %2682 = vsyncadd [#allocation4 + $0x1], 32 }
 0x719   :  { %3764 = dma.done.wait [#allocation4 + $0x1], 32 }
 0x71a   :  { %3765 = vsyncadd [#allocation4 + $0x1], 4294967264  ;;  %s3776_s13 = smov [#allocation11]  }
 0x71b   :  { %s2691_s30 = sshll.u32 %s3776_s13, 4  ;;  %s2692_s30 = int_to_ptr.vmem [resolvable:$true] %s2691_s30 }
 0x71c   :  { %s3736_s0 = scalar_lea.vmem %s2692_s30, 24576  ;;  %p3741_p3 = scmp.lt.s32.totalorder %s2692_s30, %s2692_s30 }
 0x71d   :  { %p3737_p2 = scmp.ne.s32.totalorder %s2692_s30, %s3736_s0  ;;  %p3742_p4 = scmp.lt.s32.totalorder %s3736_s0, %s3736_s0 }
 0x71f   :  { %p3743_p5 = por %p3742_p4, %p3741_p3 }
 0x721   :  { %p3744_p6 = pnand %p3743_p5, %p3737_p2 }
 0x723   :  { %3747 = shalt.err (!%p3744_p6)
}
 0x724   :  { %s3748_s27 = scalar_lea.hbm %s6608_s14, 24576 }
 0x725   :  { %p3749_p7 = scmp.ne.s32.totalorder %s6608_s14, %s3748_s27  ;;  %p3752_p8 = scmp.lt.u32.totalorder %s3748_s27, %s6608_s14 }
 0x727   :  { %p3754_p9 = pnand %p3752_p8, %p3749_p7 }
 0x729   :  { %3757 = shalt.err (!%p3754_p9)
}
 0x72a   :  { %2697 = dma.vmem_to_hbm [thread:$0]  %s2692_s30, 24576, %s6608_s14, [#allocation8], %s3769_s2, %s3769_s2, %s3770_s23  }
 0x72b   :  { %3766 = dma.done.wait [#allocation8], 24576  }
 0x72c   :  { %3767 = vsyncadd [#allocation8], 4294942720 }
 0x72d   :  { %2713 = vsyncpa [#allocation7], 1 }
 0x72e   :  { %2714 = vsyncpa [#allocation10], 1 }
 0x72f   :  { %2715 = vsyncpa [#allocation8], 1 }
 0x730   :  { %2716 = vsyncmov [#allocation4] }
 0x733   :  { %s2717_s7 = vpop.sfrf %2716 }
 0x734   :  { %p2755_p10 = scmp.ne.s32.totalorder %s2717_s7, 0 }
 0x736   :  { %2721 = shalt.err (%p2755_p10)  }
 0x737   :  { %2723 = vsyncmov [#allocation4 + $0x1] }
 0x73a   :  { %s2724_s22 = vpop.sfrf %2723 }
 0x73b   :  { %p2756_p11 = scmp.ne.s32.totalorder %s2724_s22, 0 }
 0x73d   :  { %2728 = shalt.err (%p2756_p11)  }

</bundles_post_ra>
